<compile_context>
chip_gen: v5e
topology: v5e:2x2
jax: 0.10.0
libtpu: 0.0.40
codegen_flags: <defaults>
</compile_context>

<pallas_src>
import numpy as np
import jax
import jax.numpy as jnp
from jax import lax
from jax.experimental import pallas as pl
from jax.experimental.pallas import tpu as pltpu

MM_DTYPE = jnp.bfloat16   # MXU operand dtype for conv2 / fc1 / fc2 (accumulation is f32)


def _round_up(x, m):
    return ((x + m - 1) // m) * m


# ---------------------------------------------------------------------------
# Fused forward kernel for one batch tile of TB samples.  Four lane-dense
# 2-D matmuls + element-wise epilogues; nothing leaves VMEM between layers.
# ---------------------------------------------------------------------------
def _net_kernel(x_ref, w1_ref, b1_ref, w2_ref, b2_ref,
                wf1_ref, bf1_ref, wf2_ref, bf2_ref, out_ref):
    # ---- conv1 + bias + ReLU : one f32 matmul vs. the unrolled-conv weight --
    x = x_ref[...]                                                  # (TB, 64) f32
    t = jnp.dot(x, w1_ref[...], preferred_element_type=jnp.float32)
    t = jnp.maximum(t + b1_ref[...], 0.0)                           # (TB, 1152) f32

    # ---- conv2 + bias + ReLU : one bf16 matmul, f32 accumulation ------------
    y2 = jnp.dot(t.astype(MM_DTYPE), w2_ref[...],
                 preferred_element_type=jnp.float32)
    y2 = jnp.maximum(y2 + b2_ref[...], 0.0)                         # (TB, 1024) f32

    # Dropout2d / Dropout are identity in eval mode (inference forward).

    # ---- fc1 + bias + ReLU : one bf16 matmul (NCHW flatten folded in weight)
    h = jnp.dot(y2.astype(MM_DTYPE), wf1_ref[...],
                preferred_element_type=jnp.float32)
    h = jnp.maximum(h + bf1_ref[...], 0.0)                          # (TB, 128) f32

    # ---- fc2 (bf16 operands, f32 accum) + exact log_softmax over 2 classes -
    logits = jnp.dot(h.astype(MM_DTYPE), wf2_ref[...],
                     preferred_element_type=jnp.float32) + bf2_ref[...]   # (TB, 2)
    m = jnp.max(logits, axis=-1, keepdims=True)
    shifted = logits - m
    lse = jnp.log(jnp.sum(jnp.exp(shifted), axis=-1, keepdims=True))
    out_ref[...] = shifted - lse


# ---------------------------------------------------------------------------
# One-time parameter preparation (hoisted out of the forward pass).
# Input params are in PyTorch layout:
#   w1 (32,1,3,3) b1 (32,)  w2 (64,32,3,3) b2 (64,)
#   wf1 (128,1024) bf1 (128,)  wf2 (2,128) bf2 (2,)
# Produces:
#   W1full (64,1152)  f32 : W1full[i*8+j, u*32+c]  = w1[c,0,i-i1,j-j1]  (u=(i1,j1), 6x6)
#   W2full (1152,1024) bf16: W2full[u*32+ci, s*64+co] = w2[co,ci,i1-oi,j1-oj] (s=(oi,oj), 4x4)
#   Wf1p  (1024,128)  bf16: Wf1p[s*64+co, j]       = wf1[j, co*16+s]   (NCHW flatten order)
#   Wf2t  (128,2)     bf16: wf2.T
# ---------------------------------------------------------------------------
def prepare_params(torch_params):
    w1, b1, w2, b2, wf1, bf1, wf2, bf2 = torch_params

    # conv1 Toeplitz structure tensor: m1[i*8+j, u, ki, kj] = 1 iff (i,j)=(i1+ki, j1+kj)
    m1 = np.zeros((64, 36, 3, 3), np.float32)
    for i1 in range(6):
        for j1 in range(6):
            u = i1 * 6 + j1
            for ki in range(3):
                for kj in range(3):
                    m1[(i1 + ki) * 8 + (j1 + kj), u, ki, kj] = 1.0
    w1full = jnp.einsum('xukl,ckl->xuc', jnp.asarray(m1), w1[:, 0, :, :])
    w1full = w1full.reshape(64, 36 * 32).astype(jnp.float32)         # (64, 1152)
    b1full = jnp.tile(b1, 36).reshape(1, 1152).astype(jnp.float32)   # [u*32+c] = b1[c]

    # conv2 Toeplitz structure tensor: m2[u, di, dj, s] = 1 iff (i1,j1)=(oi+di, oj+dj)
    m2 = np.zeros((36, 3, 3, 16), np.float32)
    for oi in range(4):
        for oj in range(4):
            s = oi * 4 + oj
            for di in range(3):
                for dj in range(3):
                    m2[(oi + di) * 6 + (oj + dj), di, dj, s] = 1.0
    w2full = jnp.einsum('udes,ocde->ucso', jnp.asarray(m2), w2)       # (36,32,16,64)
    w2full = w2full.reshape(1152, 1024).astype(MM_DTYPE)
    b2full = jnp.tile(b2, 16).reshape(1, 1024).astype(jnp.float32)    # [s*64+co] = b2[co]

    # fc1: fold the PyTorch NCHW flatten (column c*16+s) into the weight so that
    # y2's natural (s, co) column order feeds fc1 directly.
    wf1p = wf1.reshape(128, 64, 16).transpose(2, 1, 0).reshape(1024, 128).astype(MM_DTYPE)
    bf1r = bf1.reshape(1, 128).astype(jnp.float32)

    wf2t = wf2.T.astype(MM_DTYPE)                                     # (128, 2)
    bf2r = bf2.reshape(1, 2).astype(jnp.float32)
    return (w1full, b1full, w2full, b2full, wf1p, bf1r, wf2t, bf2r)


# ---------------------------------------------------------------------------
# Forward pass: the wrapper only reshapes/pads the raw input; one fused Pallas
# kernel does the whole network, tiled over batch ("parallel" grid axis).
# ---------------------------------------------------------------------------
def net_forward(x, params):
    """x: (N, 1, 8, 8) float32 -> log-probs (N, 2)."""
    (w1f, b1f, w2f, b2f, wf1p, bf1r, wf2t, bf2r) = params
    N = x.shape[0]
    assert x.shape[1:] == (1, 8, 8), "fc1 in_features=1024 implies (N, 1, 8, 8) input"

    # Batch tiling: up to 256 samples per grid step (multiple of 8 for sublane
    # tiling); target >= 2 grid blocks when N >= 16 so both TensorCores get
    # work on v7x. Peak VMEM ~<=10 MiB at TB=256 -> safe on every chip.
    TB = min(256, _round_up(max((N + 1) // 2, 1), 8))
    Np = _round_up(N, TB)

    xs = x.reshape(N, 64).astype(jnp.float32)          # raw bytes only (256 B/sample)
    if Np != N:
        xs = jnp.pad(xs, ((0, Np - N), (0, 0)))        # zero rows stay finite, sliced off

    num_blocks = Np // TB
    out = pl.pallas_call(
        _net_kernel,
        out_shape=jax.ShapeDtypeStruct((Np, 2), jnp.float32),
        grid=(num_blocks,),
        in_specs=[
            # Streamed input tile. (Optional knob if DMA latency were ever
            # exposed at small TB: pipeline_mode=pl.Buffered(3) on this spec.)
            pl.BlockSpec((TB, 64), lambda i: (i, 0)),
            # VMEM-resident weights/biases (constant block index => loaded once).
            pl.BlockSpec((64, 1152), lambda i: (0, 0)),    # conv1 unrolled weight (f32)
            pl.BlockSpec((1, 1152), lambda i: (0, 0)),
            pl.BlockSpec((1152, 1024), lambda i: (0, 0)),  # conv2 unrolled weight (bf16)
            pl.BlockSpec((1, 1024), lambda i: (0, 0)),
            pl.BlockSpec((1024, 128), lambda i: (0, 0)),   # fc1 weight (flatten folded in)
            pl.BlockSpec((1, 128), lambda i: (0, 0)),
            pl.BlockSpec((128, 2), lambda i: (0, 0)),      # fc2 weight
            pl.BlockSpec((1, 2), lambda i: (0, 0)),
        ],
        out_specs=pl.BlockSpec((TB, 2), lambda i: (i, 0)),
        compiler_params=pltpu.CompilerParams(
            dimension_semantics=("parallel",),     # batch tiles shard across TCs (v7x)
            vmem_limit_bytes=32 * 1024 * 1024,
        ),
    )(xs, w1f, b1f, w2f, b2f, wf1p, bf1r, wf2t, bf2r)
    return out[:N]


# ---------------------------------------------------------------------------
# Pure-JAX f32 reference of the PyTorch forward (eval mode) + synthetic params
# ---------------------------------------------------------------------------
def reference_forward(x, torch_params):
    w1, b1, w2, b2, wf1, bf1, wf2, bf2 = torch_params
    dn = ('NCHW', 'OIHW', 'NCHW')
    y = lax.conv_general_dilated(x, w1, (1, 1), 'VALID', dimension_numbers=dn,
                                 precision=lax.Precision.HIGHEST)
    y = jnp.maximum(y + b1[None, :, None, None], 0.0)
    y = lax.conv_general_dilated(y, w2, (1, 1), 'VALID', dimension_numbers=dn,
                                 precision=lax.Precision.HIGHEST)
    y = jnp.maximum(y + b2[None, :, None, None], 0.0)
    flat = y.reshape(y.shape[0], -1)                       # PyTorch NCHW flatten
    h = jnp.maximum(jnp.dot(flat, wf1.T, precision=lax.Precision.HIGHEST) + bf1, 0.0)
    logits = jnp.dot(h, wf2.T, precision=lax.Precision.HIGHEST) + bf2
    return jax.nn.log_softmax(logits, axis=1)


def init_params(key):
    """Deterministic synthetic parameters with the PyTorch module's shapes."""
    ks = jax.random.split(key, 8)

    def u(k, shape, fan_in):
        bound = 1.0 / jnp.sqrt(fan_in)
        return jax.random.uniform(k, shape, jnp.float32, -bound, bound)

    w1 = u(ks[0], (32, 1, 3, 3), 1 * 9)
    b1 = u(ks[1], (32,), 1 * 9)
    w2 = u(ks[2], (64, 32, 3, 3), 32 * 9)
    b2 = u(ks[3], (64,), 32 * 9)
    wf1 = u(ks[4], (128, 1024), 1024)
    bf1 = u(ks[5], (128,), 1024)
    wf2 = u(ks[6], (2, 128), 128)
    bf2 = u(ks[7], (2,), 128)
    return (w1, b1, w2, b2, wf1, bf1, wf2, bf2)


if __name__ == "__main__":
    key = jax.random.PRNGKey(0)
    pkey, xkey = jax.random.split(key)
    torch_params = init_params(pkey)
    params = prepare_params(torch_params)

    fwd = jax.jit(net_forward)

    # fc1 in_features = 1024 = 64 * 4 * 4  ->  input is (N, 1, 8, 8).
    # N=2: small primary test; N=20: exercises multi-block grid + batch padding.
    for n in (2, 20):
        x = jax.random.normal(jax.random.fold_in(xkey, n), (n, 1, 8, 8), jnp.float32)
        out = jax.block_until_ready(fwd(x, params))
        assert out.shape == (n, 2)

        # each row of log_softmax must exponentiate-and-sum to 1
        assert bool(jnp.all(jnp.abs(jnp.sum(jnp.exp(out), axis=1) - 1.0) < 1e-4))

        # match the f32 PyTorch-equivalent reference (loose tol: bf16 MXU operands)
        ref = reference_forward(x, torch_params)
        assert bool(jnp.max(jnp.abs(out - ref)) < 5e-2)

    print("KERNEL_OK")
</pallas_src>

<mosaic_0001>
module attributes {stable_mosaic.version = 11 : i64} {
  func.func @_net_kernel(%arg0: i32, %arg1: memref<8x64xf32, #tpu.memory_space<vmem>>, %arg2: memref<64x1152xf32, #tpu.memory_space<vmem>>, %arg3: memref<1x1152xf32, #tpu.memory_space<vmem>>, %arg4: memref<1152x1024xbf16, #tpu.memory_space<vmem>>, %arg5: memref<1x1024xf32, #tpu.memory_space<vmem>>, %arg6: memref<1024x128xbf16, #tpu.memory_space<vmem>>, %arg7: memref<1x128xf32, #tpu.memory_space<vmem>>, %arg8: memref<128x2xbf16, #tpu.memory_space<vmem>>, %arg9: memref<1x2xf32, #tpu.memory_space<vmem>>, %arg10: memref<8x2xf32, #tpu.memory_space<vmem>>) attributes {dimension_semantics = [#tpu.dimension_semantics<parallel>], iteration_bounds = array<i64: 1>, scalar_prefetch = 0 : i64, scratch_operands = 0 : i64, tpu.core_type = #tpu.core_type<tc>, window_params = [{transform_indices = @transform_0, window_bounds = array<i64: 8, 64>}, {pipeline_mode = #tpu.pipeline_mode<synchronous>, transform_indices = @transform_1, window_bounds = array<i64: 64, 1152>}, {pipeline_mode = #tpu.pipeline_mode<synchronous>, transform_indices = @transform_2, window_bounds = array<i64: 1, 1152>}, {pipeline_mode = #tpu.pipeline_mode<synchronous>, transform_indices = @transform_3, window_bounds = array<i64: 1152, 1024>}, {pipeline_mode = #tpu.pipeline_mode<synchronous>, transform_indices = @transform_4, window_bounds = array<i64: 1, 1024>}, {pipeline_mode = #tpu.pipeline_mode<synchronous>, transform_indices = @transform_5, window_bounds = array<i64: 1024, 128>}, {pipeline_mode = #tpu.pipeline_mode<synchronous>, transform_indices = @transform_6, window_bounds = array<i64: 1, 128>}, {pipeline_mode = #tpu.pipeline_mode<synchronous>, transform_indices = @transform_7, window_bounds = array<i64: 128, 2>}, {pipeline_mode = #tpu.pipeline_mode<synchronous>, transform_indices = @transform_8, window_bounds = array<i64: 1, 2>}, {transform_indices = @transform_9, window_bounds = array<i64: 8, 2>}]} {
    %c0 = arith.constant 0 : index
    %c0_0 = arith.constant 0 : index
    %0 = vector.load %arg1[%c0, %c0_0] : memref<8x64xf32, #tpu.memory_space<vmem>>, vector<8x64xf32>
    %c0_1 = arith.constant 0 : index
    %c0_2 = arith.constant 0 : index
    %1 = vector.load %arg2[%c0_1, %c0_2] : memref<64x1152xf32, #tpu.memory_space<vmem>>, vector<64x1152xf32>
    %cst = arith.constant dense<0.000000e+00> : vector<8x1152xf32>
    %2 = tpu.matmul %0, %1, %cst {dimension_numbers = #tpu.dot_dimension_numbers<[1], [0], [0], [1], [0, 0, 1, 1], [], []>} : vector<8x64xf32>, vector<64x1152xf32>, vector<8x1152xf32> -> vector<8x1152xf32>
    %c0_3 = arith.constant 0 : index
    %c0_4 = arith.constant 0 : index
    %3 = vector.load %arg3[%c0_3, %c0_4] : memref<1x1152xf32, #tpu.memory_space<vmem>>, vector<1x1152xf32>
    %4 = vector.broadcast %3 : vector<1x1152xf32> to vector<8x1152xf32>
    %5 = arith.addf %2, %4 : vector<8x1152xf32>
    %cst_5 = arith.constant 0.000000e+00 : f32
    %6 = vector.broadcast %cst_5 : f32 to vector<8x1152xf32>
    %7 = arith.maximumf %5, %6 : vector<8x1152xf32>
    %8 = arith.truncf %7 : vector<8x1152xf32> to vector<8x1152xbf16>
    %c0_6 = arith.constant 0 : index
    %c0_7 = arith.constant 0 : index
    %9 = vector.load %arg4[%c0_6, %c0_7] : memref<1152x1024xbf16, #tpu.memory_space<vmem>>, vector<1152x1024xbf16>
    %cst_8 = arith.constant dense<0.000000e+00> : vector<8x1024xf32>
    %10 = tpu.matmul %8, %9, %cst_8 {dimension_numbers = #tpu.dot_dimension_numbers<[1], [0], [0], [1], [0, 0, 1, 1], [], []>} : vector<8x1152xbf16>, vector<1152x1024xbf16>, vector<8x1024xf32> -> vector<8x1024xf32>
    %c0_9 = arith.constant 0 : index
    %c0_10 = arith.constant 0 : index
    %11 = vector.load %arg5[%c0_9, %c0_10] : memref<1x1024xf32, #tpu.memory_space<vmem>>, vector<1x1024xf32>
    %12 = vector.broadcast %11 : vector<1x1024xf32> to vector<8x1024xf32>
    %13 = arith.addf %10, %12 : vector<8x1024xf32>
    %cst_11 = arith.constant 0.000000e+00 : f32
    %14 = vector.broadcast %cst_11 : f32 to vector<8x1024xf32>
    %15 = arith.maximumf %13, %14 : vector<8x1024xf32>
    %16 = arith.truncf %15 : vector<8x1024xf32> to vector<8x1024xbf16>
    %c0_12 = arith.constant 0 : index
    %c0_13 = arith.constant 0 : index
    %17 = vector.load %arg6[%c0_12, %c0_13] : memref<1024x128xbf16, #tpu.memory_space<vmem>>, vector<1024x128xbf16>
    %cst_14 = arith.constant dense<0.000000e+00> : vector<8x128xf32>
    %18 = tpu.matmul %16, %17, %cst_14 {dimension_numbers = #tpu.dot_dimension_numbers<[1], [0], [0], [1], [0, 0, 1, 1], [], []>} : vector<8x1024xbf16>, vector<1024x128xbf16>, vector<8x128xf32> -> vector<8x128xf32>
    %c0_15 = arith.constant 0 : index
    %c0_16 = arith.constant 0 : index
    %19 = vector.load %arg7[%c0_15, %c0_16] : memref<1x128xf32, #tpu.memory_space<vmem>>, vector<1x128xf32>
    %20 = vector.broadcast %19 : vector<1x128xf32> to vector<8x128xf32>
    %21 = arith.addf %18, %20 : vector<8x128xf32>
    %cst_17 = arith.constant 0.000000e+00 : f32
    %22 = vector.broadcast %cst_17 : f32 to vector<8x128xf32>
    %23 = arith.maximumf %21, %22 : vector<8x128xf32>
    %24 = arith.truncf %23 : vector<8x128xf32> to vector<8x128xbf16>
    %c0_18 = arith.constant 0 : index
    %c0_19 = arith.constant 0 : index
    %25 = vector.load %arg8[%c0_18, %c0_19] : memref<128x2xbf16, #tpu.memory_space<vmem>>, vector<128x2xbf16>
    %cst_20 = arith.constant dense<0.000000e+00> : vector<8x2xf32>
    %26 = tpu.matmul %24, %25, %cst_20 {dimension_numbers = #tpu.dot_dimension_numbers<[1], [0], [0], [1], [0, 0, 1, 1], [], []>} : vector<8x128xbf16>, vector<128x2xbf16>, vector<8x2xf32> -> vector<8x2xf32>
    %c0_21 = arith.constant 0 : index
    %c0_22 = arith.constant 0 : index
    %27 = vector.load %arg9[%c0_21, %c0_22] : memref<1x2xf32, #tpu.memory_space<vmem>>, vector<1x2xf32>
    %28 = vector.broadcast %27 : vector<1x2xf32> to vector<8x2xf32>
    %29 = arith.addf %26, %28 : vector<8x2xf32>
    %cst_23 = arith.constant dense<0xFF800000> : vector<8xf32>
    %30 = vector.multi_reduction <maximumf>, %29, %cst_23 [1] : vector<8x2xf32> to vector<8xf32>
    %31 = vector.shape_cast %30 : vector<8xf32> to vector<8x1xf32>
    %32 = vector.broadcast %31 : vector<8x1xf32> to vector<8x2xf32>
    %33 = arith.subf %29, %32 : vector<8x2xf32>
    %34 = math.exp %33 : vector<8x2xf32>
    %cst_24 = arith.constant dense<0.000000e+00> : vector<8xf32>
    %35 = vector.multi_reduction <add>, %34, %cst_24 [1] : vector<8x2xf32> to vector<8xf32>
    %36 = vector.shape_cast %35 : vector<8xf32> to vector<8x1xf32>
    %37 = math.log %36 : vector<8x1xf32>
    %38 = vector.broadcast %37 : vector<8x1xf32> to vector<8x2xf32>
    %39 = arith.subf %33, %38 : vector<8x2xf32>
    %c0_25 = arith.constant 0 : index
    %c0_26 = arith.constant 0 : index
    %40 = vector.load %arg10[%c0_25, %c0_26] : memref<8x2xf32, #tpu.memory_space<vmem>>, vector<8x2xf32>
    tpu.vector_store %arg10[%c0_25, %c0_26], %39 {strides = array<i32>} : memref<8x2xf32, #tpu.memory_space<vmem>>, vector<8x2xf32>,
    return
  }
  func.func @transform_0(%arg0: i32) -> (i32, i32) {
    %c0_i32 = arith.constant 0 : i32
    %c0_i32_0 = arith.constant 0 : i32
    return %arg0, %c0_i32 : i32, i32
  }
  func.func @transform_1(%arg0: i32) -> (i32, i32) {
    %c0_i32 = arith.constant 0 : i32
    %c0_i32_0 = arith.constant 0 : i32
    %c0_i32_1 = arith.constant 0 : i32
    return %c0_i32, %c0_i32_0 : i32, i32
  }
  func.func @transform_2(%arg0: i32) -> (i32, i32) {
    %c0_i32 = arith.constant 0 : i32
    %c0_i32_0 = arith.constant 0 : i32
    %c0_i32_1 = arith.constant 0 : i32
    return %c0_i32, %c0_i32_0 : i32, i32
  }
  func.func @transform_3(%arg0: i32) -> (i32, i32) {
    %c0_i32 = arith.constant 0 : i32
    %c0_i32_0 = arith.constant 0 : i32
    %c0_i32_1 = arith.constant 0 : i32
    return %c0_i32, %c0_i32_0 : i32, i32
  }
  func.func @transform_4(%arg0: i32) -> (i32, i32) {
    %c0_i32 = arith.constant 0 : i32
    %c0_i32_0 = arith.constant 0 : i32
    %c0_i32_1 = arith.constant 0 : i32
    return %c0_i32, %c0_i32_0 : i32, i32
  }
  func.func @transform_5(%arg0: i32) -> (i32, i32) {
    %c0_i32 = arith.constant 0 : i32
    %c0_i32_0 = arith.constant 0 : i32
    %c0_i32_1 = arith.constant 0 : i32
    return %c0_i32, %c0_i32_0 : i32, i32
  }
  func.func @transform_6(%arg0: i32) -> (i32, i32) {
    %c0_i32 = arith.constant 0 : i32
    %c0_i32_0 = arith.constant 0 : i32
    %c0_i32_1 = arith.constant 0 : i32
    return %c0_i32, %c0_i32_0 : i32, i32
  }
  func.func @transform_7(%arg0: i32) -> (i32, i32) {
    %c0_i32 = arith.constant 0 : i32
    %c0_i32_0 = arith.constant 0 : i32
    %c0_i32_1 = arith.constant 0 : i32
    return %c0_i32, %c0_i32_0 : i32, i32
  }
  func.func @transform_8(%arg0: i32) -> (i32, i32) {
    %c0_i32 = arith.constant 0 : i32
    %c0_i32_0 = arith.constant 0 : i32
    %c0_i32_1 = arith.constant 0 : i32
    return %c0_i32, %c0_i32_0 : i32, i32
  }
  func.func @transform_9(%arg0: i32) -> (i32, i32) {
    %c0_i32 = arith.constant 0 : i32
    %c0_i32_0 = arith.constant 0 : i32
    return %arg0, %c0_i32 : i32, i32
  }
}

</mosaic_0001>

<bundles_post_ra>
// kernel: net_forward.1
= control target key start
LH: loop header
LB: loop body
LE: loop exit
PB: predicated region body
PF: predicated region fallthrough
CT: control target
= control target key end

     0   :  { %14 = vsyncpa [#allocation3], 0  ;;  %s9389_s0 = inlined_call_operand.vmem [shape: f32[8,64], index: 0, kind: input, shape index: {}]   ;;  %s9390_s1 = inlined_call_operand.hbm [shape: f32[64,1152], index: 1, kind: input, shape index: {}]   ;;  %s9391_s2 = inlined_call_operand.hbm [shape: f32[1,1152], index: 2, kind: input, shape index: {}]   ;;  %s9392_s3 = inlined_call_operand.hbm [shape: bf16[1152,1024], index: 3, kind: input, shape index: {}]   ;;  %s9393_s4 = inlined_call_operand.hbm [shape: f32[1,1024], index: 4, kind: input, shape index: {}]   ;;  %s9394_s5 = inlined_call_operand.hbm [shape: bf16[1024,128], index: 5, kind: input, shape index: {}]   ;;  %s9395_s6 = inlined_call_operand.hbm [shape: f32[1,128], index: 6, kind: input, shape index: {}]   ;;  %s9396_s7 = inlined_call_operand.vmem [shape: bf16[128,2], index: 7, kind: input, shape index: {}]   ;;  %s9397_s8 = inlined_call_operand.hbm [shape: f32[1,2], index: 8, kind: input, shape index: {}]   ;;  %s9398_s9 = inlined_call_operand.vmem [shape: f32[8,2], index: 9, kind: output, shape index: {}]  }
   0x1   :  { %15 = vsyncpa [#allocation5], 0 }
   0x2   :  { %16 = vsyncpa [#allocation8], 0  ;;  %s38_s11 = sshll.u32 %s9391_s2, 4  ;;  %s39_s11 = int_to_ptr.hbm [resolvable:$true] %s38_s11 }
   0x3   :  { %17 = vsyncpa [#allocation11], 0  ;;  %s9029_s12 = smov [#allocation4]   ;;  %s62_s16 = sshll.u32 %s9393_s4, 4  ;;  %s63_s16 = int_to_ptr.hbm [resolvable:$true] %s62_s16 }
   0x4   :  { %s40_s13 = sshll.u32 %s9029_s12, 4  ;;  %s9030_s17 = smov [#allocation7]   ;;  %s41_s13 = int_to_ptr.vmem [resolvable:$true] %s40_s13 }
   0x5   :  { %43 = dma.hbm_to_vmem [thread:$0]  %s39_s11, 144, %s41_s13, [#allocation5]  }
   0x6   :  { %s64_s18 = sshll.u32 %s9030_s17, 4  ;;  %s86_s21 = sshll.u32 %s9395_s6, 4  ;;  %s65_s18 = int_to_ptr.vmem [resolvable:$true] %s64_s18  ;;  %s87_s21 = int_to_ptr.hbm [resolvable:$true] %s86_s21 }
   0x7   :  { %67 = dma.hbm_to_vmem [thread:$0]  %s63_s16, 128, %s65_s18, [#allocation8]  }
   0x8   :  { %s24_s23 = sshll.u32 %s9390_s1, 4  ;;  %s9031_s24 = smov [#allocation10]   ;;  %s25_s23 = int_to_ptr.hbm [resolvable:$true] %s24_s23 }
   0x9   :  { %s88_s25 = sshll.u32 %s9031_s24, 4  ;;  %s9032_s4 = smov [#allocation2]   ;;  %s89_s25 = int_to_ptr.vmem [resolvable:$true] %s88_s25 }
   0xa   :  { %91 = dma.hbm_to_vmem [thread:$0]  %s87_s21, 16, %s89_s25, [#allocation11]  }
   0xb   :  { %s26_s26 = sshll.u32 %s9032_s4, 4  ;;  %s9033_s27 = smov 1152   ;;  %s27_s26 = int_to_ptr.vmem [resolvable:$true] %s26_s26 }
   0xc   :  { %s9034_s28 = smov 72   ;;  %s48_s30 = sshll.u32 %s9392_s3, 4  ;;  %s49_s30 = int_to_ptr.hbm [resolvable:$true] %s48_s30 }
   0xd   :  { %32 = dma.hbm_to_vmem [thread:$0]  %s25_s23, 9216, %s27_s26, [#allocation3], %s9033_s27, %s9033_s27, %s9034_s28  }
   0xe   :  { %s9035_s10 = smov [#allocation6]   ;;  %s72_s13 = sshll.u32 %s9394_s5, 4  ;;  %s73_s13 = int_to_ptr.hbm [resolvable:$true] %s72_s13 }
   0xf   :  { %s50_s11 = sshll.u32 %s9035_s10, 4  ;;  %s9036_s14 = smov 512   ;;  %s51_s11 = int_to_ptr.vmem [resolvable:$true] %s50_s11 }
  0x10   :  { %s9037_s15 = smov 32   ;;  %s9038_s16 = smov [#allocation9]  }
  0x11   :  { %56 = dma.hbm_to_vmem [thread:$0]  %s49_s30, 73728, %s51_s11, [#allocation5], %s9036_s14, %s9036_s14, %s9037_s15  }
  0x12   :  { %s74_s17 = sshll.u32 %s9038_s16, 4  ;;  %s9039_s18 = smov 64   ;;  %s75_s17 = int_to_ptr.vmem [resolvable:$true] %s74_s17 }
  0x13   :  { %s9040_s19 = smov 4   ;;  %s99_s21 = sshll.u32 %s9397_s8, 4  ;;  %s100_s21 = int_to_ptr.hbm [resolvable:$true] %s99_s21 }
  0x14   :  { %80 = dma.hbm_to_vmem [thread:$0]  %s73_s13, 8192, %s75_s17, [#allocation8], %s9039_s18, %s9039_s18, %s9040_s19  }
  0x15   :  { %s9041_s2 = smov [#allocation12]  }
  0x16   :  { %s101_s22 = sshll.u32 %s9041_s2, 4  ;;  %s102_s22 = int_to_ptr.vmem [resolvable:$true] %s101_s22 }
  0x17   :  { %104 = dma.hbm_to_vmem [thread:$0]  %s100_s21, 16, %s102_s22, [#allocation11]  }
  0x18   :  { %9021 = dma.done.wait [#allocation3], 9216  }
  0x19   :  { %9022 = vsyncadd [#allocation3], 4294958080 }
  0x1a   :  { %9023 = dma.done.wait [#allocation5], 73872  }
  0x1b   :  { %9024 = vsyncadd [#allocation5], 4294893424 }
  0x1c   :  { %9025 = dma.done.wait [#allocation8], 8320  }
  0x1d   :  { %9026 = vsyncadd [#allocation8], 4294958976 }
  0x1e   :  { %9027 = dma.done.wait [#allocation11], 32  }
  0x1f   :  { %9028 = vsyncadd [#allocation11], 4294967264  ;;  %v197_v0 = vld [vmem:[#allocation2 + $0x1f8] sm:$0xff]  ;;  %v198_v1 = vld [vmem:[#allocation2 + $0x200] sm:$0xff]  ;;  %vm228_vm0 = vcmask 523264   ;;  %vm5559_vm1 = vcmask 15360  }
  0x20   :  { %v200_v2 = vld [vmem:[#allocation2 + $0x210] sm:$0xff]  ;;  %240 = vmatpush.msra.mxu0 %v197_v0  ;;  %260 = vmatpush.msra.mxu2 %v198_v1  ;;  %v189_v4 = vld [vmem:[#allocation2 + $0x1b8] sm:$0xff]  ;;  %v191_v5 = vld [vmem:[#allocation2 + $0x1c8] sm:$0xff] }
  0x21   :  { %v188_v3 = vld [vmem:[#allocation2 + $0x1b0] sm:$0xff]  ;;  %300 = vmatpush.msra.mxu3 %v200_v2  ;;  %v179_v6 = vld [vmem:[#allocation2 + $0x168] sm:$0xff]  ;;  %v182_v8 = vld [vmem:[#allocation2 + $0x180] sm:$0xff] }
  0x22   :  { %v180_v7 = vld [vmem:[#allocation2 + $0x170] sm:$0xff]  ;;  %241 = vmatpush.msra.mxu0 %v188_v3  ;;  %261 = vmatpush.msra.mxu2 %v189_v4  ;;  %v170_v9 = vld [vmem:[#allocation2 + $0x120] sm:$0xff]  ;;  %v171_v10 = vld [vmem:[#allocation2 + $0x128] sm:$0xff] }
  0x23   :  { %301 = vmatpush.msra.mxu3 %v191_v5  ;;  %v173_v11 = vld [vmem:[#allocation2 + $0x138] sm:$0xff]  ;;  %v162_v13 = vld [vmem:[#allocation2 + $0xe0] sm:$0xff]  ;;  %v164_v14 = vld [vmem:[#allocation2 + $0xf0] sm:$0xff] }
  0x24   :  { %242 = vmatpush.msra.mxu0 %v179_v6  ;;  %262 = vmatpush.msra.mxu2 %v180_v7  ;;  %v161_v12 = vld [vmem:[#allocation2 + $0xd8] sm:$0xff]  ;;  %v152_v15 = vld [vmem:[#allocation2 + $0x90] sm:$0xff]  ;;  %v155_v17 = vld [vmem:[#allocation2 + $0xa8] sm:$0xff] }
  0x25   :  { %302 = vmatpush.msra.mxu3 %v182_v8  ;;  %v153_v16 = vld [vmem:[#allocation2 + $0x98] sm:$0xff]  ;;  %v143_v18 = vld [vmem:[#allocation2 + $0x48] sm:$0xff]  ;;  %v144_v19 = vld [vmem:[#allocation2 + $0x50] sm:$0xff] }
  0x26   :  { %243 = vmatpush.msra.mxu0 %v170_v9  ;;  %263 = vmatpush.msra.mxu2 %v171_v10  ;;  %v202_v20 = vld [vmem:[#allocation2 + $0x220] sm:$0xff]  ;;  %v193_v22 = vld [vmem:[#allocation2 + $0x1d8] sm:$0xff]  ;;  %v135_v24 = vld [vmem:[#allocation2 + $0x8] sm:$0xff] }
  0x27   :  { %303 = vmatpush.msra.mxu3 %v173_v11  ;;  %v146_v21 = vld [vmem:[#allocation2 + $0x60] sm:$0xff]  ;;  %340 = vmatpush.msra.mxu1 %v202_v20  ;;  %v137_v25 = vld [vmem:[#allocation2 + $0x18] sm:$0xff]  ;;  %v199_v27 = vld [vmem:[#allocation2 + $0x208] sm:$0xff] }
  0x28   :  { %244 = vmatpush.msra.mxu0 %v161_v12  ;;  %264 = vmatpush.msra.mxu2 %v162_v13  ;;  %v134_v23 = vld [vmem:[#allocation2] sm:$0xff]  ;;  %v204_v28 = vld [vmem:[#allocation2 + $0x230] sm:$0xff]  ;;  %v201_v30 = vld [vmem:[#allocation2 + $0x218] sm:$0xff] }
  0x29   :  { %304 = vmatpush.msra.mxu3 %v164_v14  ;;  %v9116_v26 = vld [vmem:[%s9389_s0] sm:$0xff]  ;;  %341 = vmatpush.msra.mxu1 %v193_v22  ;;  %v184_v29 = vld [vmem:[#allocation2 + $0x190] sm:$0xff]  ;;  %v195_v32 = vld [vmem:[#allocation2 + $0x1e8] sm:$0xff] }
  0x2a   :  { %245 = vmatpush.msra.mxu0 %v152_v15  ;;  %265 = vmatpush.msra.mxu2 %v153_v16  ;;  %v190_v31 = vld [vmem:[#allocation2 + $0x1c0] sm:$0xff]  ;;  %v175_v33 = vld [vmem:[#allocation2 + $0x148] sm:$0xff]  ;;  %v192_v34 = vld [vmem:[#allocation2 + $0x1d0] sm:$0xff] }
  0x2b   :  { %305 = vmatpush.msra.mxu3 %v155_v17  ;;  %v181_v35 = vld [vmem:[#allocation2 + $0x178] sm:$0xff]  ;;  %v186_v36 = vld [vmem:[#allocation2 + $0x1a0] sm:$0xff]  ;;  %342 = vmatpush.msra.mxu1 %v184_v29  ;;  %v183_v38 = vld [vmem:[#allocation2 + $0x188] sm:$0xff] }
  0x2c   :  { %246 = vmatpush.msra.mxu0 %v143_v18  ;;  %266 = vmatpush.msra.mxu2 %v144_v19  ;;  %v166_v37 = vld [vmem:[#allocation2 + $0x100] sm:$0xff]  ;;  %v172_v39 = vld [vmem:[#allocation2 + $0x130] sm:$0xff]  ;;  %v177_v40 = vld [vmem:[#allocation2 + $0x158] sm:$0xff] }
  0x2d   :  { %306 = vmatpush.msra.mxu3 %v146_v21  ;;  %343 = vmatpush.msra.mxu1 %v175_v33  ;;  %v157_v41 = vld [vmem:[#allocation2 + $0xb8] sm:$0xff]  ;;  %v174_v42 = vld [vmem:[#allocation2 + $0x140] sm:$0xff]  ;;  %v163_v43 = vld [vmem:[#allocation2 + $0xe8] sm:$0xff] }
  0x2e   :  { %247 = vmatpush.msra.mxu0 %v134_v23  ;;  %267 = vmatpush.msra.mxu2 %v135_v24  ;;  %v168_v44 = vld [vmem:[#allocation2 + $0x110] sm:$0xff]  ;;  %v165_v46 = vld [vmem:[#allocation2 + $0xf8] sm:$0xff]  ;;  %v154_v47 = vld [vmem:[#allocation2 + $0xa0] sm:$0xff] }
  0x2f   :  { %307 = vmatpush.msra.mxu3 %v137_v25  ;;  %5581 = vmatmul.msk.f32.vlgmr.msra.gmra.mxu0 %vm228_vm0, %v9116_v26  ;;  %v148_v45 = vld [vmem:[#allocation2 + $0x70] sm:$0xff]  ;;  %v159_v48 = vld [vmem:[#allocation2 + $0xc8] sm:$0xff]  ;;  %v145_v51 = vld [vmem:[#allocation2 + $0x58] sm:$0xff] }
  0x30   :  { %5582 = vmatmul.msk.f32.vlgmr.msra.gmra.mxu2 %vm228_vm0, %v9116_v26  ;;  %5584 = vmatmul.msk.f32.vlgmr.msra.gmra.mxu3 %vm228_vm0, %v9116_v26  ;;  %v139_v49 = vld [vmem:[#allocation2 + $0x28] sm:$0xff]  ;;  %v156_v50 = vld [vmem:[#allocation2 + $0xb0] sm:$0xff]  ;;  %v150_v52 = vld [vmem:[#allocation2 + $0x80] sm:$0xff] }
  0x31   :  { %280 = vmatpush.msrb.mxu2 %v199_v27  ;;  %380 = vmatpush.msrb.mxu3 %v204_v28  ;;  %v147_v53 = vld [vmem:[#allocation2 + $0x68] sm:$0xff]  ;;  %v136_v56 = vld [vmem:[#allocation2 + $0x10] sm:$0xff]  ;;  %v141_v57 = vld [vmem:[#allocation2 + $0x38] sm:$0xff] }
  0x32   :  { %320 = vmatpush.msrb.mxu0 %v201_v30  ;;  %344 = vmatpush.msra.mxu1 %v166_v37  ;;  %v5816_v54 = vld [vmem:[#allocation6 + $0x1c0] sm:$0xf]  ;;  %v138_v59 = vld [vmem:[#allocation2 + $0x20] sm:$0xff]  ;;  %v205_v0 = vld [vmem:[#allocation2 + $0x238] sm:$0xff] }
  0x33   :  { %281 = vmatpush.msrb.mxu2 %v190_v31  ;;  %381 = vmatpush.msrb.mxu3 %v195_v32  ;;  %v8242_v55 = vld [vmem:[#allocation6 + $0x1dc] sm:$0xf0]  ;;  %v194_v63 = vld [vmem:[#allocation2 + $0x1e0] sm:$0xff]  ;;  %v185_v3 = vld [vmem:[#allocation2 + $0x198] sm:$0xff] }
  0x34   :  { %321 = vmatpush.msrb.mxu0 %v192_v34  ;;  %345 = vmatpush.msra.mxu1 %v157_v41  ;;  %v203_v58 = vld [vmem:[#allocation2 + $0x228] sm:$0xff]  ;;  %v5817_v60 = vor.u32 %v8242_v55, %v5816_v54  ;;  %v196_v4 = vld [vmem:[#allocation2 + $0x1f0] sm:$0xff]  ;;  %v178_v15 = vld [vmem:[#allocation2 + $0x160] sm:$0xff] }
  0x35   :  { %282 = vmatpush.msrb.mxu2 %v181_v35  ;;  %382 = vmatpush.msrb.mxu3 %v186_v36  ;;  %v5784_v61 = vld [vmem:[#allocation6 + $0x180] sm:$0xf]  ;;  %v176_v10 = vld [vmem:[#allocation2 + $0x150] sm:$0xff]  ;;  %v158_v20 = vld [vmem:[#allocation2 + $0xc0] sm:$0xff] }
  0x36   :  { %322 = vmatpush.msrb.mxu0 %v183_v38  ;;  %346 = vmatpush.msra.mxu1 %v148_v45  ;;  %v8234_v62 = vld [vmem:[#allocation6 + $0x19c] sm:$0xf0]  ;;  %v169_v21 = vld [vmem:[#allocation2 + $0x118] sm:$0xff]  ;;  %v160_v24 = vld [vmem:[#allocation2 + $0xd0] sm:$0xff] }
  0x37   :  { %283 = vmatpush.msrb.mxu2 %v172_v39  ;;  %383 = vmatpush.msrb.mxu3 %v177_v40  ;;  %v6328_v1 = vld [vmem:[#allocation6 + $0x5c0] sm:$0xf]  ;;  %v5785_v5 = vor.u32 %v8234_v62, %v5784_v61  ;;  %v149_v23 = vld [vmem:[#allocation2 + $0x78] sm:$0xff]  ;;  %v140_v27 = vld [vmem:[#allocation2 + $0x30] sm:$0xff] }
  0x38   :  { %323 = vmatpush.msrb.mxu0 %v174_v42  ;;  %347 = vmatpush.msra.mxu1 %v139_v49  ;;  %v8370_v2 = vld [vmem:[#allocation6 + $0x5dc] sm:$0xf0]  ;;  %v142_v40 = vld [vmem:[#allocation2 + $0x40] sm:$0xff] }
  0x39   :  { %284 = vmatpush.msrb.mxu2 %v163_v43  ;;  %384 = vmatpush.msrb.mxu3 %v168_v44  ;;  %v6329_v6 = vor.u32 %v8370_v2, %v6328_v1  ;;  %v5752_v7 = vld [vmem:[#allocation6 + $0x140] sm:$0xf] }
  0x3a   :  { %324 = vmatpush.msrb.mxu0 %v165_v46  ;;  %5586 = vmatmul.msk.f32.vlgmr.msra.gmra.mxu1 %vm228_vm0, %v9116_v26  ;;  %v8226_v8 = vld [vmem:[#allocation6 + $0x15c] sm:$0xf0] }
  0x3b   :  { %285 = vmatpush.msrb.mxu2 %v154_v47  ;;  %385 = vmatpush.msrb.mxu3 %v159_v48  ;;  %v6296_v9 = vld [vmem:[#allocation6 + $0x580] sm:$0xf]  ;;  %v5753_v16 = vor.u32 %v8226_v8, %v5752_v7 }
  0x3c   :  { %325 = vmatpush.msrb.mxu0 %v156_v50  ;;  %3904 = vmatpush.bf16.msrb.mxu1 %v5817_v60  ;;  %v187_v11 = vld [vmem:[#allocation2 + $0x1a8] sm:$0xff] }
  0x3d   :  { %286 = vmatpush.msrb.mxu2 %v145_v51  ;;  %386 = vmatpush.msrb.mxu3 %v150_v52  ;;  %v8362_v12 = vld [vmem:[#allocation6 + $0x59c] sm:$0xf0] }
  0x3e   :  { %326 = vmatpush.msrb.mxu0 %v147_v53  ;;  %v6297_v13 = vor.u32 %v8362_v12, %v6296_v9  ;;  %v167_v14 = vld [vmem:[#allocation2 + $0x108] sm:$0xff] }
  0x3f   :  { %287 = vmatpush.msrb.mxu2 %v136_v56  ;;  %387 = vmatpush.msrb.mxu3 %v141_v57  ;;  %v5720_v17 = vld [vmem:[#allocation6 + $0x100] sm:$0xf] }
  0x40   :  { %5583 = vmatmul.msk.f32.vlgmr.msrb.gmra.mxu2 %vm228_vm0, %v9116_v26  ;;  %5588 = vmatmul.msk.f32.vlgmr.msrb.gmra.mxu3 %vm228_vm0, %v9116_v26  ;;  %v8218_v18 = vld [vmem:[#allocation6 + $0x11c] sm:$0xf0] }
  0x41   :  { %360 = vmatpush.msra.mxu2 %v203_v58  ;;  %327 = vmatpush.msrb.mxu0 %v138_v59  ;;  %v6264_v19 = vld [vmem:[#allocation6 + $0x540] sm:$0xf]  ;;  %v5721_v30 = vor.u32 %v8218_v18, %v5720_v17 }
  0x42   :  { %5585 = vmatmul.msk.f32.vlgmr.msrb.gmra.mxu0 %vm228_vm0, %v9116_v26  ;;  %3930 = vmatpush.bf16.msra.mxu3 %v6329_v6  ;;  %v8354_v22 = vld [vmem:[#allocation6 + $0x55c] sm:$0xf0] }
  0x43   :  { %361 = vmatpush.msra.mxu2 %v194_v63  ;;  %400 = vmatpush.msra.mxu0 %v205_v0  ;;  %v6265_v25 = vor.u32 %v8354_v22, %v6264_v19  ;;  %v6072_v28 = vld [vmem:[#allocation6 + $0x3c0] sm:$0xf] }
  0x44   :  { %3905 = vmatpush.bf16.msrb.mxu1 %v5785_v5  ;;  %v8306_v29 = vld [vmem:[#allocation6 + $0x3dc] sm:$0xf0] }
  0x45   :  { %362 = vmatpush.msra.mxu2 %v185_v3  ;;  %401 = vmatpush.msra.mxu0 %v196_v4  ;;  %v5688_v31 = vld [vmem:[#allocation6 + $0xc0] sm:$0xf]  ;;  %v6073_v39 = vor.u32 %v8306_v29, %v6072_v28 }
  0x46   :  { %3931 = vmatpush.bf16.msra.mxu3 %v6297_v13  ;;  %v8210_v32 = vld [vmem:[#allocation6 + $0xdc] sm:$0xf0] }
  0x47   :  { %363 = vmatpush.msra.mxu2 %v176_v10  ;;  %402 = vmatpush.msra.mxu0 %v187_v11  ;;  %v6232_v33 = vld [vmem:[#allocation6 + $0x500] sm:$0xf]  ;;  %v5689_v43 = vor.u32 %v8210_v32, %v5688_v31 }
  0x48   :  { %3906 = vmatpush.bf16.msrb.mxu1 %v5753_v16  ;;  %v8346_v34 = vld [vmem:[#allocation6 + $0x51c] sm:$0xf0] }
  0x49   :  { %364 = vmatpush.msra.mxu2 %v167_v14  ;;  %403 = vmatpush.msra.mxu0 %v178_v15  ;;  %v151_v35 = vld [vmem:[#allocation2 + $0x88] sm:$0xff]  ;;  %v6233_v38 = vor.u32 %v8346_v34, %v6232_v33 }
  0x4a   :  { %v6584_v36 = vld [vmem:[#allocation6 + $0x7c0] sm:$0xf]  ;;  %3932 = vmatpush.bf16.msra.mxu3 %v6265_v25 }
  0x4b   :  { %365 = vmatpush.msra.mxu2 %v158_v20  ;;  %404 = vmatpush.msra.mxu0 %v169_v21  ;;  %v8434_v37 = vld [vmem:[#allocation6 + $0x7dc] sm:$0xf0] }
  0x4c   :  { %v6040_v41 = vld [vmem:[#allocation6 + $0x380] sm:$0xf]  ;;  %3907 = vmatpush.bf16.msrb.mxu1 %v5721_v30  ;;  %v6585_v44 = vor.u32 %v8434_v37, %v6584_v36 }
  0x4d   :  { %366 = vmatpush.msra.mxu2 %v149_v23  ;;  %405 = vmatpush.msra.mxu0 %v160_v24  ;;  %v8298_v42 = vld [vmem:[#allocation6 + $0x39c] sm:$0xf0] }
  0x4e   :  { %v6552_v45 = vld [vmem:[#allocation6 + $0x780] sm:$0xf]  ;;  %3933 = vmatpush.bf16.msra.mxu3 %v6233_v38  ;;  %v6041_v51 = vor.u32 %v8298_v42, %v6040_v41 }
  0x4f   :  { %367 = vmatpush.msra.mxu2 %v140_v27  ;;  %406 = vmatpush.msra.mxu0 %v151_v35  ;;  %v5656_v46 = vld [vmem:[#allocation6 + $0x80] sm:$0xf] }
  0x50   :  { %v8202_v47 = vld [vmem:[#allocation6 + $0x9c] sm:$0xf0]  ;;  %5587 = vmatmul.msk.f32.vlgmr.msra.gmra.mxu2 %vm228_vm0, %v9116_v26  ;;  %3908 = vmatpush.bf16.msrb.mxu1 %v5689_v43 }
  0x51   :  { %v8426_v48 = vld [vmem:[#allocation6 + $0x79c] sm:$0xf0]  ;;  %407 = vmatpush.msra.mxu0 %v142_v40  ;;  %3917 = vmatpush.bf16.msrb.mxu2 %v6073_v39  ;;  %v5657_v55 = vor.u32 %v8202_v47, %v5656_v46 }
  0x52   :  { %v6200_v49 = vld [vmem:[#allocation6 + $0x4c0] sm:$0xf]  ;;  %5589 = vmatmul.msk.f32.vlgmr.msra.gmra.mxu0 %vm228_vm0, %v9116_v26  ;;  %v6553_v56 = vor.u32 %v8426_v48, %v6552_v45 }
  0x53   :  { %v8338_v50 = vld [vmem:[#allocation6 + $0x4dc] sm:$0xf0]  ;;  %3943 = vmatpush.bf16.msrb.mxu0 %v6585_v44 }
  0x54   :  { %v6201_v52 = vor.u32 %v8338_v50, %v6200_v49  ;;  %v6008_v53 = vld [vmem:[#allocation6 + $0x340] sm:$0xf]  ;;  %3909 = vmatpush.bf16.msrb.mxu1 %v5657_v55 }
  0x55   :  { %v8290_v54 = vld [vmem:[#allocation6 + $0x35c] sm:$0xf0]  ;;  %3918 = vmatpush.bf16.msrb.mxu2 %v6041_v51 }
  0x56   :  { %v6520_v57 = vld [vmem:[#allocation6 + $0x740] sm:$0xf]  ;;  %3934 = vmatpush.bf16.msra.mxu3 %v6201_v52  ;;  %v6009_v63 = vor.u32 %v8290_v54, %v6008_v53 }
  0x57   :  { %v5624_v58 = vld [vmem:[#allocation6 + $0x40] sm:$0xf]  ;;  %3944 = vmatpush.bf16.msrb.mxu0 %v6553_v56 }
  0x58   :  { %v8194_v59 = vld [vmem:[#allocation6 + $0x5c] sm:$0xf0] }
  0x59   :  { %v8418_v60 = vld [vmem:[#allocation6 + $0x75c] sm:$0xf0]  ;;  %v5625_v4 = vor.u32 %v8194_v59, %v5624_v58  ;;  %3919 = vmatpush.bf16.msrb.mxu2 %v6009_v63 }
  0x5a   :  { %v6168_v61 = vld [vmem:[#allocation6 + $0x480] sm:$0xf]  ;;  %v6521_v5 = vor.u32 %v8418_v60, %v6520_v57 }
  0x5b   :  { %v8330_v62 = vld [vmem:[#allocation6 + $0x49c] sm:$0xf0]  ;;  %3910 = vmatpush.bf16.msrb.mxu1 %v5625_v4 }
  0x5c   :  { %v5976_v0 = vld [vmem:[#allocation6 + $0x300] sm:$0xf]  ;;  %v6169_v1 = vor.u32 %v8330_v62, %v6168_v61  ;;  %3945 = vmatpush.bf16.msrb.mxu0 %v6521_v5 }
  0x5d   :  { %v8282_v2 = vld [vmem:[#allocation6 + $0x31c] sm:$0xf0] }
  0x5e   :  { %v6488_v3 = vld [vmem:[#allocation6 + $0x700] sm:$0xf]  ;;  %3935 = vmatpush.bf16.msra.mxu3 %v6169_v1  ;;  %v5977_v12 = vor.u32 %v8282_v2, %v5976_v0 }
  0x5f   :  { %v8410_v26 = vld [vmem:[#allocation6 + $0x71c] sm:$0xf0] }
  0x60   :  { %v5592_v6 = vld [vmem:[#allocation6] sm:$0xf]  ;;  %v6489_v17 = vor.u32 %v8410_v26, %v6488_v3  ;;  %3920 = vmatpush.bf16.msrb.mxu2 %v5977_v12 }
  0x61   :  { %v8186_v7 = vld [vmem:[#allocation6 + $0x1c] sm:$0xf0] }
  0x62   :  { %v6840_v8 = vld [vmem:[#allocation6 + $0x9c0] sm:$0xf]  ;;  %v5593_v16 = vor.u32 %v8186_v7, %v5592_v6  ;;  %3946 = vmatpush.bf16.msrb.mxu0 %v6489_v17 }
  0x63   :  { %v8498_v9 = vld [vmem:[#allocation6 + $0x9dc] sm:$0xf0] }
  0x64   :  { %v6136_v10 = vld [vmem:[#allocation6 + $0x440] sm:$0xf]  ;;  %v6841_v20 = vor.u32 %v8498_v9, %v6840_v8  ;;  %3911 = vmatpush.bf16.msrb.mxu1 %v5593_v16 }
  0x65   :  { %v8322_v11 = vld [vmem:[#allocation6 + $0x45c] sm:$0xf0] }
  0x66   :  { %v6137_v13 = vor.u32 %v8322_v11, %v6136_v10  ;;  %v5944_v14 = vld [vmem:[#allocation6 + $0x2c0] sm:$0xf] }
  0x67   :  { %v8274_v15 = vld [vmem:[#allocation6 + $0x2dc] sm:$0xf0] }
  0x68   :  { %v6456_v18 = vld [vmem:[#allocation6 + $0x6c0] sm:$0xf]  ;;  %3936 = vmatpush.bf16.msra.mxu3 %v6137_v13  ;;  %v5945_v25 = vor.u32 %v8274_v15, %v5944_v14  ;;  %3956 = vmatpush.bf16.msra.mxu1 %v6841_v20 }
  0x69   :  { %v8402_v19 = vld [vmem:[#allocation6 + $0x6dc] sm:$0xf0] }
  0x6a   :  { %v6808_v21 = vld [vmem:[#allocation6 + $0x980] sm:$0xf]  ;;  %v6457_v33 = vor.u32 %v8402_v19, %v6456_v18  ;;  %3921 = vmatpush.bf16.msrb.mxu2 %v5945_v25 }
  0x6b   :  { %v8490_v22 = vld [vmem:[#allocation6 + $0x99c] sm:$0xf0] }
  0x6c   :  { %v6104_v23 = vld [vmem:[#allocation6 + $0x400] sm:$0xf]  ;;  %v6809_v35 = vor.u32 %v8490_v22, %v6808_v21  ;;  %3947 = vmatpush.bf16.msrb.mxu0 %v6457_v33 }
  0x6d   :  { %v8314_v24 = vld [vmem:[#allocation6 + $0x41c] sm:$0xf0] }
  0x6e   :  { %v6105_v27 = vor.u32 %v8314_v24, %v6104_v23  ;;  %v7352_v28 = vld [vmem:[#allocation6 + $0xdc0] sm:$0xf]  ;;  %3957 = vmatpush.bf16.msra.mxu1 %v6809_v35 }
  0x6f   :  { %v8626_v29 = vld [vmem:[#allocation6 + $0xddc] sm:$0xf0] }
  0x70   :  { %v5912_v30 = vld [vmem:[#allocation6 + $0x280] sm:$0xf]  ;;  %v7353_v32 = vor.u32 %v8626_v29, %v7352_v28  ;;  %3937 = vmatpush.bf16.msra.mxu3 %v6105_v27 }
  0x71   :  { %v8266_v31 = vld [vmem:[#allocation6 + $0x29c] sm:$0xf0] }
  0x72   :  { %v6424_v34 = vld [vmem:[#allocation6 + $0x680] sm:$0xf]  ;;  %v5913_v39 = vor.u32 %v8266_v31, %v5912_v30 }
  0x73   :  { %v8394_v36 = vld [vmem:[#allocation6 + $0x69c] sm:$0xf0] }
  0x74   :  { %v6776_v37 = vld [vmem:[#allocation6 + $0x940] sm:$0xf]  ;;  %3982 = vmatpush.bf16.msrb.mxu3 %v7353_v32  ;;  %v6425_v42 = vor.u32 %v8394_v36, %v6424_v34  ;;  %3922 = vmatpush.bf16.msrb.mxu2 %v5913_v39 }
  0x75   :  { %v8482_v38 = vld [vmem:[#allocation6 + $0x95c] sm:$0xf0] }
  0x76   :  { %v5880_v40 = vld [vmem:[#allocation6 + $0x240] sm:$0xf]  ;;  %v6777_v44 = vor.u32 %v8482_v38, %v6776_v37  ;;  %3948 = vmatpush.bf16.msrb.mxu0 %v6425_v42 }
  0x77   :  { %v8258_v41 = vld [vmem:[#allocation6 + $0x25c] sm:$0xf0] }
  0x78   :  { %v6392_v43 = vld [vmem:[#allocation6 + $0x640] sm:$0xf]  ;;  %v5881_v48 = vor.u32 %v8258_v41, %v5880_v40  ;;  %3958 = vmatpush.bf16.msra.mxu1 %v6777_v44 }
  0x79   :  { %v8386_v45 = vld [vmem:[#allocation6 + $0x65c] sm:$0xf0] }
  0x7a   :  { %v6744_v46 = vld [vmem:[#allocation6 + $0x900] sm:$0xf]  ;;  %v6393_v51 = vor.u32 %v8386_v45, %v6392_v43  ;;  %3923 = vmatpush.bf16.msrb.mxu2 %v5881_v48 }
  0x7b   :  { %v8474_v47 = vld [vmem:[#allocation6 + $0x91c] sm:$0xf0] }
  0x7c   :  { %v5848_v49 = vld [vmem:[#allocation6 + $0x200] sm:$0xf]  ;;  %v6745_v55 = vor.u32 %v8474_v47, %v6744_v46  ;;  %3949 = vmatpush.bf16.msrb.mxu0 %v6393_v51 }
  0x7d   :  { %v8250_v50 = vld [vmem:[#allocation6 + $0x21c] sm:$0xf0] }
  0x7e   :  { %v6360_v52 = vld [vmem:[#allocation6 + $0x600] sm:$0xf]  ;;  %v5849_v59 = vor.u32 %v8250_v50, %v5848_v49  ;;  %3959 = vmatpush.bf16.msra.mxu1 %v6745_v55 }
  0x7f   :  { %v7096_v53 = vld [vmem:[#allocation6 + $0xbc0] sm:$0xf] }
  0x80   :  { %v8562_v54 = vld [vmem:[#allocation6 + $0xbdc] sm:$0xf0]  ;;  %3924 = vmatpush.bf16.msrb.mxu2 %v5849_v59 }
  0x81   :  { %v8378_v56 = vld [vmem:[#allocation6 + $0x61c] sm:$0xf0]  ;;  %v7097_v62 = vor.u32 %v8562_v54, %v7096_v53 }
  0x82   :  { %v6712_v57 = vld [vmem:[#allocation6 + $0x8c0] sm:$0xf]  ;;  %v6361_v63 = vor.u32 %v8378_v56, %v6360_v52 }
  0x83   :  { %v8466_v58 = vld [vmem:[#allocation6 + $0x8dc] sm:$0xf0] }
  0x84   :  { %v7608_v60 = vld [vmem:[#allocation6 + $0xfc0] sm:$0xf]  ;;  %v6713_v2 = vor.u32 %v8466_v58, %v6712_v57  ;;  %3969 = vmatpush.bf16.msra.mxu2 %v7097_v62  ;;  %3950 = vmatpush.bf16.msrb.mxu0 %v6361_v63 }
  0x85   :  { %v8690_v61 = vld [vmem:[#allocation6 + $0xfdc] sm:$0xf0] }
  0x86   :  { %v7064_v0 = vld [vmem:[#allocation6 + $0xb80] sm:$0xf]  ;;  %v7609_v3 = vor.u32 %v8690_v61, %v7608_v60  ;;  %3960 = vmatpush.bf16.msra.mxu1 %v6713_v2 }
  0x87   :  { %v8554_v1 = vld [vmem:[#allocation6 + $0xb9c] sm:$0xf0] }
  0x88   :  { %v6680_v26 = vld [vmem:[#allocation6 + $0x880] sm:$0xf]  ;;  %v7065_v7 = vor.u32 %v8554_v1, %v7064_v0  ;;  %3995 = vmatpush.bf16.msra.mxu0 %v7609_v3 }
  0x89   :  { %v8458_v4 = vld [vmem:[#allocation6 + $0x89c] sm:$0xf0] }
  0x8a   :  { %v7576_v5 = vld [vmem:[#allocation6 + $0xf80] sm:$0xf]  ;;  %v6681_v10 = vor.u32 %v8458_v4, %v6680_v26  ;;  %3970 = vmatpush.bf16.msra.mxu2 %v7065_v7 }
  0x8b   :  { %v8682_v6 = vld [vmem:[#allocation6 + $0xf9c] sm:$0xf0] }
  0x8c   :  { %v7032_v8 = vld [vmem:[#allocation6 + $0xb40] sm:$0xf]  ;;  %v7577_v11 = vor.u32 %v8682_v6, %v7576_v5  ;;  %3961 = vmatpush.bf16.msra.mxu1 %v6681_v10  ;;  %v9136_v6 = vld [vmem:[#allocation4] sm:$0xff] }
  0x8d   :  { %v8546_v9 = vld [vmem:[#allocation6 + $0xb5c] sm:$0xf0]  ;;  %v210_v10 = vperm.slane %v9136_v6, 0 }
  0x8e   :  { %v7544_v12 = vld [vmem:[#allocation6 + $0xf40] sm:$0xf]  ;;  %v7033_v14 = vor.u32 %v8546_v9, %v7032_v8  ;;  %3996 = vmatpush.bf16.msra.mxu0 %v7577_v11 }
  0x8f   :  { %v8674_v13 = vld [vmem:[#allocation6 + $0xf5c] sm:$0xf0] }
  0x90   :  { %v7000_v15 = vld [vmem:[#allocation6 + $0xb00] sm:$0xf]  ;;  %v7545_v17 = vor.u32 %v8674_v13, %v7544_v12  ;;  %3971 = vmatpush.bf16.msra.mxu2 %v7033_v14 }
  0x91   :  { %v8538_v16 = vld [vmem:[#allocation6 + $0xb1c] sm:$0xf0] }
  0x92   :  { %v7512_v18 = vld [vmem:[#allocation6 + $0xf00] sm:$0xf]  ;;  %v7001_v20 = vor.u32 %v8538_v16, %v7000_v15  ;;  %3997 = vmatpush.bf16.msra.mxu0 %v7545_v17  ;;  %v211_v16 = vperm.slane %v9136_v6, 1  ;;  %v213_v17 = vperm.slane %v9136_v6, 3 }
  0x93   :  { %v8666_v19 = vld [vmem:[#allocation6 + $0xf1c] sm:$0xf0] }
  0x94   :  { %v7513_v21 = vor.u32 %v8666_v19, %v7512_v18  ;;  %3972 = vmatpush.bf16.msra.mxu2 %v7001_v20  ;;  %v6968_v22 = vld [vmem:[#allocation6 + $0xac0] sm:$0xf] }
  0x95   :  { %v8530_v23 = vld [vmem:[#allocation6 + $0xadc] sm:$0xf0] }
  0x96   :  { %3998 = vmatpush.bf16.msra.mxu0 %v7513_v21  ;;  %v7480_v24 = vld [vmem:[#allocation6 + $0xec0] sm:$0xf]  ;;  %v6969_v25 = vor.u32 %v8530_v23, %v6968_v22 }
  0x97   :  { %v8658_v27 = vld [vmem:[#allocation6 + $0xedc] sm:$0xf0] }
  0x98   :  { %v7481_v28 = vor.u32 %v8658_v27, %v7480_v24  ;;  %v6648_v29 = vld [vmem:[#allocation6 + $0x840] sm:$0xf]  ;;  %3973 = vmatpush.bf16.msra.mxu2 %v6969_v25  ;;  %v8238_v24 = vld [vmem:[#allocation6 + $0x1c4] sm:$0xf] }
  0x99   :  { %v8450_v30 = vld [vmem:[#allocation6 + $0x85c] sm:$0xf0] }
  0x9a   :  { %v6649_v31 = vor.u32 %v8450_v30, %v6648_v29  ;;  %v7320_v32 = vld [vmem:[#allocation6 + $0xd80] sm:$0xf]  ;;  %3999 = vmatpush.bf16.msra.mxu0 %v7481_v28  ;;  %v5818_v29 = vld [vmem:[#allocation6 + $0x1e0] sm:$0xf0] }
  0x9b   :  { %v8618_v33 = vld [vmem:[#allocation6 + $0xd9c] sm:$0xf0]  ;;  %v8366_v30 = vld [vmem:[#allocation6 + $0x5c4] sm:$0xf] }
  0x9c   :  { %v7321_v34 = vor.u32 %v8618_v33, %v7320_v32  ;;  %v6936_v35 = vld [vmem:[#allocation6 + $0xa80] sm:$0xf]  ;;  %3962 = vmatpush.bf16.msra.mxu1 %v6649_v31  ;;  %v6330_v31 = vld [vmem:[#allocation6 + $0x5e0] sm:$0xf0] }
  0x9d   :  { %v8522_v36 = vld [vmem:[#allocation6 + $0xa9c] sm:$0xf0] }
  0x9e   :  { %v7448_v37 = vld [vmem:[#allocation6 + $0xe80] sm:$0xf]  ;;  %v6937_v38 = vor.u32 %v8522_v36, %v6936_v35  ;;  %3983 = vmatpush.bf16.msrb.mxu3 %v7321_v34  ;;  %v5821_v36 = vor.u32 %v8238_v24, %v5818_v29  ;;  %v8334_v24 = vld [vmem:[#allocation6 + $0x4c4] sm:$0xf] }
  0x9f   :  { %v8650_v39 = vld [vmem:[#allocation6 + $0xe9c] sm:$0xf0] }
  0xa0   :  { %v7449_v40 = vor.u32 %v8650_v39, %v7448_v37  ;;  %v6616_v41 = vld [vmem:[#allocation6 + $0x800] sm:$0xf]  ;;  %3974 = vmatpush.bf16.msra.mxu2 %v6937_v38  ;;  %v6333_v37 = vor.u32 %v8366_v30, %v6330_v31  ;;  %v8230_v38 = vld [vmem:[#allocation6 + $0x184] sm:$0xf] }
  0xa1   :  { %v8442_v42 = vld [vmem:[#allocation6 + $0x81c] sm:$0xf0] }
  0xa2   :  { %v6617_v43 = vor.u32 %v8442_v42, %v6616_v41  ;;  %v7288_v44 = vld [vmem:[#allocation6 + $0xd40] sm:$0xf]  ;;  %4000 = vmatpush.bf16.msra.mxu0 %v7449_v40  ;;  %v5786_v42 = vld [vmem:[#allocation6 + $0x1a0] sm:$0xf0] }
  0xa3   :  { %v8610_v45 = vld [vmem:[#allocation6 + $0xd5c] sm:$0xf0] }
  0xa4   :  { %v7289_v46 = vor.u32 %v8610_v45, %v7288_v44  ;;  %v6904_v47 = vld [vmem:[#allocation6 + $0xa40] sm:$0xf]  ;;  %3963 = vmatpush.bf16.msra.mxu1 %v6617_v43  ;;  %v8358_v43 = vld [vmem:[#allocation6 + $0x584] sm:$0xf] }
  0xa5   :  { %v8514_v48 = vld [vmem:[#allocation6 + $0xa5c] sm:$0xf0]  ;;  %v6298_v44 = vld [vmem:[#allocation6 + $0x5a0] sm:$0xf0] }
  0xa6   :  { %v7416_v49 = vld [vmem:[#allocation6 + $0xe40] sm:$0xf]  ;;  %3984 = vmatpush.bf16.msrb.mxu3 %v7289_v46  ;;  %v6905_v51 = vor.u32 %v8514_v48, %v6904_v47  ;;  %v215_v47 = vperm.slane %v9136_v6, 5  ;;  %v5789_v48 = vor.u32 %v8230_v38, %v5786_v42  ;;  %v6042_v38 = vld [vmem:[#allocation6 + $0x3a0] sm:$0xf0] }
  0xa7   :  { %v8642_v50 = vld [vmem:[#allocation6 + $0xe5c] sm:$0xf0] }
  0xa8   :  { %v7417_v52 = vor.u32 %v8642_v50, %v7416_v49  ;;  %v7256_v53 = vld [vmem:[#allocation6 + $0xd00] sm:$0xf]  ;;  %3975 = vmatpush.bf16.msra.mxu2 %v6905_v51  ;;  %v6301_v49 = vor.u32 %v8358_v43, %v6298_v44  ;;  %v8222_v50 = vld [vmem:[#allocation6 + $0x144] sm:$0xf] }
  0xa9   :  { %v8602_v54 = vld [vmem:[#allocation6 + $0xd1c] sm:$0xf0]  ;;  %v5754_v51 = vld [vmem:[#allocation6 + $0x160] sm:$0xf0] }
  0xaa   :  { %4001 = vmatpush.bf16.msra.mxu0 %v7417_v52  ;;  %v7257_v55 = vor.u32 %v8602_v54, %v7256_v53  ;;  %v6872_v56 = vld [vmem:[#allocation6 + $0xa00] sm:$0xf]  ;;  %v8350_v54 = vld [vmem:[#allocation6 + $0x544] sm:$0xf] }
  0xab   :  { %v8506_v57 = vld [vmem:[#allocation6 + $0xa1c] sm:$0xf0]  ;;  %v5658_v43 = vld [vmem:[#allocation6 + $0xa0] sm:$0xf0] }
  0xac   :  { %v6873_v58 = vor.u32 %v8506_v57, %v6872_v56  ;;  %v7384_v59 = vld [vmem:[#allocation6 + $0xe00] sm:$0xf]  ;;  %3985 = vmatpush.bf16.msrb.mxu3 %v7257_v55  ;;  %v249_v11 = vpop.f32.mrf.mxu0  ;;  %v6266_v55 = vld [vmem:[#allocation6 + $0x560] sm:$0xf0]  ;;  %v214_v56 = vperm.slane %v9136_v6, 4 }
  0xad   :  { %v8634_v60 = vld [vmem:[#allocation6 + $0xe1c] sm:$0xf0]  ;;  %v250_v12 = vadd.f32 %v249_v11, %v210_v10  ;;  %v8326_v44 = vld [vmem:[#allocation6 + $0x484] sm:$0xf] }
  0xae   :  { %v7385_v61 = vor.u32 %v8634_v60, %v7384_v59  ;;  %v7224_v62 = vld [vmem:[#allocation6 + $0xcc0] sm:$0xf]  ;;  %3976 = vmatpush.bf16.msra.mxu2 %v6873_v58  ;;  %v212_v60 = vperm.slane %v9136_v6, 2 }
  0xaf   :  { %v8594_v63 = vld [vmem:[#allocation6 + $0xcdc] sm:$0xf0]  ;;  %v412_v15 = vmax.f32 %v250_v12, 0.0 }
  0xb0   :  { %4002 = vmatpush.bf16.msra.mxu0 %v7385_v61  ;;  %v7225_v0 = vor.u32 %v8594_v63, %v7224_v62  ;;  %v7192_v1 = vld [vmem:[#allocation6 + $0xc80] sm:$0xf]  ;;  %v5757_v61 = vor.u32 %v8222_v50, %v5754_v51  ;;  %v6269_v62 = vor.u32 %v8350_v54, %v6266_v55  ;;  %v217_v63 = vperm.slane %v9136_v6, 7  ;;  %v8430_v50 = vld [vmem:[#allocation6 + $0x7c4] sm:$0xf] }
  0xb1   :  { %v8586_v2 = vld [vmem:[#allocation6 + $0xc9c] sm:$0xf0]  ;;  %v9141_v19 = vpack.c.bf16 %v412_v15, %v412_v15  ;;  %v6586_v51 = vld [vmem:[#allocation6 + $0x7e0] sm:$0xf0] }
  0xb2   :  { %3986 = vmatpush.bf16.msrb.mxu3 %v7225_v0  ;;  %v7193_v3 = vor.u32 %v8586_v2, %v7192_v1  ;;  %v7160_v26 = vld [vmem:[#allocation6 + $0xc40] sm:$0xf]  ;;  %v8214_v0 = vld [vmem:[#allocation6 + $0x104] sm:$0xf] }
  0xb3   :  { %v8578_v4 = vld [vmem:[#allocation6 + $0xc5c] sm:$0xf0]  ;;  %v269_v22 = vpop.f32.mrf.mxu2  ;;  %v309_v23 = vpop.f32.mrf.mxu3  ;;  %3912 = vmatmul.bf16.vlgmr.msrb.gmra.mxu1 %v9141_v19  ;;  %v6010_v54 = vld [vmem:[#allocation6 + $0x360] sm:$0xf0] }
  0xb4   :  { %v7161_v5 = vor.u32 %v8578_v4, %v7160_v26  ;;  %v7128_v7 = vld [vmem:[#allocation6 + $0xc00] sm:$0xf]  ;;  %v270_v25 = vadd.f32 %v269_v22, %v211_v16  ;;  %v310_v27 = vadd.f32 %v309_v23, %v213_v17  ;;  %v8342_v26 = vld [vmem:[#allocation6 + $0x504] sm:$0xf] }
  0xb5   :  { %v8570_v8 = vld [vmem:[#allocation6 + $0xc1c] sm:$0xf0]  ;;  %v6234_v4 = vld [vmem:[#allocation6 + $0x520] sm:$0xf0] }
  0xb6   :  { %3987 = vmatpush.bf16.msrb.mxu3 %v7193_v3  ;;  %v7129_v9 = vor.u32 %v8570_v8, %v7128_v7  ;;  %v7864_v13 = vld [vmem:[#allocation6 + $0x11c0] sm:$0xf]  ;;  %v413_v34 = vmax.f32 %v270_v25, 0.0  ;;  %v415_v35 = vmax.f32 %v310_v27, 0.0  ;;  %v5722_v3 = vld [vmem:[#allocation6 + $0x120] sm:$0xf0] }
  0xb7   :  { %v8754_v14 = vld [vmem:[#allocation6 + $0x11dc] sm:$0xf0]  ;;  %v349_v52 = vpop.f32.mrf.mxu1  ;;  %v8206_v22 = vld [vmem:[#allocation6 + $0xc4] sm:$0xf] }
  0xb8   :  { %v7865_v18 = vor.u32 %v8754_v14, %v7864_v13  ;;  %v7832_v20 = vld [vmem:[#allocation6 + $0x1180] sm:$0xf]  ;;  %v9144_v39 = vpack.c.bf16 %v413_v34, %v413_v34  ;;  %v9146_v40 = vpack.c.bf16 %v415_v35, %v415_v35  ;;  %v350_v59 = vadd.f32 %v349_v52, %v215_v47  ;;  %v5690_v23 = vld [vmem:[#allocation6 + $0xe0] sm:$0xf0] }
  0xb9   :  { %v8746_v21 = vld [vmem:[#allocation6 + $0x119c] sm:$0xf0]  ;;  %v5725_v13 = vor.u32 %v8214_v0, %v5722_v3  ;;  %v6237_v14 = vor.u32 %v8342_v26, %v6234_v4  ;;  %v6202_v25 = vld [vmem:[#allocation6 + $0x4e0] sm:$0xf0]  ;;  %v5693_v35 = vor.u32 %v8206_v22, %v5690_v23 }
  0xba   :  { %3988 = vmatpush.bf16.msrb.mxu3 %v7161_v5  ;;  %4008 = vmatpush.bf16.msrb.mxu1 %v7865_v18  ;;  %v7833_v28 = vor.u32 %v8746_v21, %v7832_v20  ;;  %v7800_v32 = vld [vmem:[#allocation6 + $0x1140] sm:$0xf]  ;;  %v8302_v20 = vld [vmem:[#allocation6 + $0x3c4] sm:$0xf] }
  0xbb   :  { %v8738_v33 = vld [vmem:[#allocation6 + $0x115c] sm:$0xf0]  ;;  %3925 = vmatmul.bf16.vlgmr.msrb.gmra.mxu2 %v9144_v39  ;;  %3951 = vmatmul.bf16.vlgmr.msrb.gmra.mxu0 %v9146_v40  ;;  %v6074_v21 = vld [vmem:[#allocation6 + $0x3e0] sm:$0xf0] }
  0xbc   :  { %v7801_v41 = vor.u32 %v8738_v33, %v7800_v32  ;;  %v7768_v45 = vld [vmem:[#allocation6 + $0x1100] sm:$0xf]  ;;  %4021 = vmatpush.bf16.msrb.mxu2 %v5821_v36  ;;  %4047 = vmatpush.bf16.msrb.mxu0 %v6333_v37  ;;  %v6077_v32 = vor.u32 %v8302_v20, %v6074_v21  ;;  %v6205_v36 = vor.u32 %v8334_v24, %v6202_v25  ;;  %v8294_v37 = vld [vmem:[#allocation6 + $0x384] sm:$0xf] }
  0xbd   :  { %v8730_v46 = vld [vmem:[#allocation6 + $0x111c] sm:$0xf0]  ;;  %v8190_v55 = vld [vmem:[#allocation6 + $0x44] sm:$0xf] }
  0xbe   :  { %3989 = vmatpush.bf16.msrb.mxu3 %v7129_v9  ;;  %4009 = vmatpush.bf16.msrb.mxu1 %v7833_v28  ;;  %v7769_v53 = vor.u32 %v8730_v46, %v7768_v45  ;;  %v7736_v57 = vld [vmem:[#allocation6 + $0x10c0] sm:$0xf]  ;;  %v417_v9 = vmax.f32 %v350_v59, 0.0  ;;  %v6170_v45 = vld [vmem:[#allocation6 + $0x4a0] sm:$0xf0] }
  0xbf   :  { %v8722_v58 = vld [vmem:[#allocation6 + $0x10dc] sm:$0xf0]  ;;  %v329_v1 = vpop.f32.mrf.mxu0  ;;  %v8318_v59 = vld [vmem:[#allocation6 + $0x444] sm:$0xf] }
  0xc0   :  { %4022 = vmatpush.bf16.msrb.mxu2 %v5789_v48  ;;  %4048 = vmatpush.bf16.msrb.mxu0 %v6301_v49  ;;  %v7737_v2 = vor.u32 %v8722_v58, %v7736_v57  ;;  %v330_v5 = vadd.f32 %v329_v1, %v214_v56  ;;  %v7704_v7 = vld [vmem:[#allocation6 + $0x1080] sm:$0xf]  ;;  %v9156_v28 = vpack.c.bf16 %v417_v9, %v417_v9  ;;  %v8286_v49 = vld [vmem:[#allocation6 + $0x344] sm:$0xf]  ;;  %v8843_v56 = vld [vmem:[#allocation4 + $0x8] ss:$0 sm:$0xff] }
  0xc1   :  { %v8714_v8 = vld [vmem:[#allocation6 + $0x109c] sm:$0xf0]  ;;  %v6045_v48 = vor.u32 %v8294_v37, %v6042_v38  ;;  %v5626_v58 = vld [vmem:[#allocation6 + $0x60] sm:$0xf0]  ;;  %v6013_v0 = vor.u32 %v8286_v49, %v6010_v54 }
  0xc2   :  { %4010 = vmatpush.bf16.msrb.mxu1 %v7801_v41  ;;  %v416_v10 = vmax.f32 %v330_v5, 0.0  ;;  %v7705_v17 = vor.u32 %v8714_v8, %v7704_v7  ;;  %v7672_v30 = vld [vmem:[#allocation6 + $0x1040] sm:$0xf]  ;;  %v8198_v41 = vld [vmem:[#allocation6 + $0x84] sm:$0xf]  ;;  %v5629_v4 = vor.u32 %v8190_v55, %v5626_v58 }
  0xc3   :  { %v289_v11 = vpop.f32.mrf.mxu2  ;;  %v389_v12 = vpop.f32.mrf.mxu3  ;;  %v8706_v31 = vld [vmem:[#allocation6 + $0x105c] sm:$0xf0]  ;;  %v5661_v52 = vor.u32 %v8198_v41, %v5658_v43  ;;  %v5978_v1 = vld [vmem:[#allocation6 + $0x320] sm:$0xf0] }
  0xc4   :  { %4023 = vmatpush.bf16.msrb.mxu2 %v5757_v61  ;;  %4049 = vmatpush.bf16.msrb.mxu0 %v6269_v62  ;;  %v290_v15 = vadd.f32 %v289_v11, %v212_v60  ;;  %v390_v16 = vadd.f32 %v389_v12, %v217_v63  ;;  %v9154_v18 = vpack.c.bf16 %v416_v10, %v416_v10  ;;  %v7640_v46 = vld [vmem:[#allocation6 + $0x1000] sm:$0xf]  ;;  %v6138_v60 = vld [vmem:[#allocation6 + $0x460] sm:$0xf0]  ;;  %v216_v62 = vperm.slane %v9136_v6, 6 }
  0xc5   :  { %v7673_v42 = vor.u32 %v8706_v31, %v7672_v30  ;;  %v8698_v47 = vld [vmem:[#allocation6 + $0x101c] sm:$0xf0]  ;;  %v6589_v61 = vor.u32 %v8430_v50, %v6586_v51  ;;  %v8278_v63 = vld [vmem:[#allocation6 + $0x304] sm:$0xf]  ;;  %v6141_v5 = vor.u32 %v8318_v59, %v6138_v60 }
  0xc6   :  { %4011 = vmatpush.bf16.msrb.mxu1 %v7769_v53  ;;  %v414_v27 = vmax.f32 %v290_v15, 0.0  ;;  %v419_v29 = vmax.f32 %v390_v16, 0.0  ;;  %v6173_v53 = vor.u32 %v8326_v44, %v6170_v45  ;;  %v7641_v57 = vor.u32 %v8698_v47, %v7640_v46  ;;  %v6554_v3 = vld [vmem:[#allocation6 + $0x7a0] sm:$0xf0] }
  0xc7   :  { %3964 = vmatmul.bf16.vlgmr.msra.gmra.mxu1 %v9154_v18  ;;  %v8182_v7 = vld [vmem:[#allocation6 + $0x4] sm:$0xf]  ;;  %v5981_v20 = vor.u32 %v8278_v63, %v5978_v1 }
  0xc8   :  { %4024 = vmatpush.bf16.msrb.mxu2 %v5725_v13  ;;  %4050 = vmatpush.bf16.msrb.mxu0 %v6237_v14  ;;  %v9159_v33 = vpack.c.bf16 %v414_v27, %v414_v27  ;;  %v9161_v34 = vpack.c.bf16 %v419_v29, %v419_v29  ;;  %v5594_v8 = vld [vmem:[#allocation6 + $0x20] sm:$0xf0] }
  0xc9   :  { %v8310_v9 = vld [vmem:[#allocation6 + $0x404] sm:$0xf]  ;;  %v5597_v21 = vor.u32 %v8182_v7, %v5594_v8 }
  0xca   :  { %4012 = vmatpush.bf16.msrb.mxu1 %v7737_v2  ;;  %3938 = vmatmul.bf16.vlgmr.msra.gmra.mxu3 %v9159_v33  ;;  %v8422_v2 = vld [vmem:[#allocation6 + $0x784] sm:$0xf] }
  0xcb   :  { %3977 = vmatmul.bf16.vlgmr.msra.gmra.mxu2 %v9156_v28  ;;  %4034 = vmatpush.bf16.msra.mxu3 %v6077_v32  ;;  %v6106_v11 = vld [vmem:[#allocation6 + $0x420] sm:$0xf0]  ;;  %v6557_v6 = vor.u32 %v8422_v2, %v6554_v3 }
  0xcc   :  { %4003 = vmatmul.bf16.vlgmr.msra.gmra.mxu0 %v9161_v34  ;;  %4025 = vmatpush.bf16.msrb.mxu2 %v5693_v35  ;;  %v8494_v12 = vld [vmem:[#allocation6 + $0x9c4] sm:$0xf]  ;;  %v6109_v25 = vor.u32 %v8310_v9, %v6106_v11 }
  0xcd   :  { %4051 = vmatpush.bf16.msrb.mxu0 %v6205_v36  ;;  %v6842_v13 = vld [vmem:[#allocation6 + $0x9e0] sm:$0xf0] }
  0xce   :  { %4013 = vmatpush.bf16.msrb.mxu1 %v7705_v17  ;;  %v8622_v14 = vld [vmem:[#allocation6 + $0xdc4] sm:$0xf]  ;;  %v6845_v31 = vor.u32 %v8494_v12, %v6842_v13 }
  0xcf   :  { %4035 = vmatpush.bf16.msra.mxu3 %v6045_v48  ;;  %v409_v26 = vpop.f32.mrf.mxu0  ;;  %v7354_v15 = vld [vmem:[#allocation6 + $0xde0] sm:$0xf0] }
  0xd0   :  { %4026 = vmatpush.bf16.msrb.mxu2 %v5661_v52  ;;  %v410_v10 = vadd.f32 %v8843_v56, %v409_v26  ;;  %v8414_v22 = vld [vmem:[#allocation6 + $0x744] sm:$0xf]  ;;  %v7357_v32 = vor.u32 %v8622_v14, %v7354_v15 }
  0xd1   :  { %4052 = vmatpush.bf16.msrb.mxu0 %v6173_v53  ;;  %v6522_v23 = vld [vmem:[#allocation6 + $0x760] sm:$0xf0] }
  0xd2   :  { %4014 = vmatpush.bf16.msrb.mxu1 %v7673_v42  ;;  %v420_v16 = vmax.f32 %v410_v10, 0.0  ;;  %v8270_v29 = vld [vmem:[#allocation6 + $0x2c4] sm:$0xf]  ;;  %v6525_v38 = vor.u32 %v8414_v22, %v6522_v23 }
  0xd3   :  { %4036 = vmatpush.bf16.msra.mxu3 %v6013_v0  ;;  %v369_v17 = vpop.f32.mrf.mxu2  ;;  %v5946_v30 = vld [vmem:[#allocation6 + $0x2e0] sm:$0xf0] }
  0xd4   :  { %v370_v24 = vadd.f32 %v369_v17, %v216_v62  ;;  %4027 = vmatpush.bf16.msrb.mxu2 %v5629_v4  ;;  %v9167_v27 = vpack.c.bf16 %v420_v16, %v420_v16  ;;  %v8486_v35 = vld [vmem:[#allocation6 + $0x984] sm:$0xf]  ;;  %v5949_v43 = vor.u32 %v8270_v29, %v5946_v30 }
  0xd5   :  { %4053 = vmatpush.bf16.msrb.mxu0 %v6141_v5  ;;  %v6810_v36 = vld [vmem:[#allocation6 + $0x9a0] sm:$0xf0] }
  0xd6   :  { %4015 = vmatpush.bf16.msrb.mxu1 %v7641_v57  ;;  %v418_v37 = vmax.f32 %v370_v24, 0.0  ;;  %v8614_v41 = vld [vmem:[#allocation6 + $0xd84] sm:$0xf]  ;;  %v6813_v49 = vor.u32 %v8486_v35, %v6810_v36 }
  0xd7   :  { %v7322_v42 = vld [vmem:[#allocation6 + $0xda0] sm:$0xf0]  ;;  %4037 = vmatpush.bf16.msra.mxu3 %v5981_v20 }
  0xd8   :  { %v8406_v44 = vld [vmem:[#allocation6 + $0x704] sm:$0xf]  ;;  %v9170_v46 = vpack.c.bf16 %v418_v37, %v418_v37  ;;  %4028 = vmatpush.bf16.msrb.mxu2 %v5597_v21  ;;  %v7325_v50 = vor.u32 %v8614_v41, %v7322_v42 }
  0xd9   :  { %v6490_v45 = vld [vmem:[#allocation6 + $0x720] sm:$0xf0]  ;;  %4016 = vmatmul.bf16.vlgmr.msrb.gmra.mxu1 %v9167_v27  ;;  %4054 = vmatpush.bf16.msrb.mxu0 %v6109_v25 }
  0xda   :  { %4060 = vmatpush.bf16.msra.mxu1 %v6589_v61  ;;  %v8262_v47 = vld [vmem:[#allocation6 + $0x284] sm:$0xf]  ;;  %3990 = vmatmul.bf16.vlgmr.msrb.gmra.mxu3 %v9170_v46  ;;  %v6493_v52 = vor.u32 %v8406_v44, %v6490_v45 }
  0xdb   :  { %v5914_v48 = vld [vmem:[#allocation6 + $0x2a0] sm:$0xf0]  ;;  %4038 = vmatpush.bf16.msra.mxu3 %v5949_v43  ;;  %4029 = vmatmul.bf16.vlgmr.msrb.gmra.mxu2 %v9141_v19 }
  0xdc   :  { %4073 = vmatpush.bf16.msra.mxu2 %v6845_v31  ;;  %v8478_v51 = vld [vmem:[#allocation6 + $0x944] sm:$0xf]  ;;  %v5917_v56 = vor.u32 %v8262_v47, %v5914_v48  ;;  %4055 = vmatmul.bf16.vlgmr.msrb.gmra.mxu0 %v9159_v33 }
  0xdd   :  { %4099 = vmatpush.bf16.msra.mxu0 %v7357_v32  ;;  %v6778_v53 = vld [vmem:[#allocation6 + $0x960] sm:$0xf0] }
  0xde   :  { %4061 = vmatpush.bf16.msra.mxu1 %v6557_v6  ;;  %v8606_v54 = vld [vmem:[#allocation6 + $0xd44] sm:$0xf]  ;;  %v6781_v61 = vor.u32 %v8478_v51, %v6778_v53 }
  0xdf   :  { %v7290_v55 = vld [vmem:[#allocation6 + $0xd60] sm:$0xf0]  ;;  %4039 = vmatpush.bf16.msra.mxu3 %v5917_v56 }
  0xe0   :  { %v8398_v57 = vld [vmem:[#allocation6 + $0x6c4] sm:$0xf]  ;;  %4074 = vmatpush.bf16.msra.mxu2 %v6813_v49  ;;  %v7293_v62 = vor.u32 %v8606_v54, %v7290_v55 }
  0xe1   :  { %v6458_v58 = vld [vmem:[#allocation6 + $0x6e0] sm:$0xf0]  ;;  %4100 = vmatpush.bf16.msra.mxu0 %v7325_v50 }
  0xe2   :  { %4062 = vmatpush.bf16.msra.mxu1 %v6525_v38  ;;  %v8254_v59 = vld [vmem:[#allocation6 + $0x244] sm:$0xf]  ;;  %v6461_v0 = vor.u32 %v8398_v57, %v6458_v58 }
  0xe3   :  { %v5882_v60 = vld [vmem:[#allocation6 + $0x260] sm:$0xf0] }
  0xe4   :  { %v8470_v63 = vld [vmem:[#allocation6 + $0x904] sm:$0xf]  ;;  %v5885_v26 = vor.u32 %v8254_v59, %v5882_v60  ;;  %4075 = vmatpush.bf16.msra.mxu2 %v6781_v61 }
  0xe5   :  { %v6746_v1 = vld [vmem:[#allocation6 + $0x920] sm:$0xf0]  ;;  %4101 = vmatpush.bf16.msra.mxu0 %v7293_v62 }
  0xe6   :  { %4063 = vmatpush.bf16.msra.mxu1 %v6493_v52  ;;  %v8598_v2 = vld [vmem:[#allocation6 + $0xd04] sm:$0xf]  ;;  %v6749_v9 = vor.u32 %v8470_v63, %v6746_v1  ;;  %4040 = vmatpush.bf16.msra.mxu3 %v5885_v26 }
  0xe7   :  { %v7258_v3 = vld [vmem:[#allocation6 + $0xd20] sm:$0xf0] }
  0xe8   :  { %v8390_v4 = vld [vmem:[#allocation6 + $0x684] sm:$0xf]  ;;  %v7261_v10 = vor.u32 %v8598_v2, %v7258_v3  ;;  %4076 = vmatpush.bf16.msra.mxu2 %v6749_v9 }
  0xe9   :  { %v6426_v5 = vld [vmem:[#allocation6 + $0x6a0] sm:$0xf0] }
  0xea   :  { %v8246_v7 = vld [vmem:[#allocation6 + $0x204] sm:$0xf]  ;;  %4064 = vmatpush.bf16.msra.mxu1 %v6461_v0  ;;  %v6429_v6 = vor.u32 %v8390_v4, %v6426_v5  ;;  %4102 = vmatpush.bf16.msra.mxu0 %v7261_v10  ;;  %v6080_v4 = vld [vmem:[#allocation6 + $0x3c8] sm:$0xf] }
  0xeb   :  { %v5850_v8 = vld [vmem:[#allocation6 + $0x220] sm:$0xf0]  ;;  %v8307_v5 = vld [vmem:[#allocation6 + $0x3e4] sm:$0xf0] }
  0xec   :  { %v8558_v11 = vld [vmem:[#allocation6 + $0xbc4] sm:$0xf]  ;;  %v5853_v17 = vor.u32 %v8246_v7, %v5850_v8 }
  0xed   :  { %v7098_v12 = vld [vmem:[#allocation6 + $0xbe0] sm:$0xf0] }
  0xee   :  { %v8462_v13 = vld [vmem:[#allocation6 + $0x8c4] sm:$0xf]  ;;  %v7101_v22 = vor.u32 %v8558_v11, %v7098_v12  ;;  %4065 = vmatpush.bf16.msra.mxu1 %v6429_v6  ;;  %4041 = vmatpush.bf16.msra.mxu3 %v5853_v17 }
  0xef   :  { %v6714_v14 = vld [vmem:[#allocation6 + $0x8e0] sm:$0xf0] }
  0xf0   :  { %v8590_v15 = vld [vmem:[#allocation6 + $0xcc4] sm:$0xf]  ;;  %v6717_v23 = vor.u32 %v8462_v13, %v6714_v14  ;;  %v6081_v14 = vor.u32 %v8307_v5, %v6080_v4 }
  0xf1   :  { %v7226_v16 = vld [vmem:[#allocation6 + $0xce0] sm:$0xf0]  ;;  %4042 = vmatmul.bf16.vlgmr.msra.gmra.mxu3 %v9144_v39 }
  0xf2   :  { %v8382_v20 = vld [vmem:[#allocation6 + $0x644] sm:$0xf]  ;;  %v7229_v24 = vor.u32 %v8590_v15, %v7226_v16  ;;  %4086 = vmatpush.bf16.msrb.mxu3 %v7101_v22  ;;  %4077 = vmatpush.bf16.msra.mxu2 %v6717_v23 }
  0xf3   :  { %v6394_v21 = vld [vmem:[#allocation6 + $0x660] sm:$0xf0] }
  0xf4   :  { %v8550_v25 = vld [vmem:[#allocation6 + $0xb84] sm:$0xf]  ;;  %v6397_v31 = vor.u32 %v8382_v20, %v6394_v21  ;;  %4103 = vmatpush.bf16.msra.mxu0 %v7229_v24  ;;  %v6048_v20 = vld [vmem:[#allocation6 + $0x388] sm:$0xf] }
  0xf5   :  { %v7066_v29 = vld [vmem:[#allocation6 + $0xba0] sm:$0xf0]  ;;  %v8299_v21 = vld [vmem:[#allocation6 + $0x3a4] sm:$0xf0] }
  0xf6   :  { %v8454_v30 = vld [vmem:[#allocation6 + $0x884] sm:$0xf]  ;;  %v7069_v41 = vor.u32 %v8550_v25, %v7066_v29  ;;  %4066 = vmatpush.bf16.msra.mxu1 %v6397_v31  ;;  %v6049_v31 = vor.u32 %v8299_v21, %v6048_v20  ;;  %v6336_v21 = vld [vmem:[#allocation6 + $0x5c8] sm:$0xf] }
  0xf7   :  { %v6682_v32 = vld [vmem:[#allocation6 + $0x8a0] sm:$0xf0] }
  0xf8   :  { %v8582_v35 = vld [vmem:[#allocation6 + $0xc84] sm:$0xf]  ;;  %v6685_v44 = vor.u32 %v8454_v30, %v6682_v32  ;;  %4087 = vmatpush.bf16.msrb.mxu3 %v7069_v41 }
  0xf9   :  { %v7194_v36 = vld [vmem:[#allocation6 + $0xca0] sm:$0xf0] }
  0xfa   :  { %v8374_v37 = vld [vmem:[#allocation6 + $0x604] sm:$0xf]  ;;  %v7197_v45 = vor.u32 %v8582_v35, %v7194_v36  ;;  %4078 = vmatpush.bf16.msra.mxu2 %v6685_v44 }
  0xfb   :  { %v6362_v38 = vld [vmem:[#allocation6 + $0x620] sm:$0xf0] }
  0xfc   :  { %v8686_v42 = vld [vmem:[#allocation6 + $0xfc4] sm:$0xf]  ;;  %v6365_v50 = vor.u32 %v8374_v37, %v6362_v38  ;;  %4104 = vmatpush.bf16.msra.mxu0 %v7197_v45  ;;  %v6016_v37 = vld [vmem:[#allocation6 + $0x348] sm:$0xf] }
  0xfd   :  { %v7610_v43 = vld [vmem:[#allocation6 + $0xfe0] sm:$0xf0]  ;;  %v8291_v38 = vld [vmem:[#allocation6 + $0x364] sm:$0xf0] }
  0xfe   :  { %v8542_v47 = vld [vmem:[#allocation6 + $0xb44] sm:$0xf]  ;;  %v7613_v54 = vor.u32 %v8686_v42, %v7610_v43  ;;  %4067 = vmatpush.bf16.msra.mxu1 %v6365_v50 }
  0xff   :  { %v7034_v48 = vld [vmem:[#allocation6 + $0xb60] sm:$0xf0] }
 0x100   :  { %v8446_v49 = vld [vmem:[#allocation6 + $0x844] sm:$0xf]  ;;  %v7037_v55 = vor.u32 %v8542_v47, %v7034_v48  ;;  %v6017_v48 = vor.u32 %v8291_v38, %v6016_v37 }
 0x101   :  { %v6650_v51 = vld [vmem:[#allocation6 + $0x860] sm:$0xf0]  ;;  %4068 = vmatmul.bf16.vlgmr.msra.gmra.mxu1 %v9146_v40 }
 0x102   :  { %v8574_v52 = vld [vmem:[#allocation6 + $0xc44] sm:$0xf]  ;;  %v6653_v59 = vor.u32 %v8446_v49, %v6650_v51  ;;  %4112 = vmatpush.bf16.msrb.mxu1 %v7613_v54  ;;  %4088 = vmatpush.bf16.msrb.mxu3 %v7037_v55 }
 0x103   :  { %v7162_v53 = vld [vmem:[#allocation6 + $0xc60] sm:$0xf0] }
 0x104   :  { %v8534_v56 = vld [vmem:[#allocation6 + $0xb04] sm:$0xf]  ;;  %v7165_v60 = vor.u32 %v8574_v52, %v7162_v53  ;;  %4079 = vmatpush.bf16.msra.mxu2 %v6653_v59  ;;  %v5984_v52 = vld [vmem:[#allocation6 + $0x308] sm:$0xf] }
 0x105   :  { %v8678_v57 = vld [vmem:[#allocation6 + $0xf84] sm:$0xf]  ;;  %v8283_v53 = vld [vmem:[#allocation6 + $0x324] sm:$0xf0] }
 0x106   :  { %v7578_v58 = vld [vmem:[#allocation6 + $0xfa0] sm:$0xf0]  ;;  %4105 = vmatpush.bf16.msra.mxu0 %v7165_v60  ;;  %v5985_v60 = vor.u32 %v8283_v53, %v5984_v52  ;;  %v6592_v52 = vld [vmem:[#allocation6 + $0x7c8] sm:$0xf] }
 0x107   :  { %v7002_v61 = vld [vmem:[#allocation6 + $0xb20] sm:$0xf0]  ;;  %v7581_v3 = vor.u32 %v8678_v57, %v7578_v58 }
 0x108   :  { %v8438_v62 = vld [vmem:[#allocation6 + $0x804] sm:$0xf]  ;;  %v7005_v7 = vor.u32 %v8534_v56, %v7002_v61  ;;  %v5824_v61 = vld [vmem:[#allocation6 + $0x1c8] sm:$0xf] }
 0x109   :  { %v6618_v63 = vld [vmem:[#allocation6 + $0x820] sm:$0xf0]  ;;  %4113 = vmatpush.bf16.msrb.mxu1 %v7581_v3  ;;  %v8275_v3 = vld [vmem:[#allocation6 + $0x2e4] sm:$0xf0] }
 0x10a   :  { %v8566_v0 = vld [vmem:[#allocation6 + $0xc04] sm:$0xf]  ;;  %v6621_v10 = vor.u32 %v8438_v62, %v6618_v63  ;;  %4089 = vmatpush.bf16.msrb.mxu3 %v7005_v7  ;;  %v8243_v62 = vld [vmem:[#allocation6 + $0x1e4] sm:$0xf0] }
 0x10b   :  { %v7130_v1 = vld [vmem:[#allocation6 + $0xc20] sm:$0xf0]  ;;  %v5825_v7 = vor.u32 %v8243_v62, %v5824_v61  ;;  %v5696_v62 = vld [vmem:[#allocation6 + $0xc8] sm:$0xf] }
 0x10c   :  { %v8750_v2 = vld [vmem:[#allocation6 + $0x11c4] sm:$0xf]  ;;  %v7133_v11 = vor.u32 %v8566_v0, %v7130_v1  ;;  %4080 = vmatpush.bf16.msra.mxu2 %v6621_v10  ;;  %v5792_v10 = vld [vmem:[#allocation6 + $0x188] sm:$0xf] }
 0x10d   :  { %v7866_v26 = vld [vmem:[#allocation6 + $0x11e0] sm:$0xf0] }
 0x10e   :  { %v8670_v8 = vld [vmem:[#allocation6 + $0xf44] sm:$0xf]  ;;  %v7869_v6 = vor.u32 %v8750_v2, %v7866_v26  ;;  %4106 = vmatpush.bf16.msra.mxu0 %v7133_v11  ;;  %v5952_v2 = vld [vmem:[#allocation6 + $0x2c8] sm:$0xf] }
 0x10f   :  { %v7546_v9 = vld [vmem:[#allocation6 + $0xf60] sm:$0xf0]  ;;  %4081 = vmatmul.bf16.vlgmr.msra.gmra.mxu2 %v9154_v18  ;;  %v8235_v11 = vld [vmem:[#allocation6 + $0x1a4] sm:$0xf0] }
 0x110   :  { %v8526_v12 = vld [vmem:[#allocation6 + $0xac4] sm:$0xf]  ;;  %v7549_v16 = vor.u32 %v8670_v8, %v7546_v9  ;;  %4125 = vmatpush.bf16.msrb.mxu2 %v7869_v6  ;;  %v5953_v9 = vor.u32 %v8275_v3, %v5952_v2  ;;  %v5793_v20 = vor.u32 %v8235_v11, %v5792_v10  ;;  %v6560_v2 = vld [vmem:[#allocation6 + $0x788] sm:$0xf] }
 0x111   :  { %v6970_v13 = vld [vmem:[#allocation6 + $0xae0] sm:$0xf0]  ;;  %4107 = vmatmul.bf16.vlgmr.msra.gmra.mxu0 %v9170_v46  ;;  %v5664_v10 = vld [vmem:[#allocation6 + $0x88] sm:$0xf] }
 0x112   :  { %v8742_v15 = vld [vmem:[#allocation6 + $0x1184] sm:$0xf]  ;;  %v6973_v22 = vor.u32 %v8526_v12, %v6970_v13  ;;  %4151 = vmatpush.bf16.msrb.mxu0 %v6081_v14  ;;  %4114 = vmatpush.bf16.msrb.mxu1 %v7549_v16  ;;  %v5920_v14 = vld [vmem:[#allocation6 + $0x288] sm:$0xf] }
 0x113   :  { %v7834_v17 = vld [vmem:[#allocation6 + $0x11a0] sm:$0xf0]  ;;  %v8203_v11 = vld [vmem:[#allocation6 + $0xa4] sm:$0xf0] }
 0x114   :  { %v8662_v23 = vld [vmem:[#allocation6 + $0xf04] sm:$0xf]  ;;  %v7837_v30 = vor.u32 %v8742_v15, %v7834_v17  ;;  %4090 = vmatpush.bf16.msrb.mxu3 %v6973_v22  ;;  %v8267_v15 = vld [vmem:[#allocation6 + $0x2a4] sm:$0xf0] }
 0x115   :  { %v7514_v24 = vld [vmem:[#allocation6 + $0xf20] sm:$0xf0]  ;;  %v8371_v22 = vld [vmem:[#allocation6 + $0x5e4] sm:$0xf0] }
 0x116   :  { %v8518_v25 = vld [vmem:[#allocation6 + $0xa84] sm:$0xf]  ;;  %v7517_v35 = vor.u32 %v8662_v23, %v7514_v24  ;;  %4126 = vmatpush.bf16.msrb.mxu2 %v7837_v30  ;;  %4152 = vmatpush.bf16.msrb.mxu0 %v6049_v31  ;;  %v5921_v24 = vor.u32 %v8267_v15, %v5920_v14  ;;  %v6337_v37 = vor.u32 %v8371_v22, %v6336_v21  ;;  %v8419_v15 = vld [vmem:[#allocation6 + $0x764] sm:$0xf0] }
 0x117   :  { %v6938_v29 = vld [vmem:[#allocation6 + $0xaa0] sm:$0xf0]  ;;  %v6208_v21 = vld [vmem:[#allocation6 + $0x4c8] sm:$0xf] }
 0x118   :  { %v8734_v32 = vld [vmem:[#allocation6 + $0x1144] sm:$0xf]  ;;  %v6941_v41 = vor.u32 %v8518_v25, %v6938_v29  ;;  %4115 = vmatpush.bf16.msrb.mxu1 %v7517_v35  ;;  %v5760_v25 = vld [vmem:[#allocation6 + $0x148] sm:$0xf] }
 0x119   :  { %v7802_v36 = vld [vmem:[#allocation6 + $0x1160] sm:$0xf0]  ;;  %v8227_v29 = vld [vmem:[#allocation6 + $0x164] sm:$0xf0] }
 0x11a   :  { %v8654_v42 = vld [vmem:[#allocation6 + $0xec4] sm:$0xf]  ;;  %v7805_v47 = vor.u32 %v8734_v32, %v7802_v36  ;;  %4091 = vmatpush.bf16.msrb.mxu3 %v6941_v41  ;;  %4153 = vmatpush.bf16.msrb.mxu0 %v6017_v48  ;;  %v5888_v35 = vld [vmem:[#allocation6 + $0x248] sm:$0xf]  ;;  %v5761_v38 = vor.u32 %v8227_v29, %v5760_v25 }
 0x11b   :  { %v7482_v43 = vld [vmem:[#allocation6 + $0xee0] sm:$0xf0]  ;;  %v8259_v36 = vld [vmem:[#allocation6 + $0x264] sm:$0xf0] }
 0x11c   :  { %v8510_v44 = vld [vmem:[#allocation6 + $0xa44] sm:$0xf]  ;;  %v7485_v50 = vor.u32 %v8654_v42, %v7482_v43  ;;  %4127 = vmatpush.bf16.msrb.mxu2 %v7805_v47  ;;  %v5728_v41 = vld [vmem:[#allocation6 + $0x108] sm:$0xf] }
 0x11d   :  { %v6906_v45 = vld [vmem:[#allocation6 + $0xa60] sm:$0xf0]  ;;  %v6304_v42 = vld [vmem:[#allocation6 + $0x588] sm:$0xf] }
 0x11e   :  { %v8726_v49 = vld [vmem:[#allocation6 + $0x1104] sm:$0xf]  ;;  %v6909_v54 = vor.u32 %v8510_v44, %v6906_v45  ;;  %4116 = vmatpush.bf16.msrb.mxu1 %v7485_v50  ;;  %4154 = vmatpush.bf16.msrb.mxu0 %v5985_v60  ;;  %v8363_v43 = vld [vmem:[#allocation6 + $0x5a4] sm:$0xf0]  ;;  %v5889_v45 = vor.u32 %v8259_v36, %v5888_v35 }
 0x11f   :  { %v7770_v51 = vld [vmem:[#allocation6 + $0x1120] sm:$0xf0]  ;;  %v8219_v47 = vld [vmem:[#allocation6 + $0x124] sm:$0xf0]  ;;  %v6305_v53 = vor.u32 %v8363_v43, %v6304_v42 }
 0x120   :  { %v8646_v55 = vld [vmem:[#allocation6 + $0xe84] sm:$0xf]  ;;  %v7773_v59 = vor.u32 %v8726_v49, %v7770_v51  ;;  %4092 = vmatpush.bf16.msrb.mxu3 %v6909_v54  ;;  %v5856_v50 = vld [vmem:[#allocation6 + $0x208] sm:$0xf] }
 0x121   :  { %v7450_v56 = vld [vmem:[#allocation6 + $0xea0] sm:$0xf0]  ;;  %v8251_v51 = vld [vmem:[#allocation6 + $0x224] sm:$0xf0] }
 0x122   :  { %v8502_v57 = vld [vmem:[#allocation6 + $0xa04] sm:$0xf]  ;;  %v7453_v0 = vor.u32 %v8646_v55, %v7450_v56  ;;  %4128 = vmatpush.bf16.msrb.mxu2 %v7773_v59  ;;  %4155 = vmatpush.bf16.msrb.mxu0 %v5953_v9  ;;  %v8435_v54 = vld [vmem:[#allocation6 + $0x7e4] sm:$0xf0]  ;;  %v5857_v61 = vor.u32 %v8251_v51, %v5856_v50 }
 0x123   :  { %v6874_v58 = vld [vmem:[#allocation6 + $0xa20] sm:$0xf0]  ;;  %v7104_v55 = vld [vmem:[#allocation6 + $0xbc8] sm:$0xf] }
 0x124   :  { %v8718_v63 = vld [vmem:[#allocation6 + $0x10c4] sm:$0xf]  ;;  %v6877_v26 = vor.u32 %v8502_v57, %v6874_v58  ;;  %4117 = vmatpush.bf16.msrb.mxu1 %v7453_v0  ;;  %v8563_v56 = vld [vmem:[#allocation6 + $0xbe4] sm:$0xf0]  ;;  %v5729_v57 = vor.u32 %v8219_v47, %v5728_v41  ;;  %v6593_v0 = vor.u32 %v8435_v54, %v6592_v52 }
 0x125   :  { %v7738_v1 = vld [vmem:[#allocation6 + $0x10e0] sm:$0xf0]  ;;  %v6272_v58 = vld [vmem:[#allocation6 + $0x548] sm:$0xf] }
 0x126   :  { %v8638_v4 = vld [vmem:[#allocation6 + $0xe44] sm:$0xf]  ;;  %v7741_v8 = vor.u32 %v8718_v63, %v7738_v1  ;;  %4093 = vmatpush.bf16.msrb.mxu3 %v6877_v26  ;;  %4156 = vmatpush.bf16.msrb.mxu0 %v5921_v24  ;;  %v8355_v59 = vld [vmem:[#allocation6 + $0x564] sm:$0xf0]  ;;  %v7105_v1 = vor.u32 %v8563_v56, %v7104_v55 }
 0x127   :  { %v7418_v5 = vld [vmem:[#allocation6 + $0xe60] sm:$0xf0]  ;;  %v8211_v63 = vld [vmem:[#allocation6 + $0xe4] sm:$0xf0]  ;;  %v6273_v3 = vor.u32 %v8355_v59, %v6272_v58 }
 0x128   :  { %v8710_v12 = vld [vmem:[#allocation6 + $0x1084] sm:$0xf]  ;;  %v7421_v13 = vor.u32 %v8638_v4, %v7418_v5  ;;  %4129 = vmatpush.bf16.msrb.mxu2 %v7741_v8  ;;  %v8427_v26 = vld [vmem:[#allocation6 + $0x7a4] sm:$0xf0] }
 0x129   :  { %v7706_v6 = vld [vmem:[#allocation6 + $0x10a0] sm:$0xf0]  ;;  %4094 = vmatmul.bf16.vlgmr.msrb.gmra.mxu3 %v9156_v28  ;;  %v7072_v4 = vld [vmem:[#allocation6 + $0xb88] sm:$0xf] }
 0x12a   :  { %v8630_v16 = vld [vmem:[#allocation6 + $0xe04] sm:$0xf]  ;;  %4138 = vmatpush.bf16.msra.mxu3 %v5825_v7  ;;  %v7709_v23 = vor.u32 %v8710_v12, %v7706_v6  ;;  %4118 = vmatpush.bf16.msrb.mxu1 %v7421_v13  ;;  %v8555_v5 = vld [vmem:[#allocation6 + $0xba4] sm:$0xf0]  ;;  %v5697_v7 = vor.u32 %v8211_v63, %v5696_v62  ;;  %v6561_v12 = vor.u32 %v8427_v26, %v6560_v2 }
 0x12b   :  { %v7386_v17 = vld [vmem:[#allocation6 + $0xe20] sm:$0xf0]  ;;  %4157 = vmatpush.bf16.msrb.mxu0 %v5889_v45  ;;  %v6240_v8 = vld [vmem:[#allocation6 + $0x508] sm:$0xf]  ;;  %v7073_v13 = vor.u32 %v8555_v5, %v7072_v4 }
 0x12c   :  { %v8702_v30 = vld [vmem:[#allocation6 + $0x1044] sm:$0xf]  ;;  %v7389_v31 = vor.u32 %v8630_v16, %v7386_v17  ;;  %4130 = vmatpush.bf16.msrb.mxu2 %v7709_v23  ;;  %v8347_v9 = vld [vmem:[#allocation6 + $0x524] sm:$0xf0] }
 0x12d   :  { %v7674_v32 = vld [vmem:[#allocation6 + $0x1060] sm:$0xf0]  ;;  %v6528_v6 = vld [vmem:[#allocation6 + $0x748] sm:$0xf]  ;;  %v6241_v14 = vor.u32 %v8347_v9, %v6240_v8 }
 0x12e   :  { %4139 = vmatpush.bf16.msra.mxu3 %v5793_v20  ;;  %v7677_v44 = vor.u32 %v8702_v30, %v7674_v32  ;;  %v8694_v48 = vld [vmem:[#allocation6 + $0x1004] sm:$0xf]  ;;  %4119 = vmatpush.bf16.msrb.mxu1 %v7389_v31  ;;  %v7040_v16 = vld [vmem:[#allocation6 + $0xb48] sm:$0xf]  ;;  %v5665_v20 = vor.u32 %v8203_v11, %v5664_v10  ;;  %v6529_v25 = vor.u32 %v8419_v15, %v6528_v6 }
 0x12f   :  { %v7642_v49 = vld [vmem:[#allocation6 + $0x1020] sm:$0xf0]  ;;  %4158 = vmatpush.bf16.msrb.mxu0 %v5857_v61  ;;  %v8547_v17 = vld [vmem:[#allocation6 + $0xb64] sm:$0xf0] }
 0x130   :  { %4131 = vmatpush.bf16.msrb.mxu2 %v7677_v44  ;;  %v7645_v60 = vor.u32 %v8694_v48, %v7642_v49  ;;  %v8339_v22 = vld [vmem:[#allocation6 + $0x4e4] sm:$0xf0]  ;;  %v7041_v29 = vor.u32 %v8547_v17, %v7040_v16 }
 0x131   :  { %4120 = vmatmul.bf16.vlgmr.msrb.gmra.mxu1 %v9161_v34  ;;  %v5632_v23 = vld [vmem:[#allocation6 + $0x48] sm:$0xf]  ;;  %v6209_v31 = vor.u32 %v8339_v22, %v6208_v21 }
 0x132   :  { %4164 = vmatpush.bf16.msra.mxu1 %v6337_v37  ;;  %4140 = vmatpush.bf16.msra.mxu3 %v5761_v38  ;;  %v8195_v24 = vld [vmem:[#allocation6 + $0x64] sm:$0xf0] }
 0x133   :  { %4203 = vmatpush.bf16.msra.mxu0 %v7105_v1  ;;  %v6496_v30 = vld [vmem:[#allocation6 + $0x708] sm:$0xf]  ;;  %v5633_v37 = vor.u32 %v8195_v24, %v5632_v23 }
 0x134   :  { %4132 = vmatpush.bf16.msrb.mxu2 %v7645_v60  ;;  %4159 = vmatmul.bf16.vlgmr.msrb.gmra.mxu0 %v9144_v39  ;;  %v8411_v32 = vld [vmem:[#allocation6 + $0x724] sm:$0xf0] }
 0x135   :  { %v7008_v35 = vld [vmem:[#allocation6 + $0xb08] sm:$0xf]  ;;  %v6497_v44 = vor.u32 %v8411_v32, %v6496_v30 }
 0x136   :  { %4165 = vmatpush.bf16.msra.mxu1 %v6305_v53  ;;  %4141 = vmatpush.bf16.msra.mxu3 %v5729_v57  ;;  %v8539_v36 = vld [vmem:[#allocation6 + $0xb24] sm:$0xf0] }
 0x137   :  { %4133 = vmatmul.bf16.vlgmr.msrb.gmra.mxu2 %v9167_v27  ;;  %4204 = vmatpush.bf16.msra.mxu0 %v7073_v13  ;;  %v6176_v38 = vld [vmem:[#allocation6 + $0x488] sm:$0xf]  ;;  %v7009_v45 = vor.u32 %v8539_v36, %v7008_v35 }
 0x138   :  { %4177 = vmatpush.bf16.msra.mxu2 %v6593_v0  ;;  %v8331_v41 = vld [vmem:[#allocation6 + $0x4a4] sm:$0xf0] }
 0x139   :  { %v5600_v42 = vld [vmem:[#allocation6 + $0x8] sm:$0xf]  ;;  %v6177_v50 = vor.u32 %v8331_v41, %v6176_v38  ;;  %v8239_v38 = vld [vmem:[#allocation6 + $0x1cc] sm:$0xf] }
 0x13a   :  { %4166 = vmatpush.bf16.msra.mxu1 %v6273_v3  ;;  %4142 = vmatpush.bf16.msra.mxu3 %v5697_v7  ;;  %v8187_v43 = vld [vmem:[#allocation6 + $0x24] sm:$0xf0]  ;;  %v5826_v41 = vld [vmem:[#allocation6 + $0x1e8] sm:$0xf0] }
 0x13b   :  { %4205 = vmatpush.bf16.msra.mxu0 %v7041_v29  ;;  %v6848_v47 = vld [vmem:[#allocation6 + $0x9c8] sm:$0xf]  ;;  %v5601_v54 = vor.u32 %v8187_v43, %v5600_v42 }
 0x13c   :  { %4178 = vmatpush.bf16.msra.mxu2 %v6561_v12  ;;  %v8499_v48 = vld [vmem:[#allocation6 + $0x9e4] sm:$0xf0] }
 0x13d   :  { %v6464_v49 = vld [vmem:[#allocation6 + $0x6c8] sm:$0xf]  ;;  %v6849_v57 = vor.u32 %v8499_v48, %v6848_v47 }
 0x13e   :  { %4167 = vmatpush.bf16.msra.mxu1 %v6241_v14  ;;  %4143 = vmatpush.bf16.msra.mxu3 %v5665_v20  ;;  %v8403_v51 = vld [vmem:[#allocation6 + $0x6e4] sm:$0xf0] }
 0x13f   :  { %v6976_v52 = vld [vmem:[#allocation6 + $0xac8] sm:$0xf]  ;;  %4206 = vmatpush.bf16.msra.mxu0 %v7009_v45  ;;  %v6465_v58 = vor.u32 %v8403_v51, %v6464_v49  ;;  %v5829_v51 = vor.u32 %v8239_v38, %v5826_v41 }
 0x140   :  { %4179 = vmatpush.bf16.msra.mxu2 %v6529_v25  ;;  %v8531_v53 = vld [vmem:[#allocation6 + $0xae4] sm:$0xf0] }
 0x141   :  { %v6144_v55 = vld [vmem:[#allocation6 + $0x448] sm:$0xf]  ;;  %v6977_v59 = vor.u32 %v8531_v53, %v6976_v52 }
 0x142   :  { %4168 = vmatpush.bf16.msra.mxu1 %v6209_v31  ;;  %4144 = vmatpush.bf16.msra.mxu3 %v5633_v37  ;;  %v8323_v56 = vld [vmem:[#allocation6 + $0x464] sm:$0xf0] }
 0x143   :  { %v6816_v60 = vld [vmem:[#allocation6 + $0x988] sm:$0xf]  ;;  %v6145_v63 = vor.u32 %v8323_v56, %v6144_v55  ;;  %4207 = vmatpush.bf16.msra.mxu0 %v6977_v59  ;;  %v8231_v55 = vld [vmem:[#allocation6 + $0x18c] sm:$0xf] }
 0x144   :  { %4180 = vmatpush.bf16.msra.mxu2 %v6497_v44  ;;  %v8491_v61 = vld [vmem:[#allocation6 + $0x9a4] sm:$0xf0]  ;;  %v5794_v56 = vld [vmem:[#allocation6 + $0x1a8] sm:$0xf0] }
 0x145   :  { %v6432_v62 = vld [vmem:[#allocation6 + $0x688] sm:$0xf]  ;;  %v6817_v4 = vor.u32 %v8491_v61, %v6816_v60 }
 0x146   :  { %4169 = vmatpush.bf16.msra.mxu1 %v6177_v50  ;;  %v8395_v0 = vld [vmem:[#allocation6 + $0x6a4] sm:$0xf0]  ;;  %4145 = vmatpush.bf16.msra.mxu3 %v5601_v54 }
 0x147   :  { %v6944_v1 = vld [vmem:[#allocation6 + $0xa88] sm:$0xf]  ;;  %v6433_v8 = vor.u32 %v8395_v0, %v6432_v62 }
 0x148   :  { %v8523_v2 = vld [vmem:[#allocation6 + $0xaa4] sm:$0xf0]  ;;  %4181 = vmatpush.bf16.msra.mxu2 %v6465_v58 }
 0x149   :  { %v6112_v3 = vld [vmem:[#allocation6 + $0x408] sm:$0xf]  ;;  %v6945_v9 = vor.u32 %v8523_v2, %v6944_v1  ;;  %4146 = vmatmul.bf16.vlgmr.msra.gmra.mxu3 %v9141_v19  ;;  %v3913_v1 = vpop.f32.mrf.mxu1 }
 0x14a   :  { %v8315_v26 = vld [vmem:[#allocation6 + $0x424] sm:$0xf0]  ;;  %4190 = vmatpush.bf16.msrb.mxu3 %v6849_v57  ;;  %4170 = vmatpush.bf16.msra.mxu1 %v6145_v63  ;;  %v5797_v63 = vor.u32 %v8231_v55, %v5794_v56  ;;  %v3926_v55 = vpop.f32.mrf.mxu2 }
 0x14b   :  { %v7360_v5 = vld [vmem:[#allocation6 + $0xdc8] sm:$0xf]  ;;  %v6113_v13 = vor.u32 %v8315_v26, %v6112_v3  ;;  %4208 = vmatpush.bf16.msra.mxu0 %v6945_v9  ;;  %v8223_v26 = vld [vmem:[#allocation6 + $0x14c] sm:$0xf] }
 0x14c   :  { %v8627_v7 = vld [vmem:[#allocation6 + $0xde4] sm:$0xf0]  ;;  %4182 = vmatpush.bf16.msra.mxu2 %v6433_v8 }
 0x14d   :  { %v6784_v10 = vld [vmem:[#allocation6 + $0x948] sm:$0xf]  ;;  %v7361_v16 = vor.u32 %v8627_v7, %v7360_v5 }
 0x14e   :  { %v8483_v11 = vld [vmem:[#allocation6 + $0x964] sm:$0xf0]  ;;  %4191 = vmatpush.bf16.msrb.mxu3 %v6817_v4  ;;  %4171 = vmatpush.bf16.msra.mxu1 %v6113_v13  ;;  %v5762_v4 = vld [vmem:[#allocation6 + $0x168] sm:$0xf0] }
 0x14f   :  { %v6400_v12 = vld [vmem:[#allocation6 + $0x648] sm:$0xf]  ;;  %v6785_v17 = vor.u32 %v8483_v11, %v6784_v10  ;;  %v9187_v11 = vld [vmem:[#allocation7] sm:$0xff]  ;;  %v5765_v13 = vor.u32 %v8223_v26, %v5762_v4 }
 0x150   :  { %v8387_v6 = vld [vmem:[#allocation6 + $0x664] sm:$0xf0] }
 0x151   :  { %v6912_v14 = vld [vmem:[#allocation6 + $0xa48] sm:$0xf]  ;;  %v6401_v23 = vor.u32 %v8387_v6, %v6400_v12  ;;  %4172 = vmatmul.bf16.vlgmr.msra.gmra.mxu1 %v9159_v33 }
 0x152   :  { %v8515_v15 = vld [vmem:[#allocation6 + $0xa64] sm:$0xf0]  ;;  %4216 = vmatpush.bf16.msrb.mxu1 %v7361_v16  ;;  %4192 = vmatpush.bf16.msrb.mxu3 %v6785_v17  ;;  %v8215_v16 = vld [vmem:[#allocation6 + $0x10c] sm:$0xf] }
 0x153   :  { %v6752_v20 = vld [vmem:[#allocation6 + $0x908] sm:$0xf]  ;;  %v6913_v24 = vor.u32 %v8515_v15, %v6912_v14  ;;  %4183 = vmatpush.bf16.msra.mxu2 %v6401_v23  ;;  %v5730_v17 = vld [vmem:[#allocation6 + $0x128] sm:$0xf0]  ;;  %v1008_v23 = vperm.slane %v9187_v11, 0 }
 0x154   :  { %v7328_v21 = vld [vmem:[#allocation6 + $0xd88] sm:$0xf] }
 0x155   :  { %v8619_v22 = vld [vmem:[#allocation6 + $0xda4] sm:$0xf0]  ;;  %4209 = vmatpush.bf16.msra.mxu0 %v6913_v24  ;;  %v9190_v24 = vpop.f32.mrf.mxu0 }
 0x156   :  { %v8475_v25 = vld [vmem:[#allocation6 + $0x924] sm:$0xf0]  ;;  %v7329_v36 = vor.u32 %v8619_v22, %v7328_v21 }
 0x157   :  { %v6368_v29 = vld [vmem:[#allocation6 + $0x608] sm:$0xf]  ;;  %v6753_v42 = vor.u32 %v8475_v25, %v6752_v20 }
 0x158   :  { %v8379_v30 = vld [vmem:[#allocation6 + $0x624] sm:$0xf0]  ;;  %4217 = vmatpush.bf16.msrb.mxu1 %v7329_v36 }
 0x159   :  { %v6880_v31 = vld [vmem:[#allocation6 + $0xa08] sm:$0xf]  ;;  %v6369_v45 = vor.u32 %v8379_v30, %v6368_v29  ;;  %4193 = vmatpush.bf16.msrb.mxu3 %v6753_v42  ;;  %v8207_v42 = vld [vmem:[#allocation6 + $0xcc] sm:$0xf] }
 0x15a   :  { %v8507_v32 = vld [vmem:[#allocation6 + $0xa24] sm:$0xf0] }
 0x15b   :  { %v7616_v35 = vld [vmem:[#allocation6 + $0xfc8] sm:$0xf]  ;;  %v6881_v47 = vor.u32 %v8507_v32, %v6880_v31  ;;  %4184 = vmatpush.bf16.msra.mxu2 %v6369_v45  ;;  %v5733_v31 = vor.u32 %v8215_v16, %v5730_v17  ;;  %v3914_v45 = vadd.f32 %v3913_v1, %v1008_v23  ;;  %v8303_v1 = vld [vmem:[#allocation6 + $0x3cc] sm:$0xf] }
 0x15c   :  { %v8691_v37 = vld [vmem:[#allocation6 + $0xfe4] sm:$0xf0]  ;;  %v6050_v16 = vld [vmem:[#allocation6 + $0x3a8] sm:$0xf0] }
 0x15d   :  { %v7296_v43 = vld [vmem:[#allocation6 + $0xd48] sm:$0xf]  ;;  %v7617_v50 = vor.u32 %v8691_v37, %v7616_v35  ;;  %4210 = vmatpush.bf16.msra.mxu0 %v6881_v47  ;;  %v3915_v37 = vpop.f32.mrf.mxu1 }
 0x15e   :  { %v8611_v44 = vld [vmem:[#allocation6 + $0xd64] sm:$0xf0]  ;;  %4185 = vmatmul.bf16.vlgmr.msra.gmra.mxu2 %v9146_v40  ;;  %v8495_v37 = vld [vmem:[#allocation6 + $0x9cc] sm:$0xf] }
 0x15f   :  { %v6720_v48 = vld [vmem:[#allocation6 + $0x8c8] sm:$0xf]  ;;  %v7297_v53 = vor.u32 %v8611_v44, %v7296_v43  ;;  %4229 = vmatpush.bf16.msrb.mxu2 %v7617_v50  ;;  %v5698_v43 = vld [vmem:[#allocation6 + $0xe8] sm:$0xf0] }
 0x160   :  { %v8467_v49 = vld [vmem:[#allocation6 + $0x8e4] sm:$0xf0]  ;;  %4211 = vmatmul.bf16.vlgmr.msra.gmra.mxu0 %v9156_v28 }
 0x161   :  { %v7584_v52 = vld [vmem:[#allocation6 + $0xf88] sm:$0xf]  ;;  %v6721_v57 = vor.u32 %v8467_v49, %v6720_v48  ;;  %4255 = vmatpush.bf16.msrb.mxu0 %v5829_v51  ;;  %4218 = vmatpush.bf16.msrb.mxu1 %v7297_v53  ;;  %v5701_v51 = vor.u32 %v8207_v42, %v5698_v43  ;;  %v8287_v42 = vld [vmem:[#allocation6 + $0x34c] sm:$0xf] }
 0x162   :  { %v8683_v54 = vld [vmem:[#allocation6 + $0xfa4] sm:$0xf0]  ;;  %v6018_v43 = vld [vmem:[#allocation6 + $0x368] sm:$0xf0] }
 0x163   :  { %v7264_v58 = vld [vmem:[#allocation6 + $0xd08] sm:$0xf]  ;;  %v7585_v62 = vor.u32 %v8683_v54, %v7584_v52  ;;  %4194 = vmatpush.bf16.msrb.mxu3 %v6721_v57 }
 0x164   :  { %v8603_v59 = vld [vmem:[#allocation6 + $0xd24] sm:$0xf0] }
 0x165   :  { %v6688_v60 = vld [vmem:[#allocation6 + $0x888] sm:$0xf]  ;;  %v7265_v2 = vor.u32 %v8603_v59, %v7264_v58  ;;  %4230 = vmatpush.bf16.msrb.mxu2 %v7585_v62  ;;  %4256 = vmatpush.bf16.msrb.mxu0 %v5797_v63  ;;  %v8199_v58 = vld [vmem:[#allocation6 + $0x8c] sm:$0xf]  ;;  %v3954_v63 = vpop.f32.mrf.mxu0  ;;  %v9195_v17 = vpop.f32.mrf.mxu1 }
 0x166   :  { %v8459_v61 = vld [vmem:[#allocation6 + $0x8a4] sm:$0xf0]  ;;  %v5666_v59 = vld [vmem:[#allocation6 + $0xa8] sm:$0xf0] }
 0x167   :  { %v7552_v0 = vld [vmem:[#allocation6 + $0xf48] sm:$0xf]  ;;  %v6689_v5 = vor.u32 %v8459_v61, %v6688_v60  ;;  %4219 = vmatpush.bf16.msrb.mxu1 %v7265_v2  ;;  %v9192_v60 = vadd.f32 %v3926_v55, %v3914_v45  ;;  %v6082_v2 = vld [vmem:[#allocation6 + $0x3e8] sm:$0xf0]  ;;  %v5669_v26 = vor.u32 %v8199_v58, %v5666_v59 }
 0x168   :  { %v8675_v3 = vld [vmem:[#allocation6 + $0xf64] sm:$0xf0]  ;;  %v8487_v55 = vld [vmem:[#allocation6 + $0x98c] sm:$0xf] }
 0x169   :  { %v7232_v7 = vld [vmem:[#allocation6 + $0xcc8] sm:$0xf]  ;;  %v7553_v12 = vor.u32 %v8675_v3, %v7552_v0  ;;  %4195 = vmatpush.bf16.msrb.mxu3 %v6689_v5  ;;  %4257 = vmatpush.bf16.msrb.mxu0 %v5765_v13  ;;  %v6085_v13 = vor.u32 %v8303_v1, %v6082_v2  ;;  %v8279_v58 = vld [vmem:[#allocation6 + $0x30c] sm:$0xf] }
 0x16a   :  { %v8595_v8 = vld [vmem:[#allocation6 + $0xce4] sm:$0xf0]  ;;  %v5986_v59 = vld [vmem:[#allocation6 + $0x328] sm:$0xf0] }
 0x16b   :  { %v6656_v9 = vld [vmem:[#allocation6 + $0x848] sm:$0xf]  ;;  %v7233_v14 = vor.u32 %v8595_v8, %v7232_v7  ;;  %4231 = vmatpush.bf16.msrb.mxu2 %v7553_v12  ;;  %v5634_v12 = vld [vmem:[#allocation6 + $0x68] sm:$0xf0] }
 0x16c   :  { %v8451_v10 = vld [vmem:[#allocation6 + $0x864] sm:$0xf0] }
 0x16d   :  { %v7520_v6 = vld [vmem:[#allocation6 + $0xf08] sm:$0xf]  ;;  %v6657_v20 = vor.u32 %v8451_v10, %v6656_v9  ;;  %4220 = vmatpush.bf16.msrb.mxu1 %v7233_v14  ;;  %4258 = vmatpush.bf16.msrb.mxu0 %v5733_v31  ;;  %v8191_v10 = vld [vmem:[#allocation6 + $0x4c] sm:$0xf] }
 0x16e   :  { %v8667_v15 = vld [vmem:[#allocation6 + $0xf24] sm:$0xf0]  ;;  %v5602_v31 = vld [vmem:[#allocation6 + $0x28] sm:$0xf0] }
 0x16f   :  { %v7200_v21 = vld [vmem:[#allocation6 + $0xc88] sm:$0xf]  ;;  %v7521_v30 = vor.u32 %v8667_v15, %v7520_v6  ;;  %4196 = vmatpush.bf16.msrb.mxu3 %v6657_v20  ;;  %v8295_v15 = vld [vmem:[#allocation6 + $0x38c] sm:$0xf] }
 0x170   :  { %v8587_v22 = vld [vmem:[#allocation6 + $0xca4] sm:$0xf0] }
 0x171   :  { %v6624_v25 = vld [vmem:[#allocation6 + $0x808] sm:$0xf]  ;;  %v7201_v38 = vor.u32 %v8587_v22, %v7200_v21  ;;  %4232 = vmatpush.bf16.msrb.mxu2 %v7521_v30  ;;  %4259 = vmatpush.bf16.msrb.mxu0 %v5701_v51  ;;  %v5637_v21 = vor.u32 %v8191_v10, %v5634_v12  ;;  %v8183_v30 = vld [vmem:[#allocation6 + $0xc] sm:$0xf] }
 0x172   :  { %v8443_v29 = vld [vmem:[#allocation6 + $0x824] sm:$0xf0]  ;;  %v8271_v12 = vld [vmem:[#allocation6 + $0x2cc] sm:$0xf] }
 0x173   :  { %v7872_v32 = vld [vmem:[#allocation6 + $0x11c8] sm:$0xf]  ;;  %v6625_v44 = vor.u32 %v8443_v29, %v6624_v25  ;;  %4221 = vmatpush.bf16.msrb.mxu1 %v7201_v38  ;;  %v3928_v29 = vpop.f32.mrf.mxu2  ;;  %v6850_v38 = vld [vmem:[#allocation6 + $0x9e8] sm:$0xf0] }
 0x174   :  { %v8755_v35 = vld [vmem:[#allocation6 + $0x11e4] sm:$0xf0]  ;;  %v6853_v51 = vor.u32 %v8495_v37, %v6850_v38  ;;  %v8471_v29 = vld [vmem:[#allocation6 + $0x90c] sm:$0xf] }
 0x175   :  { %v7488_v36 = vld [vmem:[#allocation6 + $0xec8] sm:$0xf]  ;;  %v7873_v49 = vor.u32 %v8755_v35, %v7872_v32  ;;  %4197 = vmatpush.bf16.msrb.mxu3 %v6625_v44  ;;  %4260 = vmatpush.bf16.msrb.mxu0 %v5669_v26  ;;  %v8367_v32 = vld [vmem:[#allocation6 + $0x5cc] sm:$0xf]  ;;  %v6053_v35 = vor.u32 %v8295_v15, %v6050_v16  ;;  %v9197_v44 = vpop.f32.mrf.mxu0 }
 0x176   :  { %v8659_v41 = vld [vmem:[#allocation6 + $0xee4] sm:$0xf0]  ;;  %v8351_v26 = vld [vmem:[#allocation6 + $0x54c] sm:$0xf] }
 0x177   :  { %v7168_v47 = vld [vmem:[#allocation6 + $0xc48] sm:$0xf]  ;;  %v7489_v50 = vor.u32 %v8659_v41, %v7488_v36  ;;  %v6338_v36 = vld [vmem:[#allocation6 + $0x5e8] sm:$0xf0] }
 0x178   :  { %v8579_v48 = vld [vmem:[#allocation6 + $0xc64] sm:$0xf0]  ;;  %4198 = vmatmul.bf16.vlgmr.msrb.gmra.mxu3 %v9154_v18 }
 0x179   :  { %v7840_v52 = vld [vmem:[#allocation6 + $0x1188] sm:$0xf]  ;;  %v7169_v56 = vor.u32 %v8579_v48, %v7168_v47  ;;  %4242 = vmatpush.bf16.msra.mxu3 %v7873_v49  ;;  %4233 = vmatpush.bf16.msrb.mxu2 %v7489_v50  ;;  %v5605_v47 = vor.u32 %v8183_v30, %v5602_v31  ;;  %v6341_v50 = vor.u32 %v8367_v32, %v6338_v36  ;;  %v6754_v30 = vld [vmem:[#allocation6 + $0x928] sm:$0xf0] }
 0x17a   :  { %v8747_v53 = vld [vmem:[#allocation6 + $0x11a4] sm:$0xf0]  ;;  %4261 = vmatpush.bf16.msrb.mxu0 %v5637_v21  ;;  %v8343_v21 = vld [vmem:[#allocation6 + $0x50c] sm:$0xf] }
 0x17b   :  { %v7456_v54 = vld [vmem:[#allocation6 + $0xe88] sm:$0xf]  ;;  %v7841_v0 = vor.u32 %v8747_v53, %v7840_v52  ;;  %4222 = vmatpush.bf16.msrb.mxu1 %v7169_v56  ;;  %v8359_v52 = vld [vmem:[#allocation6 + $0x58c] sm:$0xf]  ;;  %v6021_v53 = vor.u32 %v8287_v42, %v6018_v43  ;;  %v3978_v1 = vpop.f32.mrf.mxu2 }
 0x17c   :  { %v8651_v57 = vld [vmem:[#allocation6 + $0xea4] sm:$0xf0]  ;;  %v6818_v56 = vld [vmem:[#allocation6 + $0x9a8] sm:$0xf0] }
 0x17d   :  { %v7136_v61 = vld [vmem:[#allocation6 + $0xc08] sm:$0xf]  ;;  %v7457_v3 = vor.u32 %v8651_v57, %v7456_v54  ;;  %4243 = vmatpush.bf16.msra.mxu3 %v7841_v0  ;;  %v6306_v54 = vld [vmem:[#allocation6 + $0x5a8] sm:$0xf0]  ;;  %v3939_v0 = vpop.f32.mrf.mxu3 }
 0x17e   :  { %v8571_v62 = vld [vmem:[#allocation6 + $0xc24] sm:$0xf0]  ;;  %4262 = vmatpush.bf16.msrb.mxu0 %v5605_v47  ;;  %v6309_v2 = vor.u32 %v8359_v52, %v6306_v54  ;;  %v5922_v32 = vld [vmem:[#allocation6 + $0x2a8] sm:$0xf0] }
 0x17f   :  { %v7808_v4 = vld [vmem:[#allocation6 + $0x1148] sm:$0xf]  ;;  %v7137_v8 = vor.u32 %v8571_v62, %v7136_v61  ;;  %4234 = vmatpush.bf16.msrb.mxu2 %v7457_v3  ;;  %v3967_v61 = vpop.f32.mrf.mxu1  ;;  %v6821_v3 = vor.u32 %v8487_v55, %v6818_v56  ;;  %v6594_v47 = vld [vmem:[#allocation6 + $0x7e8] sm:$0xf0] }
 0x180   :  { %v8739_v5 = vld [vmem:[#allocation6 + $0x1164] sm:$0xf0]  ;;  %v6722_v52 = vld [vmem:[#allocation6 + $0x8e8] sm:$0xf0] }
 0x181   :  { %v7424_v7 = vld [vmem:[#allocation6 + $0xe48] sm:$0xf]  ;;  %v7809_v6 = vor.u32 %v8739_v5, %v7808_v4  ;;  %4223 = vmatpush.bf16.msrb.mxu1 %v7137_v8  ;;  %v3940_v4 = vadd.f32 %v3939_v0, %v9192_v60  ;;  %v5989_v5 = vor.u32 %v8279_v58, %v5986_v59  ;;  %v8479_v8 = vld [vmem:[#allocation6 + $0x94c] sm:$0xf]  ;;  %4263 = vmatmul.bf16.vlgmr.msrb.gmra.mxu0 %v9141_v19 }
 0x182   :  { %v8643_v9 = vld [vmem:[#allocation6 + $0xe64] sm:$0xf0]  ;;  %4307 = vmatpush.bf16.msra.mxu0 %v6853_v51  ;;  %v8463_v51 = vld [vmem:[#allocation6 + $0x8cc] sm:$0xf] }
 0x183   :  { %v7776_v14 = vld [vmem:[#allocation6 + $0x1108] sm:$0xf]  ;;  %v7425_v20 = vor.u32 %v8643_v9, %v7424_v7  ;;  %4244 = vmatpush.bf16.msra.mxu3 %v7809_v6  ;;  %v6274_v7 = vld [vmem:[#allocation6 + $0x568] sm:$0xf0]  ;;  %v3953_v6 = vadd.f32 %v9190_v24, %v3940_v4  ;;  %v3980_v42 = vpop.f32.mrf.mxu2  ;;  %v6725_v59 = vor.u32 %v8463_v51, %v6722_v52 }
 0x184   :  { %v8731_v22 = vld [vmem:[#allocation6 + $0x1124] sm:$0xf0]  ;;  %4224 = vmatmul.bf16.vlgmr.msrb.gmra.mxu1 %v9170_v46  ;;  %v6786_v9 = vld [vmem:[#allocation6 + $0x968] sm:$0xf0]  ;;  %v6277_v60 = vor.u32 %v8351_v26, %v6274_v7 }
 0x185   :  { %v7392_v23 = vld [vmem:[#allocation6 + $0xe08] sm:$0xf]  ;;  %4268 = vmatpush.bf16.msra.mxu1 %v6085_v13  ;;  %v7777_v41 = vor.u32 %v8731_v22, %v7776_v14  ;;  %4235 = vmatpush.bf16.msrb.mxu2 %v7425_v20  ;;  %v5954_v13 = vld [vmem:[#allocation6 + $0x2e8] sm:$0xf0]  ;;  %v4006_v14 = vpop.f32.mrf.mxu0  ;;  %v6789_v20 = vor.u32 %v8479_v8, %v6786_v9  ;;  %v3966_v22 = vadd.f32 %v9195_v17, %v3953_v6 }
 0x186   :  { %v8635_v25 = vld [vmem:[#allocation6 + $0xe24] sm:$0xf0]  ;;  %4308 = vmatpush.bf16.msra.mxu0 %v6821_v3  ;;  %v8263_v24 = vld [vmem:[#allocation6 + $0x28c] sm:$0xf]  ;;  %v6757_v17 = vor.u32 %v8471_v29, %v6754_v30 }
 0x187   :  { %v7393_v45 = vor.u32 %v8635_v25, %v7392_v23  ;;  %v7744_v48 = vld [vmem:[#allocation6 + $0x10c8] sm:$0xf]  ;;  %4245 = vmatpush.bf16.msra.mxu3 %v7777_v41  ;;  %v5957_v23 = vor.u32 %v8271_v12, %v5954_v13  ;;  %v6242_v25 = vld [vmem:[#allocation6 + $0x528] sm:$0xf0]  ;;  %v9205_v38 = vpop.f32.mrf.mxu1  ;;  %v3941_v41 = vpop.f32.mrf.mxu3 }
 0x188   :  { %v8723_v49 = vld [vmem:[#allocation6 + $0x10e4] sm:$0xf0]  ;;  %v6245_v43 = vor.u32 %v8343_v21, %v6242_v25  ;;  %v8255_v54 = vld [vmem:[#allocation6 + $0x24c] sm:$0xf] }
 0x189   :  { %4269 = vmatpush.bf16.msra.mxu1 %v6053_v35  ;;  %v7745_v57 = vor.u32 %v8723_v49, %v7744_v48  ;;  %4236 = vmatpush.bf16.msrb.mxu2 %v7393_v45  ;;  %v7712_v62 = vld [vmem:[#allocation6 + $0x1088] sm:$0xf]  ;;  %v3979_v35 = vadd.f32 %v3978_v1, %v3966_v22  ;;  %v8431_v45 = vld [vmem:[#allocation6 + $0x7cc] sm:$0xf]  ;;  %v5925_v49 = vor.u32 %v8263_v24, %v5922_v32 }
 0x18a   :  { %v8715_v63 = vld [vmem:[#allocation6 + $0x10a4] sm:$0xf0]  ;;  %4309 = vmatpush.bf16.msra.mxu0 %v6789_v20  ;;  %v8335_v48 = vld [vmem:[#allocation6 + $0x4cc] sm:$0xf]  ;;  %v6597_v56 = vor.u32 %v8431_v45, %v6594_v47 }
 0x18b   :  { %4246 = vmatpush.bf16.msra.mxu3 %v7745_v57  ;;  %v7713_v10 = vor.u32 %v8715_v63, %v7712_v62  ;;  %v7680_v15 = vld [vmem:[#allocation6 + $0x1048] sm:$0xf]  ;;  %v5890_v55 = vld [vmem:[#allocation6 + $0x268] sm:$0xf0] }
 0x18c   :  { %4237 = vmatmul.bf16.vlgmr.msrb.gmra.mxu2 %v9161_v34  ;;  %v8707_v16 = vld [vmem:[#allocation6 + $0x1064] sm:$0xf0]  ;;  %v8423_v61 = vld [vmem:[#allocation6 + $0x78c] sm:$0xf]  ;;  %v5893_v0 = vor.u32 %v8255_v54, %v5890_v55 }
 0x18d   :  { %4281 = vmatpush.bf16.msra.mxu2 %v6341_v50  ;;  %4270 = vmatpush.bf16.msra.mxu1 %v6021_v53  ;;  %v7681_v31 = vor.u32 %v8707_v16, %v7680_v15  ;;  %v7648_v36 = vld [vmem:[#allocation6 + $0x1008] sm:$0xf]  ;;  %v6210_v50 = vld [vmem:[#allocation6 + $0x4e8] sm:$0xf0]  ;;  %v9207_v57 = vpop.f32.mrf.mxu0 }
 0x18e   :  { %v8699_v37 = vld [vmem:[#allocation6 + $0x1024] sm:$0xf0]  ;;  %4310 = vmatpush.bf16.msra.mxu0 %v6757_v17  ;;  %v6213_v58 = vor.u32 %v8335_v48, %v6210_v50  ;;  %v6562_v62 = vld [vmem:[#allocation6 + $0x7a8] sm:$0xf0] }
 0x18f   :  { %4247 = vmatpush.bf16.msra.mxu3 %v7713_v10  ;;  %v7649_v53 = vor.u32 %v8699_v37, %v7648_v36  ;;  %v8327_v63 = vld [vmem:[#allocation6 + $0x48c] sm:$0xf]  ;;  %v4019_v9 = vpop.f32.mrf.mxu1  ;;  %v3991_v10 = vpop.f32.mrf.mxu3 }
 0x190   :  { %v6178_v1 = vld [vmem:[#allocation6 + $0x4a8] sm:$0xf0]  ;;  %v3992_v16 = vadd.f32 %v3991_v10, %v3979_v35 }
 0x191   :  { %4282 = vmatpush.bf16.msra.mxu2 %v6309_v2  ;;  %4271 = vmatpush.bf16.msra.mxu1 %v5989_v5  ;;  %v8455_v2 = vld [vmem:[#allocation6 + $0x88c] sm:$0xf]  ;;  %v6565_v5 = vor.u32 %v8423_v61, %v6562_v62  ;;  %v6181_v12 = vor.u32 %v8327_v63, %v6178_v1 }
 0x192   :  { %v6690_v3 = vld [vmem:[#allocation6 + $0x8a8] sm:$0xf0]  ;;  %4311 = vmatpush.bf16.msra.mxu0 %v6725_v59  ;;  %v4005_v29 = vadd.f32 %v9197_v44, %v3992_v16 }
 0x193   :  { %4248 = vmatpush.bf16.msra.mxu3 %v7681_v31  ;;  %v8247_v26 = vld [vmem:[#allocation6 + $0x20c] sm:$0xf]  ;;  %v6693_v13 = vor.u32 %v8455_v2, %v6690_v3 }
 0x194   :  { %v5858_v4 = vld [vmem:[#allocation6 + $0x228] sm:$0xf0]  ;;  %v9214_v17 = vadd.f32 %v9205_v38, %v4005_v29 }
 0x195   :  { %4283 = vmatpush.bf16.msra.mxu2 %v6277_v60  ;;  %4272 = vmatpush.bf16.msra.mxu1 %v5957_v23  ;;  %v8559_v7 = vld [vmem:[#allocation6 + $0xbcc] sm:$0xf]  ;;  %v9210_v60 = vpop.f32.mrf.mxu2  ;;  %v5861_v20 = vor.u32 %v8247_v26, %v5858_v4  ;;  %v4058_v36 = vpop.f32.mrf.mxu0  ;;  %v1009_v4 = vperm.slane %v9187_v11, 1 }
 0x196   :  { %v7106_v8 = vld [vmem:[#allocation6 + $0xbe8] sm:$0xf0]  ;;  %4312 = vmatpush.bf16.msra.mxu0 %v6693_v13 }
 0x197   :  { %4249 = vmatpush.bf16.msra.mxu3 %v7649_v53  ;;  %v8415_v6 = vld [vmem:[#allocation6 + $0x74c] sm:$0xf]  ;;  %v7109_v25 = vor.u32 %v8559_v7, %v7106_v8  ;;  %v3993_v55 = vpop.f32.mrf.mxu3  ;;  %v4031_v11 = vadd.f32 %v9210_v60, %v1009_v4 }
 0x198   :  { %v6530_v14 = vld [vmem:[#allocation6 + $0x768] sm:$0xf0] }
 0x199   :  { %4284 = vmatpush.bf16.msra.mxu2 %v6245_v43  ;;  %4273 = vmatpush.bf16.msra.mxu1 %v5925_v49  ;;  %v8319_v15 = vld [vmem:[#allocation6 + $0x44c] sm:$0xf]  ;;  %v6533_v30 = vor.u32 %v8415_v6, %v6530_v14 }
 0x19a   :  { %4250 = vmatmul.bf16.vlgmr.msra.gmra.mxu3 %v9167_v27  ;;  %v6146_v21 = vld [vmem:[#allocation6 + $0x468] sm:$0xf0] }
 0x19b   :  { %4294 = vmatpush.bf16.msrb.mxu3 %v6597_v56  ;;  %v8447_v22 = vld [vmem:[#allocation6 + $0x84c] sm:$0xf]  ;;  %v6149_v35 = vor.u32 %v8319_v15, %v6146_v21 }
 0x19c   :  { %v6658_v23 = vld [vmem:[#allocation6 + $0x868] sm:$0xf0] }
 0x19d   :  { %4285 = vmatpush.bf16.msra.mxu2 %v6213_v58  ;;  %4274 = vmatpush.bf16.msra.mxu1 %v5893_v0  ;;  %v8407_v31 = vld [vmem:[#allocation6 + $0x70c] sm:$0xf]  ;;  %v6661_v37 = vor.u32 %v8447_v22, %v6658_v23  ;;  %v4032_v61 = vpop.f32.mrf.mxu2 }
 0x19e   :  { %v8551_v24 = vld [vmem:[#allocation6 + $0xb8c] sm:$0xf] }
 0x19f   :  { %4295 = vmatpush.bf16.msrb.mxu3 %v6565_v5  ;;  %v7074_v32 = vld [vmem:[#allocation6 + $0xba8] sm:$0xf0]  ;;  %4313 = vmatpush.bf16.msra.mxu0 %v6661_v37 }
 0x1a0   :  { %v6498_v41 = vld [vmem:[#allocation6 + $0x728] sm:$0xf0]  ;;  %v7077_v48 = vor.u32 %v8551_v24, %v7074_v32 }
 0x1a1   :  { %4286 = vmatpush.bf16.msra.mxu2 %v6181_v12  ;;  %v8311_v42 = vld [vmem:[#allocation6 + $0x40c] sm:$0xf]  ;;  %4275 = vmatpush.bf16.msra.mxu1 %v5861_v20  ;;  %v6501_v52 = vor.u32 %v8407_v31, %v6498_v41 }
 0x1a2   :  { %v6114_v43 = vld [vmem:[#allocation6 + $0x428] sm:$0xf0] }
 0x1a3   :  { %v8439_v45 = vld [vmem:[#allocation6 + $0x80c] sm:$0xf]  ;;  %4296 = vmatpush.bf16.msrb.mxu3 %v6533_v30  ;;  %v6117_v56 = vor.u32 %v8311_v42, %v6114_v43 }
 0x1a4   :  { %v6626_v47 = vld [vmem:[#allocation6 + $0x828] sm:$0xf0]  ;;  %4276 = vmatmul.bf16.vlgmr.msra.gmra.mxu1 %v9144_v39 }
 0x1a5   :  { %v8623_v44 = vld [vmem:[#allocation6 + $0xdcc] sm:$0xf]  ;;  %4320 = vmatpush.bf16.msrb.mxu1 %v7109_v25  ;;  %4287 = vmatpush.bf16.msra.mxu2 %v6149_v35  ;;  %v6629_v58 = vor.u32 %v8439_v45, %v6626_v47  ;;  %v4043_v25 = vpop.f32.mrf.mxu3  ;;  %v4069_v35 = vpop.f32.mrf.mxu1 }
 0x1a6   :  { %v7362_v49 = vld [vmem:[#allocation6 + $0xde8] sm:$0xf0]  ;;  %v4044_v31 = vadd.f32 %v4043_v25, %v4031_v11  ;;  %v4082_v25 = vpop.f32.mrf.mxu2 }
 0x1a7   :  { %v8751_v50 = vld [vmem:[#allocation6 + $0x11cc] sm:$0xf]  ;;  %v7365_v62 = vor.u32 %v8623_v44, %v7362_v49  ;;  %4297 = vmatpush.bf16.msrb.mxu3 %v6501_v52  ;;  %4314 = vmatpush.bf16.msra.mxu0 %v6629_v58 }
 0x1a8   :  { %v7874_v51 = vld [vmem:[#allocation6 + $0x11e8] sm:$0xf0]  ;;  %v4057_v43 = vadd.f32 %v9207_v57, %v4044_v31 }
 0x1a9   :  { %v8543_v53 = vld [vmem:[#allocation6 + $0xb4c] sm:$0xf]  ;;  %v7877_v63 = vor.u32 %v8751_v50, %v7874_v51  ;;  %4321 = vmatpush.bf16.msrb.mxu1 %v7077_v48  ;;  %4288 = vmatpush.bf16.msra.mxu2 %v6117_v56 }
 0x1aa   :  { %v7042_v54 = vld [vmem:[#allocation6 + $0xb68] sm:$0xf0]  ;;  %4315 = vmatmul.bf16.vlgmr.msra.gmra.mxu0 %v9154_v18  ;;  %v4070_v50 = vadd.f32 %v4069_v35, %v4057_v43 }
 0x1ab   :  { %v8399_v38 = vld [vmem:[#allocation6 + $0x6cc] sm:$0xf]  ;;  %v7045_v1 = vor.u32 %v8543_v53, %v7042_v54  ;;  %4359 = vmatpush.bf16.msrb.mxu0 %v7877_v63 }
 0x1ac   :  { %v6466_v59 = vld [vmem:[#allocation6 + $0x6e8] sm:$0xf0]  ;;  %4289 = vmatmul.bf16.vlgmr.msra.gmra.mxu2 %v9159_v33 }
 0x1ad   :  { %v8615_v0 = vld [vmem:[#allocation6 + $0xd8c] sm:$0xf]  ;;  %v6469_v5 = vor.u32 %v8399_v38, %v6466_v59  ;;  %4333 = vmatpush.bf16.msrb.mxu2 %v7365_v62  ;;  %4322 = vmatpush.bf16.msrb.mxu1 %v7045_v1  ;;  %v4045_v63 = vpop.f32.mrf.mxu3  ;;  %v9222_v1 = vpop.f32.mrf.mxu0 }
 0x1ae   :  { %v7330_v2 = vld [vmem:[#allocation6 + $0xda8] sm:$0xf0]  ;;  %v4084_v63 = vpop.f32.mrf.mxu2 }
 0x1af   :  { %v8743_v3 = vld [vmem:[#allocation6 + $0x118c] sm:$0xf]  ;;  %v7333_v12 = vor.u32 %v8615_v0, %v7330_v2  ;;  %4298 = vmatpush.bf16.msrb.mxu3 %v6469_v5 }
 0x1b0   :  { %v7842_v26 = vld [vmem:[#allocation6 + $0x11a8] sm:$0xf0] }
 0x1b1   :  { %v8535_v7 = vld [vmem:[#allocation6 + $0xb0c] sm:$0xf]  ;;  %v7845_v13 = vor.u32 %v8743_v3, %v7842_v26  ;;  %4334 = vmatpush.bf16.msrb.mxu2 %v7333_v12 }
 0x1b2   :  { %v7010_v8 = vld [vmem:[#allocation6 + $0xb28] sm:$0xf0] }
 0x1b3   :  { %v8391_v9 = vld [vmem:[#allocation6 + $0x68c] sm:$0xf]  ;;  %v7013_v14 = vor.u32 %v8535_v7, %v7010_v8  ;;  %4360 = vmatpush.bf16.msrb.mxu0 %v7845_v13  ;;  %v4071_v7 = vpop.f32.mrf.mxu1 }
 0x1b4   :  { %v6434_v10 = vld [vmem:[#allocation6 + $0x6a8] sm:$0xf0]  ;;  %v8428_v7 = vld [vmem:[#allocation6 + $0x7ac] sm:$0xf0] }
 0x1b5   :  { %v8607_v6 = vld [vmem:[#allocation6 + $0xd4c] sm:$0xf]  ;;  %v6437_v21 = vor.u32 %v8391_v9, %v6434_v10  ;;  %4323 = vmatpush.bf16.msrb.mxu1 %v7013_v14 }
 0x1b6   :  { %v7298_v15 = vld [vmem:[#allocation6 + $0xd68] sm:$0xf0] }
 0x1b7   :  { %v8735_v16 = vld [vmem:[#allocation6 + $0x114c] sm:$0xf]  ;;  %v7301_v24 = vor.u32 %v8607_v6, %v7298_v15  ;;  %4299 = vmatpush.bf16.msrb.mxu3 %v6437_v21  ;;  %v5832_v15 = vld [vmem:[#allocation6 + $0x1d0] sm:$0xf] }
 0x1b8   :  { %v7810_v20 = vld [vmem:[#allocation6 + $0x1168] sm:$0xf0] }
 0x1b9   :  { %v8527_v22 = vld [vmem:[#allocation6 + $0xacc] sm:$0xf]  ;;  %v7813_v32 = vor.u32 %v8735_v16, %v7810_v20  ;;  %4335 = vmatpush.bf16.msrb.mxu2 %v7301_v24  ;;  %v8244_v16 = vld [vmem:[#allocation6 + $0x1ec] sm:$0xf0] }
 0x1ba   :  { %v6978_v23 = vld [vmem:[#allocation6 + $0xae8] sm:$0xf0] }
 0x1bb   :  { %v8383_v29 = vld [vmem:[#allocation6 + $0x64c] sm:$0xf]  ;;  %v6981_v60 = vor.u32 %v8527_v22, %v6978_v23  ;;  %4361 = vmatpush.bf16.msrb.mxu0 %v7813_v32  ;;  %v9225_v32 = vadd.f32 %v4082_v25, %v4070_v50  ;;  %v8212_v25 = vld [vmem:[#allocation6 + $0xec] sm:$0xf0] }
 0x1bc   :  { %v6402_v30 = vld [vmem:[#allocation6 + $0x668] sm:$0xf0] }
 0x1bd   :  { %v8599_v36 = vld [vmem:[#allocation6 + $0xd0c] sm:$0xf]  ;;  %v6405_v45 = vor.u32 %v8383_v29, %v6402_v30  ;;  %4324 = vmatpush.bf16.msrb.mxu1 %v6981_v60 }
 0x1be   :  { %v7266_v37 = vld [vmem:[#allocation6 + $0xd28] sm:$0xf0] }
 0x1bf   :  { %v8727_v41 = vld [vmem:[#allocation6 + $0x110c] sm:$0xf]  ;;  %v7269_v51 = vor.u32 %v8599_v36, %v7266_v37  ;;  %4300 = vmatpush.bf16.msrb.mxu3 %v6405_v45  ;;  %v5833_v36 = vor.u32 %v8244_v16, %v5832_v15  ;;  %v5800_v37 = vld [vmem:[#allocation6 + $0x190] sm:$0xf] }
 0x1c0   :  { %v7778_v42 = vld [vmem:[#allocation6 + $0x1128] sm:$0xf0]  ;;  %v6024_v15 = vld [vmem:[#allocation6 + $0x350] sm:$0xf] }
 0x1c1   :  { %v8519_v47 = vld [vmem:[#allocation6 + $0xa8c] sm:$0xf]  ;;  %v7781_v52 = vor.u32 %v8727_v41, %v7778_v42  ;;  %4336 = vmatpush.bf16.msrb.mxu2 %v7269_v51  ;;  %v8236_v41 = vld [vmem:[#allocation6 + $0x1ac] sm:$0xf0]  ;;  %v4110_v42 = vpop.f32.mrf.mxu0 }
 0x1c2   :  { %v6946_v44 = vld [vmem:[#allocation6 + $0xaa8] sm:$0xf0]  ;;  %v5801_v50 = vor.u32 %v8236_v41, %v5800_v37  ;;  %v4121_v37 = vpop.f32.mrf.mxu1  ;;  %v8284_v42 = vld [vmem:[#allocation6 + $0x32c] sm:$0xf0] }
 0x1c3   :  { %v8375_v48 = vld [vmem:[#allocation6 + $0x60c] sm:$0xf]  ;;  %v6949_v56 = vor.u32 %v8519_v47, %v6946_v44  ;;  %4362 = vmatpush.bf16.msrb.mxu0 %v7781_v52  ;;  %v6088_v52 = vld [vmem:[#allocation6 + $0x3d0] sm:$0xf] }
 0x1c4   :  { %v6370_v49 = vld [vmem:[#allocation6 + $0x628] sm:$0xf0] }
 0x1c5   :  { %v8687_v53 = vld [vmem:[#allocation6 + $0xfcc] sm:$0xf]  ;;  %v6373_v57 = vor.u32 %v8375_v48, %v6370_v49  ;;  %4325 = vmatpush.bf16.msrb.mxu1 %v6949_v56 }
 0x1c6   :  { %v7618_v54 = vld [vmem:[#allocation6 + $0xfe8] sm:$0xf0] }
 0x1c7   :  { %v8591_v55 = vld [vmem:[#allocation6 + $0xccc] sm:$0xf]  ;;  %v7621_v0 = vor.u32 %v8687_v53, %v7618_v54  ;;  %4301 = vmatpush.bf16.msrb.mxu3 %v6373_v57  ;;  %v8308_v53 = vld [vmem:[#allocation6 + $0x3ec] sm:$0xf0] }
 0x1c8   :  { %v7234_v58 = vld [vmem:[#allocation6 + $0xce8] sm:$0xf0]  ;;  %v6600_v54 = vld [vmem:[#allocation6 + $0x7d0] sm:$0xf] }
 0x1c9   :  { %v8719_v38 = vld [vmem:[#allocation6 + $0x10cc] sm:$0xf]  ;;  %v7237_v2 = vor.u32 %v8591_v55, %v7234_v58  ;;  %v8436_v55 = vld [vmem:[#allocation6 + $0x7ec] sm:$0xf0] }
 0x1ca   :  { %v7746_v59 = vld [vmem:[#allocation6 + $0x10e8] sm:$0xf0]  ;;  %4302 = vmatmul.bf16.vlgmr.msrb.gmra.mxu3 %v9146_v40  ;;  %v5768_v58 = vld [vmem:[#allocation6 + $0x150] sm:$0xf] }
 0x1cb   :  { %v8511_v61 = vld [vmem:[#allocation6 + $0xa4c] sm:$0xf]  ;;  %v7749_v3 = vor.u32 %v8719_v38, %v7746_v59  ;;  %4346 = vmatpush.bf16.msra.mxu3 %v7621_v0  ;;  %4337 = vmatpush.bf16.msrb.mxu2 %v7237_v2  ;;  %v8228_v38 = vld [vmem:[#allocation6 + $0x16c] sm:$0xf0]  ;;  %v6089_v0 = vor.u32 %v8308_v53, %v6088_v52  ;;  %v6601_v2 = vor.u32 %v8436_v55, %v6600_v54 }
 0x1cc   :  { %v6914_v62 = vld [vmem:[#allocation6 + $0xa68] sm:$0xf0]  ;;  %v6344_v54 = vld [vmem:[#allocation6 + $0x5d0] sm:$0xf] }
 0x1cd   :  { %v8679_v26 = vld [vmem:[#allocation6 + $0xf8c] sm:$0xf]  ;;  %v6917_v8 = vor.u32 %v8511_v61, %v6914_v62  ;;  %4363 = vmatpush.bf16.msrb.mxu0 %v7749_v3  ;;  %v6056_v3 = vld [vmem:[#allocation6 + $0x390] sm:$0xf] }
 0x1ce   :  { %v7586_v4 = vld [vmem:[#allocation6 + $0xfa8] sm:$0xf0]  ;;  %v8372_v55 = vld [vmem:[#allocation6 + $0x5ec] sm:$0xf0] }
 0x1cf   :  { %v8583_v5 = vld [vmem:[#allocation6 + $0xc8c] sm:$0xf]  ;;  %v7589_v14 = vor.u32 %v8679_v26, %v7586_v4  ;;  %4326 = vmatpush.bf16.msrb.mxu1 %v6917_v8  ;;  %v5769_v26 = vor.u32 %v8228_v38, %v5768_v58  ;;  %v8300_v4 = vld [vmem:[#allocation6 + $0x3ac] sm:$0xf0] }
 0x1d0   :  { %v7202_v9 = vld [vmem:[#allocation6 + $0xca8] sm:$0xf0]  ;;  %v8276_v38 = vld [vmem:[#allocation6 + $0x2ec] sm:$0xf0] }
 0x1d1   :  { %v8711_v10 = vld [vmem:[#allocation6 + $0x108c] sm:$0xf]  ;;  %v7205_v20 = vor.u32 %v8583_v5, %v7202_v9  ;;  %4347 = vmatpush.bf16.msra.mxu3 %v7589_v14  ;;  %v6568_v5 = vld [vmem:[#allocation6 + $0x790] sm:$0xf] }
 0x1d2   :  { %v7714_v12 = vld [vmem:[#allocation6 + $0x10a8] sm:$0xf0]  ;;  %v5736_v9 = vld [vmem:[#allocation6 + $0x110] sm:$0xf]  ;;  %v6569_v14 = vor.u32 %v8428_v7, %v6568_v5 }
 0x1d3   :  { %v8503_v13 = vld [vmem:[#allocation6 + $0xa0c] sm:$0xf]  ;;  %v7717_v11 = vor.u32 %v8711_v10, %v7714_v12  ;;  %4338 = vmatpush.bf16.msrb.mxu2 %v7205_v20  ;;  %v8220_v10 = vld [vmem:[#allocation6 + $0x12c] sm:$0xf0] }
 0x1d4   :  { %v6882_v6 = vld [vmem:[#allocation6 + $0xa28] sm:$0xf0]  ;;  %v5737_v16 = vor.u32 %v8220_v10, %v5736_v9  ;;  %v8292_v20 = vld [vmem:[#allocation6 + $0x36c] sm:$0xf0] }
 0x1d5   :  { %v8671_v21 = vld [vmem:[#allocation6 + $0xf4c] sm:$0xf]  ;;  %v6885_v29 = vor.u32 %v8503_v13, %v6882_v6  ;;  %4364 = vmatpush.bf16.msrb.mxu0 %v7717_v11  ;;  %v6057_v6 = vor.u32 %v8300_v4, %v6056_v3  ;;  %v6536_v11 = vld [vmem:[#allocation6 + $0x750] sm:$0xf] }
 0x1d6   :  { %v7554_v22 = vld [vmem:[#allocation6 + $0xf68] sm:$0xf0]  ;;  %v6312_v4 = vld [vmem:[#allocation6 + $0x590] sm:$0xf] }
 0x1d7   :  { %v8575_v23 = vld [vmem:[#allocation6 + $0xc4c] sm:$0xf]  ;;  %v7557_v35 = vor.u32 %v8671_v21, %v7554_v22  ;;  %4327 = vmatpush.bf16.msrb.mxu1 %v6885_v29  ;;  %v8420_v21 = vld [vmem:[#allocation6 + $0x76c] sm:$0xf0]  ;;  %v4095_v29 = vpop.f32.mrf.mxu3 }
 0x1d8   :  { %v7170_v30 = vld [vmem:[#allocation6 + $0xc68] sm:$0xf0]  ;;  %v8364_v5 = vld [vmem:[#allocation6 + $0x5ac] sm:$0xf0] }
 0x1d9   :  { %v8703_v31 = vld [vmem:[#allocation6 + $0x104c] sm:$0xf]  ;;  %v7173_v43 = vor.u32 %v8575_v23, %v7170_v30  ;;  %4348 = vmatpush.bf16.msra.mxu3 %v7557_v35  ;;  %v5704_v23 = vld [vmem:[#allocation6 + $0xd0] sm:$0xf]  ;;  %v6537_v35 = vor.u32 %v8420_v21, %v6536_v11 }
 0x1da   :  { %v7682_v24 = vld [vmem:[#allocation6 + $0x1068] sm:$0xf0]  ;;  %4328 = vmatmul.bf16.vlgmr.msrb.gmra.mxu1 %v9156_v28  ;;  %v5705_v41 = vor.u32 %v8212_v25, %v5704_v23  ;;  %v5928_v7 = vld [vmem:[#allocation6 + $0x290] sm:$0xf] }
 0x1db   :  { %v8663_v60 = vld [vmem:[#allocation6 + $0xf0c] sm:$0xf]  ;;  %v7685_v45 = vor.u32 %v8703_v31, %v7682_v24  ;;  %4372 = vmatpush.bf16.msra.mxu1 %v5833_v36  ;;  %4339 = vmatpush.bf16.msrb.mxu2 %v7173_v43  ;;  %v4096_v24 = vadd.f32 %v4095_v29, %v9225_v32  ;;  %v6025_v36 = vor.u32 %v8292_v20, %v6024_v15  ;;  %v6504_v43 = vld [vmem:[#allocation6 + $0x710] sm:$0xf]  ;;  %v4134_v29 = vpop.f32.mrf.mxu2 }
 0x1dc   :  { %v7522_v47 = vld [vmem:[#allocation6 + $0xf28] sm:$0xf0]  ;;  %v8268_v10 = vld [vmem:[#allocation6 + $0x2ac] sm:$0xf0]  ;;  %v6313_v15 = vor.u32 %v8364_v5, %v6312_v4 }
 0x1dd   :  { %v8567_v44 = vld [vmem:[#allocation6 + $0xc0c] sm:$0xf]  ;;  %v7525_v56 = vor.u32 %v8663_v60, %v7522_v47  ;;  %4365 = vmatpush.bf16.msrb.mxu0 %v7685_v45  ;;  %v5992_v60 = vld [vmem:[#allocation6 + $0x310] sm:$0xf]  ;;  %v4109_v47 = vadd.f32 %v9222_v1, %v4096_v24  ;;  %v5929_v11 = vor.u32 %v8268_v10, %v5928_v7 }
 0x1de   :  { %v7138_v48 = vld [vmem:[#allocation6 + $0xc28] sm:$0xf0]  ;;  %v8412_v45 = vld [vmem:[#allocation6 + $0x72c] sm:$0xf0] }
 0x1df   :  { %v8695_v49 = vld [vmem:[#allocation6 + $0x100c] sm:$0xf]  ;;  %v7141_v59 = vor.u32 %v8567_v44, %v7138_v48  ;;  %4373 = vmatpush.bf16.msra.mxu1 %v5801_v50  ;;  %4349 = vmatpush.bf16.msra.mxu3 %v7525_v56  ;;  %v5672_v48 = vld [vmem:[#allocation6 + $0x90] sm:$0xf]  ;;  %v4122_v32 = vadd.f32 %v4121_v37, %v4109_v47  ;;  %v5993_v50 = vor.u32 %v8284_v42, %v5992_v60  ;;  %v4097_v63 = vpop.f32.mrf.mxu3 }
 0x1e0   :  { %v7650_v51 = vld [vmem:[#allocation6 + $0x1028] sm:$0xf0]  ;;  %v6505_v53 = vor.u32 %v8412_v45, %v6504_v43  ;;  %v5960_v56 = vld [vmem:[#allocation6 + $0x2d0] sm:$0xf] }
 0x1e1   :  { %v7653_v57 = vor.u32 %v8695_v49, %v7650_v51  ;;  %v8655_v61 = vld [vmem:[#allocation6 + $0xecc] sm:$0xf]  ;;  %4340 = vmatpush.bf16.msrb.mxu2 %v7141_v59  ;;  %v8204_v49 = vld [vmem:[#allocation6 + $0xac] sm:$0xf0]  ;;  %v5961_v3 = vor.u32 %v8276_v38, %v5960_v56 }
 0x1e2   :  { %v7490_v62 = vld [vmem:[#allocation6 + $0xee8] sm:$0xf0]  ;;  %v5673_v58 = vor.u32 %v8204_v49, %v5672_v48  ;;  %v6472_v59 = vld [vmem:[#allocation6 + $0x6d0] sm:$0xf] }
 0x1e3   :  { %v7493_v8 = vor.u32 %v8655_v61, %v7490_v62  ;;  %4366 = vmatpush.bf16.msrb.mxu0 %v7653_v57  ;;  %v8647_v12 = vld [vmem:[#allocation6 + $0xe8c] sm:$0xf]  ;;  %4374 = vmatpush.bf16.msra.mxu1 %v5769_v26  ;;  %v8404_v57 = vld [vmem:[#allocation6 + $0x6ec] sm:$0xf0]  ;;  %v4136_v63 = vpop.f32.mrf.mxu2 }
 0x1e4   :  { %v7458_v13 = vld [vmem:[#allocation6 + $0xea8] sm:$0xf0]  ;;  %4341 = vmatmul.bf16.vlgmr.msrb.gmra.mxu2 %v9170_v46  ;;  %v5640_v61 = vld [vmem:[#allocation6 + $0x50] sm:$0xf]  ;;  %v6473_v26 = vor.u32 %v8404_v57, %v6472_v59 }
 0x1e5   :  { %4385 = vmatpush.bf16.msra.mxu2 %v6089_v0  ;;  %4350 = vmatpush.bf16.msra.mxu3 %v7493_v8  ;;  %v7461_v22 = vor.u32 %v8647_v12, %v7458_v13  ;;  %v8639_v30 = vld [vmem:[#allocation6 + $0xe4c] sm:$0xf]  ;;  %v8196_v62 = vld [vmem:[#allocation6 + $0x6c] sm:$0xf0]  ;;  %v6345_v0 = vor.u32 %v8372_v55, %v6344_v54  ;;  %v4123_v8 = vpop.f32.mrf.mxu1 }
 0x1e6   :  { %4367 = vmatmul.bf16.vlgmr.msrb.gmra.mxu0 %v9167_v27  ;;  %v7426_v31 = vld [vmem:[#allocation6 + $0xe68] sm:$0xf0]  ;;  %v5641_v9 = vor.u32 %v8196_v62, %v5640_v61  ;;  %v6440_v12 = vld [vmem:[#allocation6 + $0x690] sm:$0xf] }
 0x1e7   :  { %4411 = vmatpush.bf16.msra.mxu0 %v6601_v2  ;;  %4375 = vmatpush.bf16.msra.mxu1 %v5737_v16  ;;  %v7429_v44 = vor.u32 %v8639_v30, %v7426_v31  ;;  %v8631_v51 = vld [vmem:[#allocation6 + $0xe0c] sm:$0xf]  ;;  %v9232_v2 = vpop.f32.mrf.mxu0  ;;  %v8396_v13 = vld [vmem:[#allocation6 + $0x6ac] sm:$0xf0] }
 0x1e8   :  { %v7394_v52 = vld [vmem:[#allocation6 + $0xe28] sm:$0xf0]  ;;  %v6856_v16 = vld [vmem:[#allocation6 + $0x9d0] sm:$0xf]  ;;  %v6441_v21 = vor.u32 %v8396_v13, %v6440_v12 }
 0x1e9   :  { %4386 = vmatpush.bf16.msra.mxu2 %v6057_v6  ;;  %4351 = vmatpush.bf16.msra.mxu3 %v7461_v22  ;;  %v7397_v1 = vor.u32 %v8631_v51, %v7394_v52  ;;  %v5608_v6 = vld [vmem:[#allocation6 + $0x10] sm:$0xf] }
 0x1ea   :  { %v8500_v20 = vld [vmem:[#allocation6 + $0x9ec] sm:$0xf0] }
 0x1eb   :  { %4412 = vmatpush.bf16.msra.mxu0 %v6569_v14  ;;  %4376 = vmatpush.bf16.msra.mxu1 %v5705_v41  ;;  %v8188_v14 = vld [vmem:[#allocation6 + $0x2c] sm:$0xf0]  ;;  %v6857_v60 = vor.u32 %v8500_v20, %v6856_v16 }
 0x1ec   :  { %v6280_v22 = vld [vmem:[#allocation6 + $0x550] sm:$0xf]  ;;  %v5609_v30 = vor.u32 %v8188_v14, %v5608_v6  ;;  %v9238_v14 = vld [vmem:[#allocation7] sm:$0xff] }
 0x1ed   :  { %4387 = vmatpush.bf16.msra.mxu2 %v6025_v36  ;;  %4352 = vmatpush.bf16.msra.mxu3 %v7429_v44  ;;  %v8356_v23 = vld [vmem:[#allocation6 + $0x56c] sm:$0xf0] }
 0x1ee   :  { %v5896_v25 = vld [vmem:[#allocation6 + $0x250] sm:$0xf]  ;;  %v6281_v37 = vor.u32 %v8356_v23, %v6280_v22 }
 0x1ef   :  { %4413 = vmatpush.bf16.msra.mxu0 %v6537_v35  ;;  %4377 = vmatpush.bf16.msra.mxu1 %v5673_v58  ;;  %v8260_v31 = vld [vmem:[#allocation6 + $0x26c] sm:$0xf0]  ;;  %v9235_v35 = vadd.f32 %v4134_v29, %v4122_v32  ;;  %v4162_v45 = vpop.f32.mrf.mxu0 }
 0x1f0   :  { %v6408_v24 = vld [vmem:[#allocation6 + $0x650] sm:$0xf]  ;;  %v5897_v47 = vor.u32 %v8260_v31, %v5896_v25  ;;  %v4173_v45 = vpop.f32.mrf.mxu1 }
 0x1f1   :  { %4388 = vmatpush.bf16.msra.mxu2 %v5993_v50  ;;  %4353 = vmatpush.bf16.msra.mxu3 %v7397_v1  ;;  %v8388_v36 = vld [vmem:[#allocation6 + $0x66c] sm:$0xf0] }
 0x1f2   :  { %v6248_v41 = vld [vmem:[#allocation6 + $0x510] sm:$0xf]  ;;  %v6409_v44 = vor.u32 %v8388_v36, %v6408_v24  ;;  %v4147_v24 = vpop.f32.mrf.mxu3 }
 0x1f3   :  { %4414 = vmatpush.bf16.msra.mxu0 %v6505_v53  ;;  %4378 = vmatpush.bf16.msra.mxu1 %v5641_v9  ;;  %v6824_v42 = vld [vmem:[#allocation6 + $0x990] sm:$0xf] }
 0x1f4   :  { %4354 = vmatmul.bf16.vlgmr.msra.gmra.mxu3 %v9161_v34  ;;  %v8492_v43 = vld [vmem:[#allocation6 + $0x9ac] sm:$0xf0] }
 0x1f5   :  { %4398 = vmatpush.bf16.msrb.mxu3 %v6345_v0  ;;  %4389 = vmatpush.bf16.msra.mxu2 %v5961_v3  ;;  %v8348_v48 = vld [vmem:[#allocation6 + $0x52c] sm:$0xf0]  ;;  %v6825_v32 = vor.u32 %v8492_v43, %v6824_v42 }
 0x1f6   :  { %v5864_v49 = vld [vmem:[#allocation6 + $0x210] sm:$0xf]  ;;  %v6249_v58 = vor.u32 %v8348_v48, %v6248_v41 }
 0x1f7   :  { %4415 = vmatpush.bf16.msra.mxu0 %v6473_v26  ;;  %v8252_v51 = vld [vmem:[#allocation6 + $0x22c] sm:$0xf0]  ;;  %4379 = vmatpush.bf16.msra.mxu1 %v5609_v30 }
 0x1f8   :  { %v6376_v52 = vld [vmem:[#allocation6 + $0x610] sm:$0xf]  ;;  %v5865_v57 = vor.u32 %v8252_v51, %v5864_v49 }
 0x1f9   :  { %4399 = vmatpush.bf16.msrb.mxu3 %v6313_v15  ;;  %4390 = vmatpush.bf16.msra.mxu2 %v5929_v11  ;;  %v8380_v50 = vld [vmem:[#allocation6 + $0x62c] sm:$0xf0]  ;;  %v1010_v15 = vperm.slane %v9238_v14, 2 }
 0x1fa   :  { %v7112_v53 = vld [vmem:[#allocation6 + $0xbd0] sm:$0xf]  ;;  %v6377_v1 = vor.u32 %v8380_v50, %v6376_v52  ;;  %4380 = vmatmul.bf16.vlgmr.msra.gmra.mxu1 %v9141_v19 }
 0x1fb   :  { %4416 = vmatpush.bf16.msra.mxu0 %v6441_v21  ;;  %4424 = vmatpush.bf16.msrb.mxu1 %v6857_v60  ;;  %v8564_v54 = vld [vmem:[#allocation6 + $0xbec] sm:$0xf0] }
 0x1fc   :  { %v7624_v55 = vld [vmem:[#allocation6 + $0xfd0] sm:$0xf]  ;;  %v7113_v0 = vor.u32 %v8564_v54, %v7112_v53 }
 0x1fd   :  { %v8692_v56 = vld [vmem:[#allocation6 + $0xfec] sm:$0xf0]  ;;  %4400 = vmatpush.bf16.msrb.mxu3 %v6281_v37  ;;  %4391 = vmatpush.bf16.msra.mxu2 %v5897_v47  ;;  %v4148_v37 = vadd.f32 %v4147_v24, %v1010_v15 }
 0x1fe   :  { %v6792_v38 = vld [vmem:[#allocation6 + $0x950] sm:$0xf]  ;;  %v7625_v3 = vor.u32 %v8692_v56, %v7624_v55 }
 0x1ff   :  { %v8484_v59 = vld [vmem:[#allocation6 + $0x96c] sm:$0xf0]  ;;  %4417 = vmatpush.bf16.msra.mxu0 %v6409_v44  ;;  %4425 = vmatpush.bf16.msrb.mxu1 %v6825_v32  ;;  %v4161_v51 = vadd.f32 %v9232_v2, %v4148_v37 }
 0x200   :  { %v6216_v61 = vld [vmem:[#allocation6 + $0x4d0] sm:$0xf]  ;;  %v6793_v4 = vor.u32 %v8484_v59, %v6792_v38 }
 0x201   :  { %v8340_v62 = vld [vmem:[#allocation6 + $0x4ec] sm:$0xf0]  ;;  %4401 = vmatpush.bf16.msrb.mxu3 %v6249_v58  ;;  %4392 = vmatpush.bf16.msra.mxu2 %v5865_v57  ;;  %v4174_v55 = vadd.f32 %v4173_v45, %v4161_v51 }
 0x202   :  { %v7080_v26 = vld [vmem:[#allocation6 + $0xb90] sm:$0xf]  ;;  %v6217_v9 = vor.u32 %v8340_v62, %v6216_v61 }
 0x203   :  { %v8556_v5 = vld [vmem:[#allocation6 + $0xbac] sm:$0xf0]  ;;  %4418 = vmatpush.bf16.msra.mxu0 %v6377_v1  ;;  %4426 = vmatpush.bf16.msrb.mxu1 %v6793_v4 }
 0x204   :  { %v7592_v7 = vld [vmem:[#allocation6 + $0xf90] sm:$0xf]  ;;  %v7081_v16 = vor.u32 %v8556_v5, %v7080_v26  ;;  %4393 = vmatmul.bf16.vlgmr.msra.gmra.mxu2 %v9144_v39  ;;  %v4149_v26 = vpop.f32.mrf.mxu3  ;;  %v9244_v5 = vpop.f32.mrf.mxu0 }
 0x205   :  { %v8684_v8 = vld [vmem:[#allocation6 + $0xfac] sm:$0xf0]  ;;  %4437 = vmatpush.bf16.msrb.mxu2 %v7113_v0  ;;  %4402 = vmatpush.bf16.msrb.mxu3 %v6217_v9 }
 0x206   :  { %v6760_v10 = vld [vmem:[#allocation6 + $0x910] sm:$0xf]  ;;  %v7593_v20 = vor.u32 %v8684_v8, %v7592_v7  ;;  %4419 = vmatmul.bf16.vlgmr.msra.gmra.mxu0 %v9146_v40 }
 0x207   :  { %v8476_v12 = vld [vmem:[#allocation6 + $0x92c] sm:$0xf0]  ;;  %4463 = vmatpush.bf16.msrb.mxu0 %v7625_v3 }
 0x208   :  { %v6184_v13 = vld [vmem:[#allocation6 + $0x490] sm:$0xf]  ;;  %v6761_v21 = vor.u32 %v8476_v12, %v6760_v10 }
 0x209   :  { %v8332_v6 = vld [vmem:[#allocation6 + $0x4ac] sm:$0xf0]  ;;  %4438 = vmatpush.bf16.msrb.mxu2 %v7081_v16 }
 0x20a   :  { %v7048_v11 = vld [vmem:[#allocation6 + $0xb50] sm:$0xf]  ;;  %v6185_v29 = vor.u32 %v8332_v6, %v6184_v13  ;;  %4427 = vmatpush.bf16.msrb.mxu1 %v6761_v21  ;;  %v4175_v13 = vpop.f32.mrf.mxu1 }
 0x20b   :  { %v8548_v22 = vld [vmem:[#allocation6 + $0xb6c] sm:$0xf0]  ;;  %4464 = vmatpush.bf16.msrb.mxu0 %v7593_v20  ;;  %v5802_v13 = vld [vmem:[#allocation6 + $0x1b0] sm:$0xf0] }
 0x20c   :  { %v7560_v23 = vld [vmem:[#allocation6 + $0xf50] sm:$0xf]  ;;  %v7049_v41 = vor.u32 %v8548_v22, %v7048_v11  ;;  %4403 = vmatpush.bf16.msrb.mxu3 %v6185_v29 }
 0x20d   :  { %v8676_v25 = vld [vmem:[#allocation6 + $0xf6c] sm:$0xf0] }
 0x20e   :  { %v6728_v30 = vld [vmem:[#allocation6 + $0x8d0] sm:$0xf]  ;;  %v7561_v42 = vor.u32 %v8676_v25, %v7560_v23  ;;  %4439 = vmatpush.bf16.msrb.mxu2 %v7049_v41 }
 0x20f   :  { %v8468_v31 = vld [vmem:[#allocation6 + $0x8ec] sm:$0xf0] }
 0x210   :  { %v6152_v36 = vld [vmem:[#allocation6 + $0x450] sm:$0xf]  ;;  %v6729_v47 = vor.u32 %v8468_v31, %v6728_v30  ;;  %4465 = vmatpush.bf16.msrb.mxu0 %v7561_v42 }
 0x211   :  { %v8324_v60 = vld [vmem:[#allocation6 + $0x46c] sm:$0xf0] }
 0x212   :  { %v7016_v43 = vld [vmem:[#allocation6 + $0xb10] sm:$0xf]  ;;  %v6153_v52 = vor.u32 %v8324_v60, %v6152_v36  ;;  %4428 = vmatpush.bf16.msrb.mxu1 %v6729_v47  ;;  %v4186_v60 = vpop.f32.mrf.mxu2 }
 0x213   :  { %v8540_v44 = vld [vmem:[#allocation6 + $0xb2c] sm:$0xf0]  ;;  %v9247_v45 = vadd.f32 %v4186_v60, %v4174_v55 }
 0x214   :  { %v7528_v48 = vld [vmem:[#allocation6 + $0xf10] sm:$0xf]  ;;  %v7017_v56 = vor.u32 %v8540_v44, %v7016_v43  ;;  %4404 = vmatpush.bf16.msrb.mxu3 %v6153_v52  ;;  %v4214_v52 = vpop.f32.mrf.mxu0 }
 0x215   :  { %v8668_v49 = vld [vmem:[#allocation6 + $0xf2c] sm:$0xf0]  ;;  %v4225_v52 = vpop.f32.mrf.mxu1 }
 0x216   :  { %v6696_v50 = vld [vmem:[#allocation6 + $0x890] sm:$0xf]  ;;  %v7529_v58 = vor.u32 %v8668_v49, %v7528_v48  ;;  %4440 = vmatpush.bf16.msrb.mxu2 %v7017_v56 }
 0x217   :  { %v8460_v53 = vld [vmem:[#allocation6 + $0x8ac] sm:$0xf0] }
 0x218   :  { %v6120_v32 = vld [vmem:[#allocation6 + $0x410] sm:$0xf]  ;;  %v6697_v1 = vor.u32 %v8460_v53, %v6696_v50  ;;  %4466 = vmatpush.bf16.msrb.mxu0 %v7529_v58 }
 0x219   :  { %v8316_v54 = vld [vmem:[#allocation6 + $0x42c] sm:$0xf0] }
 0x21a   :  { %v7368_v38 = vld [vmem:[#allocation6 + $0xdd0] sm:$0xf]  ;;  %v6121_v2 = vor.u32 %v8316_v54, %v6120_v32  ;;  %4429 = vmatpush.bf16.msrb.mxu1 %v6697_v1  ;;  %v8368_v1 = vld [vmem:[#allocation6 + $0x5d4] sm:$0xf] }
 0x21b   :  { %v8628_v59 = vld [vmem:[#allocation6 + $0xdec] sm:$0xf0] }
 0x21c   :  { %v6984_v57 = vld [vmem:[#allocation6 + $0xad0] sm:$0xf]  ;;  %v7369_v4 = vor.u32 %v8628_v59, %v7368_v38  ;;  %4405 = vmatpush.bf16.msrb.mxu3 %v6121_v2  ;;  %v8240_v59 = vld [vmem:[#allocation6 + $0x1d4] sm:$0xf] }
 0x21d   :  { %v8532_v61 = vld [vmem:[#allocation6 + $0xaec] sm:$0xf0] }
 0x21e   :  { %v7496_v62 = vld [vmem:[#allocation6 + $0xed0] sm:$0xf]  ;;  %v6985_v7 = vor.u32 %v8532_v61, %v6984_v57  ;;  %v5834_v57 = vld [vmem:[#allocation6 + $0x1f0] sm:$0xf0] }
 0x21f   :  { %v8660_v63 = vld [vmem:[#allocation6 + $0xeec] sm:$0xf0]  ;;  %4406 = vmatmul.bf16.vlgmr.msrb.gmra.mxu3 %v9159_v33  ;;  %v6346_v61 = vld [vmem:[#allocation6 + $0x5f0] sm:$0xf0] }
 0x220   :  { %v6664_v0 = vld [vmem:[#allocation6 + $0x850] sm:$0xf]  ;;  %v7497_v8 = vor.u32 %v8660_v63, %v7496_v62  ;;  %4450 = vmatpush.bf16.msra.mxu3 %v7369_v4  ;;  %4441 = vmatpush.bf16.msrb.mxu2 %v6985_v7  ;;  %v4188_v7 = vpop.f32.mrf.mxu2 }
 0x221   :  { %v8452_v3 = vld [vmem:[#allocation6 + $0x86c] sm:$0xf0] }
 0x222   :  { %v7336_v9 = vld [vmem:[#allocation6 + $0xd90] sm:$0xf]  ;;  %v6665_v6 = vor.u32 %v8452_v3, %v6664_v0  ;;  %4467 = vmatpush.bf16.msrb.mxu0 %v7497_v8  ;;  %v5837_v8 = vor.u32 %v8240_v59, %v5834_v57 }
 0x223   :  { %v8620_v10 = vld [vmem:[#allocation6 + $0xdac] sm:$0xf0] }
 0x224   :  { %v6952_v12 = vld [vmem:[#allocation6 + $0xa90] sm:$0xf]  ;;  %v7337_v22 = vor.u32 %v8620_v10, %v7336_v9  ;;  %4430 = vmatpush.bf16.msrb.mxu1 %v6665_v6  ;;  %v6349_v9 = vor.u32 %v8368_v1, %v6346_v61  ;;  %v8232_v10 = vld [vmem:[#allocation6 + $0x194] sm:$0xf] }
 0x225   :  { %v8524_v15 = vld [vmem:[#allocation6 + $0xaac] sm:$0xf0]  ;;  %v8360_v6 = vld [vmem:[#allocation6 + $0x594] sm:$0xf] }
 0x226   :  { %v7464_v16 = vld [vmem:[#allocation6 + $0xe90] sm:$0xf]  ;;  %v6953_v29 = vor.u32 %v8524_v15, %v6952_v12  ;;  %4451 = vmatpush.bf16.msra.mxu3 %v7337_v22  ;;  %v6314_v15 = vld [vmem:[#allocation6 + $0x5b0] sm:$0xf0] }
 0x227   :  { %v8652_v20 = vld [vmem:[#allocation6 + $0xeac] sm:$0xf0] }
 0x228   :  { %v6632_v11 = vld [vmem:[#allocation6 + $0x810] sm:$0xf]  ;;  %v7465_v30 = vor.u32 %v8652_v20, %v7464_v16  ;;  %4442 = vmatpush.bf16.msrb.mxu2 %v6953_v29  ;;  %v8224_v29 = vld [vmem:[#allocation6 + $0x154] sm:$0xf] }
 0x229   :  { %v8444_v21 = vld [vmem:[#allocation6 + $0x82c] sm:$0xf0] }
 0x22a   :  { %v7880_v23 = vld [vmem:[#allocation6 + $0x11d0] sm:$0xf]  ;;  %v6633_v37 = vor.u32 %v8444_v21, %v6632_v11  ;;  %4468 = vmatpush.bf16.msrb.mxu0 %v7465_v30 }
 0x22b   :  { %v8756_v25 = vld [vmem:[#allocation6 + $0x11ec] sm:$0xf0] }
 0x22c   :  { %v7304_v31 = vld [vmem:[#allocation6 + $0xd50] sm:$0xf]  ;;  %v7881_v47 = vor.u32 %v8756_v25, %v7880_v23  ;;  %4431 = vmatpush.bf16.msrb.mxu1 %v6633_v37  ;;  %v5805_v23 = vor.u32 %v8232_v10, %v5802_v13  ;;  %v6317_v25 = vor.u32 %v8360_v6, %v6314_v15  ;;  %v8296_v15 = vld [vmem:[#allocation6 + $0x394] sm:$0xf] }
 0x22d   :  { %v8612_v24 = vld [vmem:[#allocation6 + $0xd6c] sm:$0xf0] }
 0x22e   :  { %v6920_v36 = vld [vmem:[#allocation6 + $0xa50] sm:$0xf]  ;;  %v7305_v44 = vor.u32 %v8612_v24, %v7304_v31  ;;  %v5770_v31 = vld [vmem:[#allocation6 + $0x170] sm:$0xf0] }
 0x22f   :  { %v8516_v41 = vld [vmem:[#allocation6 + $0xa6c] sm:$0xf0]  ;;  %4432 = vmatmul.bf16.vlgmr.msrb.gmra.mxu1 %v9154_v18  ;;  %v8352_v24 = vld [vmem:[#allocation6 + $0x554] sm:$0xf] }
 0x230   :  { %v7432_v42 = vld [vmem:[#allocation6 + $0xe50] sm:$0xf]  ;;  %v6921_v50 = vor.u32 %v8516_v41, %v6920_v36  ;;  %4476 = vmatpush.bf16.msra.mxu1 %v7881_v47  ;;  %4452 = vmatpush.bf16.msra.mxu3 %v7305_v44  ;;  %v6282_v36 = vld [vmem:[#allocation6 + $0x570] sm:$0xf0] }
 0x231   :  { %v8644_v43 = vld [vmem:[#allocation6 + $0xe6c] sm:$0xf0] }
 0x232   :  { %v7272_v48 = vld [vmem:[#allocation6 + $0xd10] sm:$0xf]  ;;  %v7433_v53 = vor.u32 %v8644_v43, %v7432_v42  ;;  %4443 = vmatpush.bf16.msrb.mxu2 %v6921_v50  ;;  %v4199_v42 = vpop.f32.mrf.mxu3 }
 0x233   :  { %v7848_v49 = vld [vmem:[#allocation6 + $0x1190] sm:$0xf]  ;;  %v4200_v44 = vadd.f32 %v4199_v42, %v9247_v45  ;;  %v6026_v42 = vld [vmem:[#allocation6 + $0x370] sm:$0xf0] }
 0x234   :  { %v8748_v51 = vld [vmem:[#allocation6 + $0x11ac] sm:$0xf0]  ;;  %4469 = vmatpush.bf16.msrb.mxu0 %v7433_v53  ;;  %v5738_v53 = vld [vmem:[#allocation6 + $0x130] sm:$0xf0] }
 0x235   :  { %v8604_v32 = vld [vmem:[#allocation6 + $0xd2c] sm:$0xf0]  ;;  %v7849_v55 = vor.u32 %v8748_v51, %v7848_v49  ;;  %v6285_v49 = vor.u32 %v8352_v24, %v6282_v36  ;;  %v8216_v51 = vld [vmem:[#allocation6 + $0x114] sm:$0xf] }
 0x236   :  { %v6888_v54 = vld [vmem:[#allocation6 + $0xa10] sm:$0xf]  ;;  %v7273_v62 = vor.u32 %v8604_v32, %v7272_v48  ;;  %v5773_v48 = vor.u32 %v8224_v29, %v5770_v31  ;;  %v8344_v32 = vld [vmem:[#allocation6 + $0x514] sm:$0xf]  ;;  %v5741_v1 = vor.u32 %v8216_v51, %v5738_v53 }
 0x237   :  { %v8508_v56 = vld [vmem:[#allocation6 + $0xa2c] sm:$0xf0]  ;;  %4477 = vmatpush.bf16.msra.mxu1 %v7849_v55  ;;  %v8432_v24 = vld [vmem:[#allocation6 + $0x7d4] sm:$0xf] }
 0x238   :  { %v7400_v58 = vld [vmem:[#allocation6 + $0xe10] sm:$0xf]  ;;  %v6889_v0 = vor.u32 %v8508_v56, %v6888_v54  ;;  %4453 = vmatpush.bf16.msra.mxu3 %v7273_v62  ;;  %v6250_v54 = vld [vmem:[#allocation6 + $0x530] sm:$0xf0]  ;;  %v4213_v56 = vadd.f32 %v9244_v5, %v4200_v44 }
 0x239   :  { %v8636_v38 = vld [vmem:[#allocation6 + $0xe2c] sm:$0xf0]  ;;  %v6253_v61 = vor.u32 %v8344_v32, %v6250_v54  ;;  %v8304_v62 = vld [vmem:[#allocation6 + $0x3d4] sm:$0xf] }
 0x23a   :  { %v7816_v63 = vld [vmem:[#allocation6 + $0x1150] sm:$0xf]  ;;  %v7401_v3 = vor.u32 %v8636_v38, %v7400_v58  ;;  %4444 = vmatpush.bf16.msrb.mxu2 %v6889_v0  ;;  %v4226_v45 = vadd.f32 %v4225_v52, %v4213_v56  ;;  %v6602_v36 = vld [vmem:[#allocation6 + $0x7f0] sm:$0xf0] }
 0x23b   :  { %v8740_v2 = vld [vmem:[#allocation6 + $0x116c] sm:$0xf0]  ;;  %v6154_v51 = vld [vmem:[#allocation6 + $0x470] sm:$0xf0] }
 0x23c   :  { %v7240_v26 = vld [vmem:[#allocation6 + $0xcd0] sm:$0xf]  ;;  %v7817_v12 = vor.u32 %v8740_v2, %v7816_v63  ;;  %4470 = vmatpush.bf16.msrb.mxu0 %v7401_v3  ;;  %v6090_v63 = vld [vmem:[#allocation6 + $0x3f0] sm:$0xf0] }
 0x23d   :  { %v8596_v4 = vld [vmem:[#allocation6 + $0xcec] sm:$0xf0]  ;;  %4445 = vmatmul.bf16.vlgmr.msrb.gmra.mxu2 %v9156_v28  ;;  %v8208_v2 = vld [vmem:[#allocation6 + $0xd4] sm:$0xf]  ;;  %v6093_v10 = vor.u32 %v8304_v62, %v6090_v63 }
 0x23e   :  { %v7241_v16 = vor.u32 %v8596_v4, %v7240_v26  ;;  %v7784_v20 = vld [vmem:[#allocation6 + $0x1110] sm:$0xf]  ;;  %4489 = vmatpush.bf16.msra.mxu2 %v5837_v8  ;;  %4478 = vmatpush.bf16.msra.mxu1 %v7817_v12  ;;  %v5706_v3 = vld [vmem:[#allocation6 + $0xf0] sm:$0xf0]  ;;  %v9254_v12 = vpop.f32.mrf.mxu0 }
 0x23f   :  { %v8732_v11 = vld [vmem:[#allocation6 + $0x112c] sm:$0xf0]  ;;  %4471 = vmatmul.bf16.vlgmr.msrb.gmra.mxu0 %v9161_v34  ;;  %v8336_v26 = vld [vmem:[#allocation6 + $0x4d4] sm:$0xf]  ;;  %v5709_v13 = vor.u32 %v8208_v2, %v5706_v3 }
 0x240   :  { %v7208_v21 = vld [vmem:[#allocation6 + $0xc90] sm:$0xf]  ;;  %4515 = vmatpush.bf16.msra.mxu0 %v6349_v9  ;;  %v7785_v30 = vor.u32 %v8732_v11, %v7784_v20  ;;  %4454 = vmatpush.bf16.msra.mxu3 %v7241_v16  ;;  %v6218_v4 = vld [vmem:[#allocation6 + $0x4f0] sm:$0xf0]  ;;  %v4201_v9 = vpop.f32.mrf.mxu3  ;;  %v4227_v11 = vpop.f32.mrf.mxu1 }
 0x241   :  { %v8588_v22 = vld [vmem:[#allocation6 + $0xcac] sm:$0xf0]  ;;  %v6221_v6 = vor.u32 %v8336_v26, %v6218_v4  ;;  %v6058_v16 = vld [vmem:[#allocation6 + $0x3b0] sm:$0xf0] }
 0x242   :  { %v7209_v60 = vor.u32 %v8588_v22, %v7208_v21  ;;  %v7752_v37 = vld [vmem:[#allocation6 + $0x10d0] sm:$0xf]  ;;  %4490 = vmatpush.bf16.msra.mxu2 %v5805_v23  ;;  %4479 = vmatpush.bf16.msra.mxu1 %v7785_v30  ;;  %v8200_v20 = vld [vmem:[#allocation6 + $0x94] sm:$0xf]  ;;  %v6061_v31 = vor.u32 %v8296_v15, %v6058_v16 }
 0x243   :  { %v8724_v41 = vld [vmem:[#allocation6 + $0x10ec] sm:$0xf0]  ;;  %v5674_v22 = vld [vmem:[#allocation6 + $0xb0] sm:$0xf0] }
 0x244   :  { %v7176_v43 = vld [vmem:[#allocation6 + $0xc50] sm:$0xf]  ;;  %4516 = vmatpush.bf16.msra.mxu0 %v6317_v25  ;;  %v7753_v50 = vor.u32 %v8724_v41, %v7752_v37  ;;  %4455 = vmatpush.bf16.msra.mxu3 %v7209_v60  ;;  %v8328_v23 = vld [vmem:[#allocation6 + $0x494] sm:$0xf]  ;;  %v5677_v60 = vor.u32 %v8200_v20, %v5674_v22 }
 0x245   :  { %v8580_v47 = vld [vmem:[#allocation6 + $0xc6c] sm:$0xf0]  ;;  %v6186_v25 = vld [vmem:[#allocation6 + $0x4b0] sm:$0xf0] }
 0x246   :  { %v7177_v58 = vor.u32 %v8580_v47, %v7176_v43  ;;  %v7720_v38 = vld [vmem:[#allocation6 + $0x1090] sm:$0xf]  ;;  %4491 = vmatpush.bf16.msra.mxu2 %v5773_v48  ;;  %4480 = vmatpush.bf16.msra.mxu1 %v7753_v50  ;;  %v6189_v37 = vor.u32 %v8328_v23, %v6186_v25  ;;  %v8288_v41 = vld [vmem:[#allocation6 + $0x354] sm:$0xf]  ;;  %v4238_v47 = vpop.f32.mrf.mxu2  ;;  %v6605_v50 = vor.u32 %v8432_v24, %v6602_v36  ;;  %v1011_v24 = vperm.slane %v9238_v14, 3 }
 0x247   :  { %v8716_v59 = vld [vmem:[#allocation6 + $0x10ac] sm:$0xf0]  ;;  %v8192_v43 = vld [vmem:[#allocation6 + $0x54] sm:$0xf]  ;;  %v9257_v52 = vadd.f32 %v4238_v47, %v4226_v45  ;;  %v6029_v53 = vor.u32 %v8288_v41, %v6026_v42 }
 0x248   :  { %v7144_v55 = vld [vmem:[#allocation6 + $0xc10] sm:$0xf]  ;;  %4517 = vmatpush.bf16.msra.mxu0 %v6285_v49  ;;  %v7721_v0 = vor.u32 %v8716_v59, %v7720_v38  ;;  %4456 = vmatpush.bf16.msra.mxu3 %v7177_v58  ;;  %v5642_v48 = vld [vmem:[#allocation6 + $0x70] sm:$0xf0]  ;;  %v4266_v58 = vpop.f32.mrf.mxu0 }
 0x249   :  { %v8572_v57 = vld [vmem:[#allocation6 + $0xc2c] sm:$0xf0]  ;;  %v8320_v49 = vld [vmem:[#allocation6 + $0x454] sm:$0xf]  ;;  %v5645_v38 = vor.u32 %v8192_v43, %v5642_v48 }
 0x24a   :  { %v7145_v5 = vor.u32 %v8572_v57, %v7144_v55  ;;  %v7688_v7 = vld [vmem:[#allocation6 + $0x1050] sm:$0xf]  ;;  %4492 = vmatpush.bf16.msra.mxu2 %v5741_v1  ;;  %4481 = vmatpush.bf16.msra.mxu1 %v7721_v0  ;;  %v8280_v32 = vld [vmem:[#allocation6 + $0x314] sm:$0xf]  ;;  %v6157_v59 = vor.u32 %v8320_v49, %v6154_v51  ;;  %v4251_v51 = vpop.f32.mrf.mxu3 }
 0x24b   :  { %v8708_v8 = vld [vmem:[#allocation6 + $0x106c] sm:$0xf0]  ;;  %v8424_v54 = vld [vmem:[#allocation6 + $0x794] sm:$0xf] }
 0x24c   :  { %4518 = vmatpush.bf16.msra.mxu0 %v6253_v61  ;;  %v7689_v21 = vor.u32 %v8708_v8, %v7688_v7  ;;  %4457 = vmatpush.bf16.msra.mxu3 %v7145_v5  ;;  %v7656_v29 = vld [vmem:[#allocation6 + $0x1010] sm:$0xf]  ;;  %v6570_v56 = vld [vmem:[#allocation6 + $0x7b0] sm:$0xf0] }
 0x24d   :  { %v8700_v30 = vld [vmem:[#allocation6 + $0x102c] sm:$0xf0]  ;;  %v5994_v55 = vld [vmem:[#allocation6 + $0x330] sm:$0xf0]  ;;  %v6573_v45 = vor.u32 %v8424_v54, %v6570_v56  ;;  %v9265_v54 = vadd.f32 %v4251_v51, %v9257_v52 }
 0x24e   :  { %4493 = vmatpush.bf16.msra.mxu2 %v5709_v13  ;;  %4482 = vmatpush.bf16.msra.mxu1 %v7689_v21  ;;  %v7657_v44 = vor.u32 %v8700_v30, %v7656_v29  ;;  %v8184_v57 = vld [vmem:[#allocation6 + $0x14] sm:$0xf]  ;;  %v5997_v26 = vor.u32 %v8280_v32, %v5994_v55  ;;  %v4240_v13 = vpop.f32.mrf.mxu2  ;;  %v4265_v32 = vadd.f32 %v9254_v12, %v1011_v24 }
 0x24f   :  { %4458 = vmatmul.bf16.vlgmr.msra.gmra.mxu3 %v9170_v46  ;;  %v5610_v1 = vld [vmem:[#allocation6 + $0x30] sm:$0xf0] }
 0x250   :  { %4502 = vmatpush.bf16.msrb.mxu3 %v6093_v10  ;;  %4519 = vmatpush.bf16.msra.mxu0 %v6221_v6  ;;  %v8312_v61 = vld [vmem:[#allocation6 + $0x414] sm:$0xf]  ;;  %v5613_v7 = vor.u32 %v8184_v57, %v5610_v1 }
 0x251   :  { %v6122_v62 = vld [vmem:[#allocation6 + $0x430] sm:$0xf0] }
 0x252   :  { %4494 = vmatpush.bf16.msra.mxu2 %v5677_v60  ;;  %4483 = vmatpush.bf16.msra.mxu1 %v7657_v44  ;;  %v8496_v63 = vld [vmem:[#allocation6 + $0x9d4] sm:$0xf]  ;;  %v6125_v8 = vor.u32 %v8312_v61, %v6122_v62 }
 0x253   :  { %v6858_v2 = vld [vmem:[#allocation6 + $0x9f0] sm:$0xf0] }
 0x254   :  { %4503 = vmatpush.bf16.msrb.mxu3 %v6061_v31  ;;  %4520 = vmatpush.bf16.msra.mxu0 %v6189_v37  ;;  %v8624_v0 = vld [vmem:[#allocation6 + $0xdd4] sm:$0xf]  ;;  %v6861_v6 = vor.u32 %v8496_v63, %v6858_v2 }
 0x255   :  { %v7370_v3 = vld [vmem:[#allocation6 + $0xdf0] sm:$0xf0]  ;;  %4484 = vmatmul.bf16.vlgmr.msra.gmra.mxu1 %v9167_v27 }
 0x256   :  { %4528 = vmatpush.bf16.msrb.mxu1 %v6605_v50  ;;  %v8416_v4 = vld [vmem:[#allocation6 + $0x754] sm:$0xf]  ;;  %4495 = vmatpush.bf16.msra.mxu2 %v5645_v38  ;;  %v7373_v15 = vor.u32 %v8624_v0, %v7370_v3  ;;  %v4277_v38 = vpop.f32.mrf.mxu1 }
 0x257   :  { %v6538_v5 = vld [vmem:[#allocation6 + $0x770] sm:$0xf0]  ;;  %v4278_v61 = vadd.f32 %v4277_v38, %v4265_v32 }
 0x258   :  { %4504 = vmatpush.bf16.msrb.mxu3 %v6029_v53  ;;  %4521 = vmatpush.bf16.msra.mxu0 %v6157_v59  ;;  %v8272_v9 = vld [vmem:[#allocation6 + $0x2d4] sm:$0xf]  ;;  %v6541_v20 = vor.u32 %v8416_v4, %v6538_v5 }
 0x259   :  { %v5962_v10 = vld [vmem:[#allocation6 + $0x2f0] sm:$0xf0] }
 0x25a   :  { %v8488_v16 = vld [vmem:[#allocation6 + $0x994] sm:$0xf]  ;;  %4529 = vmatpush.bf16.msrb.mxu1 %v6573_v45  ;;  %v5965_v23 = vor.u32 %v8272_v9, %v5962_v10  ;;  %4496 = vmatpush.bf16.msra.mxu2 %v5613_v7 }
 0x25b   :  { %v6826_v11 = vld [vmem:[#allocation6 + $0x9b0] sm:$0xf0] }
 0x25c   :  { %v8616_v21 = vld [vmem:[#allocation6 + $0xd94] sm:$0xf]  ;;  %4505 = vmatpush.bf16.msrb.mxu3 %v5997_v26  ;;  %4522 = vmatpush.bf16.msra.mxu0 %v6125_v8  ;;  %v6829_v36 = vor.u32 %v8488_v16, %v6826_v11 }
 0x25d   :  { %v7338_v22 = vld [vmem:[#allocation6 + $0xdb0] sm:$0xf0]  ;;  %4497 = vmatmul.bf16.vlgmr.msra.gmra.mxu2 %v9141_v19 }
 0x25e   :  { %v8408_v25 = vld [vmem:[#allocation6 + $0x714] sm:$0xf]  ;;  %4541 = vmatpush.bf16.msrb.mxu2 %v6861_v6  ;;  %v7341_v60 = vor.u32 %v8616_v21, %v7338_v22  ;;  %4530 = vmatpush.bf16.msrb.mxu1 %v6541_v20  ;;  %v9267_v20 = vpop.f32.mrf.mxu0 }
 0x25f   :  { %v6506_v29 = vld [vmem:[#allocation6 + $0x730] sm:$0xf0]  ;;  %4523 = vmatmul.bf16.vlgmr.msra.gmra.mxu0 %v9159_v33 }
 0x260   :  { %v8264_v30 = vld [vmem:[#allocation6 + $0x294] sm:$0xf]  ;;  %4567 = vmatpush.bf16.msrb.mxu0 %v7373_v15  ;;  %v6509_v42 = vor.u32 %v8408_v25, %v6506_v29  ;;  %4506 = vmatpush.bf16.msrb.mxu3 %v5965_v23  ;;  %v4253_v15 = vpop.f32.mrf.mxu3  ;;  %v4279_v29 = vpop.f32.mrf.mxu1 }
 0x261   :  { %v5930_v31 = vld [vmem:[#allocation6 + $0x2b0] sm:$0xf0] }
 0x262   :  { %v8480_v37 = vld [vmem:[#allocation6 + $0x954] sm:$0xf]  ;;  %v5933_v44 = vor.u32 %v8264_v30, %v5930_v31  ;;  %4542 = vmatpush.bf16.msrb.mxu2 %v6829_v36  ;;  %4531 = vmatpush.bf16.msrb.mxu1 %v6509_v42 }
 0x263   :  { %v6794_v41 = vld [vmem:[#allocation6 + $0x970] sm:$0xf0] }
 0x264   :  { %v8608_v43 = vld [vmem:[#allocation6 + $0xd54] sm:$0xf]  ;;  %v6797_v14 = vor.u32 %v8480_v37, %v6794_v41  ;;  %4568 = vmatpush.bf16.msrb.mxu0 %v7341_v60  ;;  %4507 = vmatpush.bf16.msrb.mxu3 %v5933_v44 }
 0x265   :  { %v7306_v47 = vld [vmem:[#allocation6 + $0xd70] sm:$0xf0] }
 0x266   :  { %v8400_v48 = vld [vmem:[#allocation6 + $0x6d4] sm:$0xf]  ;;  %v7309_v56 = vor.u32 %v8608_v43, %v7306_v47  ;;  %4543 = vmatpush.bf16.msrb.mxu2 %v6797_v14  ;;  %v4290_v14 = vpop.f32.mrf.mxu2 }
 0x267   :  { %v6474_v49 = vld [vmem:[#allocation6 + $0x6f0] sm:$0xf0] }
 0x268   :  { %v8256_v50 = vld [vmem:[#allocation6 + $0x254] sm:$0xf]  ;;  %v6477_v59 = vor.u32 %v8400_v48, %v6474_v49  ;;  %4569 = vmatpush.bf16.msrb.mxu0 %v7309_v56 }
 0x269   :  { %v5898_v53 = vld [vmem:[#allocation6 + $0x270] sm:$0xf0] }
 0x26a   :  { %v8472_v58 = vld [vmem:[#allocation6 + $0x914] sm:$0xf]  ;;  %v5901_v62 = vor.u32 %v8256_v50, %v5898_v53  ;;  %4532 = vmatpush.bf16.msrb.mxu1 %v6477_v59 }
 0x26b   :  { %v6762_v55 = vld [vmem:[#allocation6 + $0x930] sm:$0xf0] }
 0x26c   :  { %v8600_v57 = vld [vmem:[#allocation6 + $0xd14] sm:$0xf]  ;;  %v6765_v52 = vor.u32 %v8472_v58, %v6762_v55  ;;  %4508 = vmatpush.bf16.msrb.mxu3 %v5901_v62  ;;  %v9270_v58 = vadd.f32 %v4290_v14, %v4278_v61  ;;  %v4318_v62 = vpop.f32.mrf.mxu0 }
 0x26d   :  { %v7274_v1 = vld [vmem:[#allocation6 + $0xd30] sm:$0xf0]  ;;  %v4329_v62 = vpop.f32.mrf.mxu1 }
 0x26e   :  { %v8392_v63 = vld [vmem:[#allocation6 + $0x694] sm:$0xf]  ;;  %v7277_v0 = vor.u32 %v8600_v57, %v7274_v1  ;;  %4544 = vmatpush.bf16.msrb.mxu2 %v6765_v52 }
 0x26f   :  { %v6442_v45 = vld [vmem:[#allocation6 + $0x6b0] sm:$0xf0] }
 0x270   :  { %v8248_v2 = vld [vmem:[#allocation6 + $0x214] sm:$0xf]  ;;  %v6445_v5 = vor.u32 %v8392_v63, %v6442_v45  ;;  %4570 = vmatpush.bf16.msrb.mxu0 %v7277_v0 }
 0x271   :  { %v5866_v12 = vld [vmem:[#allocation6 + $0x230] sm:$0xf0] }
 0x272   :  { %v8560_v3 = vld [vmem:[#allocation6 + $0xbd4] sm:$0xf]  ;;  %v5869_v10 = vor.u32 %v8248_v2, %v5866_v12  ;;  %4533 = vmatpush.bf16.msrb.mxu1 %v6445_v5  ;;  %v6096_v5 = vld [vmem:[#allocation6 + $0x3d8] sm:$0xf] }
 0x273   :  { %v7114_v26 = vld [vmem:[#allocation6 + $0xbf0] sm:$0xf0] }
 0x274   :  { %v8464_v4 = vld [vmem:[#allocation6 + $0x8d4] sm:$0xf]  ;;  %v7117_v16 = vor.u32 %v8560_v3, %v7114_v26  ;;  %4509 = vmatpush.bf16.msrb.mxu3 %v5869_v10 }
 0x275   :  { %v6730_v7 = vld [vmem:[#allocation6 + $0x8f0] sm:$0xf0] }
 0x276   :  { %v8592_v8 = vld [vmem:[#allocation6 + $0xcd4] sm:$0xf]  ;;  %v6733_v11 = vor.u32 %v8464_v4, %v6730_v7  ;;  %v8309_v7 = vld [vmem:[#allocation6 + $0x3f4] sm:$0xf0] }
 0x277   :  { %v7242_v9 = vld [vmem:[#allocation6 + $0xcf0] sm:$0xf0]  ;;  %4510 = vmatmul.bf16.vlgmr.msrb.gmra.mxu3 %v9144_v39 }
 0x278   :  { %v8384_v13 = vld [vmem:[#allocation6 + $0x654] sm:$0xf]  ;;  %v7245_v21 = vor.u32 %v8592_v8, %v7242_v9  ;;  %4554 = vmatpush.bf16.msra.mxu3 %v7117_v16  ;;  %4545 = vmatpush.bf16.msrb.mxu2 %v6733_v11  ;;  %v4292_v11 = vpop.f32.mrf.mxu2 }
 0x279   :  { %v6410_v6 = vld [vmem:[#allocation6 + $0x670] sm:$0xf0] }
 0x27a   :  { %v8552_v22 = vld [vmem:[#allocation6 + $0xb94] sm:$0xf]  ;;  %v6413_v30 = vor.u32 %v8384_v13, %v6410_v6  ;;  %4571 = vmatpush.bf16.msrb.mxu0 %v7245_v21 }
 0x27b   :  { %v7082_v23 = vld [vmem:[#allocation6 + $0xbb0] sm:$0xf0] }
 0x27c   :  { %v8456_v25 = vld [vmem:[#allocation6 + $0x894] sm:$0xf]  ;;  %v7085_v41 = vor.u32 %v8552_v22, %v7082_v23  ;;  %4534 = vmatpush.bf16.msrb.mxu1 %v6413_v30  ;;  %v6097_v22 = vor.u32 %v8309_v7, %v6096_v5  ;;  %v6064_v30 = vld [vmem:[#allocation6 + $0x398] sm:$0xf] }
 0x27d   :  { %v6698_v31 = vld [vmem:[#allocation6 + $0x8b0] sm:$0xf0] }
 0x27e   :  { %v8584_v24 = vld [vmem:[#allocation6 + $0xc94] sm:$0xf]  ;;  %v6701_v47 = vor.u32 %v8456_v25, %v6698_v31  ;;  %4555 = vmatpush.bf16.msra.mxu3 %v7085_v41  ;;  %v8301_v31 = vld [vmem:[#allocation6 + $0x3b4] sm:$0xf0] }
 0x27f   :  { %v7210_v36 = vld [vmem:[#allocation6 + $0xcb0] sm:$0xf0] }
 0x280   :  { %v8376_v60 = vld [vmem:[#allocation6 + $0x614] sm:$0xf]  ;;  %v7213_v44 = vor.u32 %v8584_v24, %v7210_v36  ;;  %4546 = vmatpush.bf16.msrb.mxu2 %v6701_v47 }
 0x281   :  { %v6378_v37 = vld [vmem:[#allocation6 + $0x630] sm:$0xf0] }
 0x282   :  { %v8688_v42 = vld [vmem:[#allocation6 + $0xfd4] sm:$0xf]  ;;  %v6381_v50 = vor.u32 %v8376_v60, %v6378_v37  ;;  %4572 = vmatpush.bf16.msrb.mxu0 %v7213_v44 }
 0x283   :  { %v7626_v43 = vld [vmem:[#allocation6 + $0xff0] sm:$0xf0] }
 0x284   :  { %v8544_v48 = vld [vmem:[#allocation6 + $0xb54] sm:$0xf]  ;;  %v7629_v38 = vor.u32 %v8688_v42, %v7626_v43  ;;  %4535 = vmatpush.bf16.msrb.mxu1 %v6381_v50  ;;  %v6065_v43 = vor.u32 %v8301_v31, %v6064_v30  ;;  %v5808_v31 = vld [vmem:[#allocation6 + $0x198] sm:$0xf] }
 0x285   :  { %v7050_v49 = vld [vmem:[#allocation6 + $0xb70] sm:$0xf0] }
 0x286   :  { %v8448_v51 = vld [vmem:[#allocation6 + $0x854] sm:$0xf]  ;;  %v7053_v59 = vor.u32 %v8544_v48, %v7050_v49  ;;  %v6032_v49 = vld [vmem:[#allocation6 + $0x358] sm:$0xf] }
 0x287   :  { %v6666_v53 = vld [vmem:[#allocation6 + $0x870] sm:$0xf0]  ;;  %4536 = vmatmul.bf16.vlgmr.msrb.gmra.mxu1 %v9146_v40 }
 0x288   :  { %v8576_v32 = vld [vmem:[#allocation6 + $0xc54] sm:$0xf]  ;;  %v6669_v63 = vor.u32 %v8448_v51, %v6666_v53  ;;  %4580 = vmatpush.bf16.msra.mxu1 %v7629_v38  ;;  %4556 = vmatpush.bf16.msra.mxu3 %v7053_v59  ;;  %v8293_v51 = vld [vmem:[#allocation6 + $0x374] sm:$0xf0] }
 0x289   :  { %v7178_v56 = vld [vmem:[#allocation6 + $0xc70] sm:$0xf0] }
 0x28a   :  { %v8536_v55 = vld [vmem:[#allocation6 + $0xb14] sm:$0xf]  ;;  %v7181_v45 = vor.u32 %v8576_v32, %v7178_v56  ;;  %4547 = vmatpush.bf16.msrb.mxu2 %v6669_v63  ;;  %v4303_v32 = vpop.f32.mrf.mxu3 }
 0x28b   :  { %v8680_v57 = vld [vmem:[#allocation6 + $0xf94] sm:$0xf]  ;;  %v4304_v59 = vadd.f32 %v4303_v32, %v9270_v58  ;;  %v8229_v32 = vld [vmem:[#allocation6 + $0x174] sm:$0xf0] }
 0x28c   :  { %v7594_v1 = vld [vmem:[#allocation6 + $0xfb0] sm:$0xf0]  ;;  %4573 = vmatpush.bf16.msrb.mxu0 %v7181_v45 }
 0x28d   :  { %v7018_v2 = vld [vmem:[#allocation6 + $0xb30] sm:$0xf0]  ;;  %v7597_v61 = vor.u32 %v8680_v57, %v7594_v1  ;;  %v6033_v57 = vor.u32 %v8293_v51, %v6032_v49  ;;  %v6352_v49 = vld [vmem:[#allocation6 + $0x5d8] sm:$0xf] }
 0x28e   :  { %v8440_v12 = vld [vmem:[#allocation6 + $0x814] sm:$0xf]  ;;  %v7021_v8 = vor.u32 %v8536_v55, %v7018_v2  ;;  %v6000_v2 = vld [vmem:[#allocation6 + $0x318] sm:$0xf] }
 0x28f   :  { %v6634_v52 = vld [vmem:[#allocation6 + $0x830] sm:$0xf0]  ;;  %4581 = vmatpush.bf16.msra.mxu1 %v7597_v61  ;;  %v8373_v51 = vld [vmem:[#allocation6 + $0x5f4] sm:$0xf0] }
 0x290   :  { %v8568_v0 = vld [vmem:[#allocation6 + $0xc14] sm:$0xf]  ;;  %v6637_v13 = vor.u32 %v8440_v12, %v6634_v52  ;;  %4557 = vmatpush.bf16.msra.mxu3 %v7021_v8  ;;  %v8285_v12 = vld [vmem:[#allocation6 + $0x334] sm:$0xf0]  ;;  %v4317_v52 = vadd.f32 %v9267_v20, %v4304_v59 }
 0x291   :  { %v7146_v3 = vld [vmem:[#allocation6 + $0xc30] sm:$0xf0]  ;;  %v6001_v7 = vor.u32 %v8285_v12, %v6000_v2  ;;  %v5840_v8 = vld [vmem:[#allocation6 + $0x1d8] sm:$0xf] }
 0x292   :  { %v8752_v26 = vld [vmem:[#allocation6 + $0x11d4] sm:$0xf]  ;;  %v7149_v6 = vor.u32 %v8568_v0, %v7146_v3  ;;  %4548 = vmatpush.bf16.msrb.mxu2 %v6637_v13  ;;  %v4330_v58 = vadd.f32 %v4329_v62, %v4317_v52  ;;  %v5744_v2 = vld [vmem:[#allocation6 + $0x118] sm:$0xf] }
 0x293   :  { %v7882_v4 = vld [vmem:[#allocation6 + $0x11f0] sm:$0xf0]  ;;  %v6320_v12 = vld [vmem:[#allocation6 + $0x598] sm:$0xf] }
 0x294   :  { %v8672_v9 = vld [vmem:[#allocation6 + $0xf54] sm:$0xf]  ;;  %v7885_v21 = vor.u32 %v8752_v26, %v7882_v4  ;;  %4574 = vmatpush.bf16.msrb.mxu0 %v7149_v6  ;;  %v8365_v52 = vld [vmem:[#allocation6 + $0x5b4] sm:$0xf0] }
 0x295   :  { %v7562_v10 = vld [vmem:[#allocation6 + $0xf70] sm:$0xf0]  ;;  %4549 = vmatmul.bf16.vlgmr.msrb.gmra.mxu2 %v9154_v18 }
 0x296   :  { %v8528_v15 = vld [vmem:[#allocation6 + $0xad4] sm:$0xf]  ;;  %v7565_v25 = vor.u32 %v8672_v9, %v7562_v10  ;;  %4593 = vmatpush.bf16.msra.mxu2 %v7885_v21  ;;  %v8245_v9 = vld [vmem:[#allocation6 + $0x1f4] sm:$0xf0] }
 0x297   :  { %v6986_v16 = vld [vmem:[#allocation6 + $0xaf0] sm:$0xf0]  ;;  %4575 = vmatmul.bf16.vlgmr.msrb.gmra.mxu0 %v9170_v46 }
 0x298   :  { %v8744_v23 = vld [vmem:[#allocation6 + $0x1194] sm:$0xf]  ;;  %v6989_v24 = vor.u32 %v8528_v15, %v6986_v16  ;;  %4619 = vmatpush.bf16.msra.mxu0 %v6097_v22  ;;  %4582 = vmatpush.bf16.msra.mxu1 %v7565_v25  ;;  %v5968_v15 = vld [vmem:[#allocation6 + $0x2d8] sm:$0xf]  ;;  %v4305_v22 = vpop.f32.mrf.mxu3  ;;  %v9277_v25 = vpop.f32.mrf.mxu0 }
 0x299   :  { %v7850_v29 = vld [vmem:[#allocation6 + $0x11b0] sm:$0xf0]  ;;  %v8277_v16 = vld [vmem:[#allocation6 + $0x2f4] sm:$0xf0] }
 0x29a   :  { %v8664_v36 = vld [vmem:[#allocation6 + $0xf14] sm:$0xf]  ;;  %v7853_v42 = vor.u32 %v8744_v23, %v7850_v29  ;;  %4558 = vmatpush.bf16.msra.mxu3 %v6989_v24  ;;  %v5841_v23 = vor.u32 %v8245_v9, %v5840_v8  ;;  %v5969_v30 = vor.u32 %v8277_v16, %v5968_v15  ;;  %v8237_v24 = vld [vmem:[#allocation6 + $0x1b4] sm:$0xf0] }
 0x29b   :  { %v7530_v60 = vld [vmem:[#allocation6 + $0xf30] sm:$0xf0]  ;;  %v8253_v8 = vld [vmem:[#allocation6 + $0x234] sm:$0xf0] }
 0x29c   :  { %v8520_v37 = vld [vmem:[#allocation6 + $0xa94] sm:$0xf]  ;;  %v7533_v44 = vor.u32 %v8664_v36, %v7530_v60  ;;  %4594 = vmatpush.bf16.msra.mxu2 %v7853_v42  ;;  %4620 = vmatpush.bf16.msra.mxu0 %v6065_v43  ;;  %v4331_v60 = vpop.f32.mrf.mxu1  ;;  %v5936_v42 = vld [vmem:[#allocation6 + $0x298] sm:$0xf] }
 0x29d   :  { %v6954_v41 = vld [vmem:[#allocation6 + $0xab0] sm:$0xf0]  ;;  %v8269_v43 = vld [vmem:[#allocation6 + $0x2b4] sm:$0xf0] }
 0x29e   :  { %v8736_v47 = vld [vmem:[#allocation6 + $0x1154] sm:$0xf]  ;;  %v6957_v14 = vor.u32 %v8520_v37, %v6954_v41  ;;  %4583 = vmatpush.bf16.msra.mxu1 %v7533_v44  ;;  %v6608_v9 = vld [vmem:[#allocation6 + $0x7d8] sm:$0xf] }
 0x29f   :  { %v7818_v48 = vld [vmem:[#allocation6 + $0x1170] sm:$0xf0]  ;;  %v6288_v16 = vld [vmem:[#allocation6 + $0x558] sm:$0xf] }
 0x2a0   :  { %v8656_v50 = vld [vmem:[#allocation6 + $0xed4] sm:$0xf]  ;;  %v7821_v55 = vor.u32 %v8736_v47, %v7818_v48  ;;  %4559 = vmatpush.bf16.msra.mxu3 %v6957_v14  ;;  %4621 = vmatpush.bf16.msra.mxu0 %v6033_v57  ;;  %v5809_v48 = vor.u32 %v8237_v24, %v5808_v31  ;;  %v5904_v57 = vld [vmem:[#allocation6 + $0x258] sm:$0xf] }
 0x2a1   :  { %v7498_v53 = vld [vmem:[#allocation6 + $0xef0] sm:$0xf0]  ;;  %v5712_v22 = vld [vmem:[#allocation6 + $0xd8] sm:$0xf] }
 0x2a2   :  { %v8512_v56 = vld [vmem:[#allocation6 + $0xa54] sm:$0xf]  ;;  %v7501_v63 = vor.u32 %v8656_v50, %v7498_v53  ;;  %4595 = vmatpush.bf16.msra.mxu2 %v7821_v55  ;;  %v5937_v50 = vor.u32 %v8269_v43, %v5936_v42  ;;  %v5776_v53 = vld [vmem:[#allocation6 + $0x158] sm:$0xf] }
 0x2a3   :  { %v6922_v38 = vld [vmem:[#allocation6 + $0xa70] sm:$0xf0]  ;;  %v6576_v24 = vld [vmem:[#allocation6 + $0x798] sm:$0xf] }
 0x2a4   :  { %v8728_v1 = vld [vmem:[#allocation6 + $0x1114] sm:$0xf]  ;;  %v6925_v0 = vor.u32 %v8512_v56, %v6922_v38  ;;  %4584 = vmatpush.bf16.msra.mxu1 %v7501_v63  ;;  %4622 = vmatpush.bf16.msra.mxu0 %v6001_v7  ;;  %v4342_v38 = vpop.f32.mrf.mxu2  ;;  %v6353_v63 = vor.u32 %v8373_v51, %v6352_v49  ;;  %v5872_v7 = vld [vmem:[#allocation6 + $0x218] sm:$0xf] }
 0x2a5   :  { %v7786_v45 = vld [vmem:[#allocation6 + $0x1130] sm:$0xf0]  ;;  %v9280_v62 = vadd.f32 %v4342_v38, %v4330_v58  ;;  %v6321_v58 = vor.u32 %v8365_v52, %v6320_v12  ;;  %v8429_v60 = vld [vmem:[#allocation6 + $0x7b4] sm:$0xf0] }
 0x2a6   :  { %v8648_v3 = vld [vmem:[#allocation6 + $0xe94] sm:$0xf]  ;;  %v7789_v5 = vor.u32 %v8728_v1, %v7786_v45  ;;  %4560 = vmatpush.bf16.msra.mxu3 %v6925_v0  ;;  %v8261_v1 = vld [vmem:[#allocation6 + $0x274] sm:$0xf0]  ;;  %v5777_v45 = vor.u32 %v8229_v32, %v5776_v53  ;;  %v4370_v0 = vpop.f32.mrf.mxu0  ;;  %v6577_v49 = vor.u32 %v8429_v60, %v6576_v24 }
 0x2a7   :  { %v7466_v26 = vld [vmem:[#allocation6 + $0xeb0] sm:$0xf0]  ;;  %v6256_v43 = vld [vmem:[#allocation6 + $0x518] sm:$0xf]  ;;  %v4381_v0 = vpop.f32.mrf.mxu1 }
 0x2a8   :  { %v8504_v61 = vld [vmem:[#allocation6 + $0xa14] sm:$0xf]  ;;  %v7469_v13 = vor.u32 %v8648_v3, %v7466_v26  ;;  %4596 = vmatpush.bf16.msra.mxu2 %v7789_v5  ;;  %4623 = vmatpush.bf16.msra.mxu0 %v5969_v30  ;;  %v5905_v26 = vor.u32 %v8261_v1, %v5904_v57  ;;  %v8421_v53 = vld [vmem:[#allocation6 + $0x774] sm:$0xf0]  ;;  %v4355_v57 = vpop.f32.mrf.mxu3 }
 0x2a9   :  { %v6890_v4 = vld [vmem:[#allocation6 + $0xa30] sm:$0xf0]  ;;  %v7056_v32 = vld [vmem:[#allocation6 + $0xb58] sm:$0xf] }
 0x2aa   :  { %v8720_v10 = vld [vmem:[#allocation6 + $0x10d4] sm:$0xf]  ;;  %v6893_v20 = vor.u32 %v8504_v61, %v6890_v4  ;;  %4585 = vmatpush.bf16.msra.mxu1 %v7469_v13  ;;  %v8221_v61 = vld [vmem:[#allocation6 + $0x134] sm:$0xf0] }
 0x2ab   :  { %v7754_v6 = vld [vmem:[#allocation6 + $0x10f0] sm:$0xf0]  ;;  %v7120_v13 = vld [vmem:[#allocation6 + $0xbd8] sm:$0xf]  ;;  %v5745_v15 = vor.u32 %v8221_v61, %v5744_v2 }
 0x2ac   :  { %v8640_v11 = vld [vmem:[#allocation6 + $0xe54] sm:$0xf]  ;;  %v7757_v29 = vor.u32 %v8720_v10, %v7754_v6  ;;  %4561 = vmatpush.bf16.msra.mxu3 %v6893_v20  ;;  %4624 = vmatpush.bf16.msra.mxu0 %v5937_v50  ;;  %v8437_v10 = vld [vmem:[#allocation6 + $0x7f4] sm:$0xf0] }
 0x2ad   :  { %v7434_v21 = vld [vmem:[#allocation6 + $0xe70] sm:$0xf0]  ;;  %v8565_v6 = vld [vmem:[#allocation6 + $0xbf4] sm:$0xf0]  ;;  %v6609_v30 = vor.u32 %v8437_v10, %v6608_v9 }
 0x2ae   :  { %v8712_v36 = vld [vmem:[#allocation6 + $0x1094] sm:$0xf]  ;;  %v7437_v37 = vor.u32 %v8640_v11, %v7434_v21  ;;  %4597 = vmatpush.bf16.msra.mxu2 %v7757_v29  ;;  %v8357_v20 = vld [vmem:[#allocation6 + $0x574] sm:$0xf0]  ;;  %v5873_v21 = vor.u32 %v8253_v8, %v5872_v7  ;;  %v4344_v29 = vpop.f32.mrf.mxu2  ;;  %v7121_v31 = vor.u32 %v8565_v6, %v7120_v13  ;;  %v9292_v60 = vpop.f32.mrf.mxu0 }
 0x2af   :  { %v7722_v41 = vld [vmem:[#allocation6 + $0x10b0] sm:$0xf0]  ;;  %4562 = vmatmul.bf16.vlgmr.msra.gmra.mxu3 %v9156_v28  ;;  %v5648_v1 = vld [vmem:[#allocation6 + $0x58] sm:$0xf] }
 0x2b0   :  { %v8632_v47 = vld [vmem:[#allocation6 + $0xe14] sm:$0xf]  ;;  %4606 = vmatpush.bf16.msrb.mxu3 %v5841_v23  ;;  %v7725_v14 = vor.u32 %v8712_v36, %v7722_v41  ;;  %4586 = vmatpush.bf16.msra.mxu1 %v7437_v37  ;;  %v8213_v23 = vld [vmem:[#allocation6 + $0xf4] sm:$0xf0]  ;;  %v6289_v36 = vor.u32 %v8357_v20, %v6288_v16  ;;  %v4357_v24 = vpop.f32.mrf.mxu3 }
 0x2b1   :  { %v7402_v44 = vld [vmem:[#allocation6 + $0xe30] sm:$0xf0]  ;;  %4625 = vmatpush.bf16.msra.mxu0 %v5905_v26  ;;  %v7088_v37 = vld [vmem:[#allocation6 + $0xb98] sm:$0xf]  ;;  %v5713_v42 = vor.u32 %v8213_v23, %v5712_v22 }
 0x2b2   :  { %v8704_v56 = vld [vmem:[#allocation6 + $0x1054] sm:$0xf]  ;;  %v7405_v59 = vor.u32 %v8632_v47, %v7402_v44  ;;  %4598 = vmatpush.bf16.msra.mxu2 %v7725_v14  ;;  %v8557_v41 = vld [vmem:[#allocation6 + $0xbb4] sm:$0xf0] }
 0x2b3   :  { %v7690_v55 = vld [vmem:[#allocation6 + $0x1070] sm:$0xf0]  ;;  %v8349_v47 = vld [vmem:[#allocation6 + $0x534] sm:$0xf0]  ;;  %v7089_v51 = vor.u32 %v8557_v41, %v7088_v37 }
 0x2b4   :  { %4607 = vmatpush.bf16.msrb.mxu3 %v5809_v48  ;;  %v7693_v3 = vor.u32 %v8704_v56, %v7690_v55  ;;  %v8696_v4 = vld [vmem:[#allocation6 + $0x1014] sm:$0xf]  ;;  %4587 = vmatpush.bf16.msra.mxu1 %v7405_v59  ;;  %v5680_v44 = vld [vmem:[#allocation6 + $0x98] sm:$0xf]  ;;  %v6257_v50 = vor.u32 %v8349_v47, %v6256_v43 }
 0x2b5   :  { %v7658_v5 = vld [vmem:[#allocation6 + $0x1030] sm:$0xf0]  ;;  %4626 = vmatpush.bf16.msra.mxu0 %v5873_v21  ;;  %v8205_v48 = vld [vmem:[#allocation6 + $0xb4] sm:$0xf0] }
 0x2b6   :  { %4599 = vmatpush.bf16.msra.mxu2 %v7693_v3  ;;  %v7661_v11 = vor.u32 %v8696_v4, %v7658_v5  ;;  %v6544_v14 = vld [vmem:[#allocation6 + $0x758] sm:$0xf]  ;;  %v5681_v38 = vor.u32 %v8205_v48, %v5680_v44  ;;  %v4383_v44 = vpop.f32.mrf.mxu1 }
 0x2b7   :  { %4588 = vmatmul.bf16.vlgmr.msra.gmra.mxu1 %v9161_v34  ;;  %v8549_v56 = vld [vmem:[#allocation6 + $0xb74] sm:$0xf0]  ;;  %v6545_v2 = vor.u32 %v8421_v53, %v6544_v14 }
 0x2b8   :  { %4632 = vmatpush.bf16.msrb.mxu1 %v6353_v63  ;;  %4608 = vmatpush.bf16.msrb.mxu3 %v5777_v45  ;;  %v6224_v59 = vld [vmem:[#allocation6 + $0x4d8] sm:$0xf]  ;;  %v4356_v45 = vadd.f32 %v4355_v57, %v9280_v62  ;;  %v7057_v12 = vor.u32 %v8549_v56, %v7056_v32 }
 0x2b9   :  { %4671 = vmatpush.bf16.msrb.mxu0 %v7121_v31  ;;  %v8341_v55 = vld [vmem:[#allocation6 + $0x4f4] sm:$0xf0] }
 0x2ba   :  { %4600 = vmatpush.bf16.msra.mxu2 %v7661_v11  ;;  %4627 = vmatmul.bf16.vlgmr.msra.gmra.mxu0 %v9144_v39  ;;  %v8197_v63 = vld [vmem:[#allocation6 + $0x74] sm:$0xf0]  ;;  %v6225_v3 = vor.u32 %v8341_v55, %v6224_v59  ;;  %v9287_v5 = vadd.f32 %v9277_v25, %v4356_v45 }
 0x2bb   :  { %v6512_v52 = vld [vmem:[#allocation6 + $0x718] sm:$0xf]  ;;  %v5649_v7 = vor.u32 %v8197_v63, %v5648_v1 }
 0x2bc   :  { %4633 = vmatpush.bf16.msrb.mxu1 %v6321_v58  ;;  %4609 = vmatpush.bf16.msrb.mxu3 %v5745_v15  ;;  %v8413_v26 = vld [vmem:[#allocation6 + $0x734] sm:$0xf0] }
 0x2bd   :  { %4601 = vmatmul.bf16.vlgmr.msra.gmra.mxu2 %v9167_v27  ;;  %4672 = vmatpush.bf16.msrb.mxu0 %v7089_v51  ;;  %v7024_v61 = vld [vmem:[#allocation6 + $0xb18] sm:$0xf]  ;;  %v6513_v10 = vor.u32 %v8413_v26, %v6512_v52 }
 0x2be   :  { %4645 = vmatpush.bf16.msrb.mxu2 %v6609_v30  ;;  %v8541_v4 = vld [vmem:[#allocation6 + $0xb34] sm:$0xf0]  ;;  %v9289_v30 = vld [vmem:[#allocation7] sm:$0xff] }
 0x2bf   :  { %v6192_v8 = vld [vmem:[#allocation6 + $0x498] sm:$0xf]  ;;  %v7025_v13 = vor.u32 %v8541_v4, %v7024_v61  ;;  %v1012_v31 = vperm.slane %v9289_v30, 4 }
 0x2c0   :  { %4634 = vmatpush.bf16.msrb.mxu1 %v6289_v36  ;;  %4610 = vmatpush.bf16.msrb.mxu3 %v5713_v42  ;;  %v8333_v9 = vld [vmem:[#allocation6 + $0x4b4] sm:$0xf0] }
 0x2c1   :  { %v5616_v58 = vld [vmem:[#allocation6 + $0x18] sm:$0xf]  ;;  %4673 = vmatpush.bf16.msrb.mxu0 %v7057_v12  ;;  %v6193_v20 = vor.u32 %v8333_v9, %v6192_v8  ;;  %v4382_v59 = vadd.f32 %v4381_v0, %v1012_v31 }
 0x2c2   :  { %4646 = vmatpush.bf16.msrb.mxu2 %v6577_v49  ;;  %v8189_v62 = vld [vmem:[#allocation6 + $0x34] sm:$0xf0] }
 0x2c3   :  { %v6864_v6 = vld [vmem:[#allocation6 + $0x9d8] sm:$0xf]  ;;  %v5617_v25 = vor.u32 %v8189_v62, %v5616_v58  ;;  %v4422_v58 = vpop.f32.mrf.mxu0 }
 0x2c4   :  { %4635 = vmatpush.bf16.msrb.mxu1 %v6257_v50  ;;  %4611 = vmatpush.bf16.msrb.mxu3 %v5681_v38  ;;  %v8501_v15 = vld [vmem:[#allocation6 + $0x9f4] sm:$0xf0] }
 0x2c5   :  { %v6480_v16 = vld [vmem:[#allocation6 + $0x6d8] sm:$0xf]  ;;  %v6865_v36 = vor.u32 %v8501_v15, %v6864_v6  ;;  %4674 = vmatpush.bf16.msrb.mxu0 %v7025_v13 }
 0x2c6   :  { %4647 = vmatpush.bf16.msrb.mxu2 %v6545_v2  ;;  %v8405_v11 = vld [vmem:[#allocation6 + $0x6f4] sm:$0xf0]  ;;  %v4394_v2 = vpop.f32.mrf.mxu2 }
 0x2c7   :  { %v6992_v21 = vld [vmem:[#allocation6 + $0xad8] sm:$0xf]  ;;  %v6481_v37 = vor.u32 %v8405_v11, %v6480_v16  ;;  %v9295_v61 = vadd.f32 %v4394_v2, %v4382_v59  ;;  %v8225_v2 = vld [vmem:[#allocation6 + $0x15c] sm:$0xf] }
 0x2c8   :  { %4636 = vmatpush.bf16.msrb.mxu1 %v6225_v3  ;;  %v8533_v22 = vld [vmem:[#allocation6 + $0xaf4] sm:$0xf0]  ;;  %4612 = vmatpush.bf16.msrb.mxu3 %v5649_v7 }
 0x2c9   :  { %v6160_v23 = vld [vmem:[#allocation6 + $0x458] sm:$0xf]  ;;  %v6993_v41 = vor.u32 %v8533_v22, %v6992_v21 }
 0x2ca   :  { %v8325_v29 = vld [vmem:[#allocation6 + $0x474] sm:$0xf0]  ;;  %4648 = vmatpush.bf16.msrb.mxu2 %v6513_v10 }
 0x2cb   :  { %v6832_v42 = vld [vmem:[#allocation6 + $0x998] sm:$0xf]  ;;  %v6161_v48 = vor.u32 %v8325_v29, %v6160_v23  ;;  %4675 = vmatpush.bf16.msrb.mxu0 %v6993_v41  ;;  %v5842_v23 = vld [vmem:[#allocation6 + $0x1f8] sm:$0xf0] }
 0x2cc   :  { %v8493_v43 = vld [vmem:[#allocation6 + $0x9b4] sm:$0xf0]  ;;  %4637 = vmatpush.bf16.msrb.mxu1 %v6193_v20  ;;  %4613 = vmatpush.bf16.msrb.mxu3 %v5617_v25  ;;  %v8241_v25 = vld [vmem:[#allocation6 + $0x1dc] sm:$0xf] }
 0x2cd   :  { %v6448_v47 = vld [vmem:[#allocation6 + $0x698] sm:$0xf]  ;;  %v6833_v32 = vor.u32 %v8493_v43, %v6832_v42  ;;  %v5845_v44 = vor.u32 %v8241_v25, %v5842_v23 }
 0x2ce   :  { %v8397_v49 = vld [vmem:[#allocation6 + $0x6b4] sm:$0xf0]  ;;  %4649 = vmatpush.bf16.msrb.mxu2 %v6481_v37  ;;  %v4396_v43 = vpop.f32.mrf.mxu2 }
 0x2cf   :  { %v6960_v51 = vld [vmem:[#allocation6 + $0xa98] sm:$0xf]  ;;  %v6449_v55 = vor.u32 %v8397_v49, %v6448_v47  ;;  %4614 = vmatmul.bf16.vlgmr.msrb.gmra.mxu3 %v9141_v19  ;;  %v8209_v43 = vld [vmem:[#allocation6 + $0xdc] sm:$0xf] }
 0x2d0   :  { %v8525_v14 = vld [vmem:[#allocation6 + $0xab4] sm:$0xf0]  ;;  %4658 = vmatpush.bf16.msra.mxu3 %v6865_v36  ;;  %4638 = vmatpush.bf16.msrb.mxu1 %v6161_v48 }
 0x2d1   :  { %v6128_v50 = vld [vmem:[#allocation6 + $0x418] sm:$0xf]  ;;  %v6961_v57 = vor.u32 %v8525_v14, %v6960_v51  ;;  %v8233_v14 = vld [vmem:[#allocation6 + $0x19c] sm:$0xf] }
 0x2d2   :  { %v8317_v53 = vld [vmem:[#allocation6 + $0x434] sm:$0xf0]  ;;  %4650 = vmatpush.bf16.msrb.mxu2 %v6449_v55 }
 0x2d3   :  { %v7376_v56 = vld [vmem:[#allocation6 + $0xdd8] sm:$0xf]  ;;  %v6129_v12 = vor.u32 %v8317_v53, %v6128_v50  ;;  %4676 = vmatpush.bf16.msrb.mxu0 %v6961_v57  ;;  %v5810_v50 = vld [vmem:[#allocation6 + $0x1b8] sm:$0xf0] }
 0x2d4   :  { %v8629_v38 = vld [vmem:[#allocation6 + $0xdf4] sm:$0xf0]  ;;  %4659 = vmatpush.bf16.msra.mxu3 %v6833_v32  ;;  %v5813_v57 = vor.u32 %v8233_v14, %v5810_v50  ;;  %v9302_v14 = vpop.f32.mrf.mxu0 }
 0x2d5   :  { %v6800_v1 = vld [vmem:[#allocation6 + $0x958] sm:$0xf]  ;;  %v7377_v4 = vor.u32 %v8629_v38, %v7376_v56  ;;  %4639 = vmatpush.bf16.msrb.mxu1 %v6129_v12  ;;  %v5778_v12 = vld [vmem:[#allocation6 + $0x178] sm:$0xf0] }
 0x2d6   :  { %v8485_v63 = vld [vmem:[#allocation6 + $0x974] sm:$0xf0]  ;;  %v5781_v58 = vor.u32 %v8225_v2, %v5778_v12 }
 0x2d7   :  { %v6416_v45 = vld [vmem:[#allocation6 + $0x658] sm:$0xf]  ;;  %v6801_v0 = vor.u32 %v8485_v63, %v6800_v1 }
 0x2d8   :  { %v8389_v52 = vld [vmem:[#allocation6 + $0x674] sm:$0xf0]  ;;  %4640 = vmatmul.bf16.vlgmr.msrb.gmra.mxu1 %v9159_v33 }
 0x2d9   :  { %v6928_v3 = vld [vmem:[#allocation6 + $0xa58] sm:$0xf]  ;;  %v6417_v62 = vor.u32 %v8389_v52, %v6416_v45  ;;  %4684 = vmatpush.bf16.msra.mxu1 %v7377_v4  ;;  %4660 = vmatpush.bf16.msra.mxu3 %v6801_v0  ;;  %v4407_v4 = vpop.f32.mrf.mxu3 }
 0x2da   :  { %v8517_v26 = vld [vmem:[#allocation6 + $0xa74] sm:$0xf0] }
 0x2db   :  { %v6768_v7 = vld [vmem:[#allocation6 + $0x918] sm:$0xf]  ;;  %v6929_v10 = vor.u32 %v8517_v26, %v6928_v3  ;;  %4651 = vmatpush.bf16.msrb.mxu2 %v6417_v62 }
 0x2dc   :  { %v7344_v8 = vld [vmem:[#allocation6 + $0xd98] sm:$0xf] }
 0x2dd   :  { %v8621_v9 = vld [vmem:[#allocation6 + $0xdb4] sm:$0xf0]  ;;  %4677 = vmatpush.bf16.msrb.mxu0 %v6929_v10  ;;  %v4433_v10 = vpop.f32.mrf.mxu1 }
 0x2de   :  { %v8477_v13 = vld [vmem:[#allocation6 + $0x934] sm:$0xf0]  ;;  %v7345_v21 = vor.u32 %v8621_v9, %v7344_v8  ;;  %v4408_v8 = vadd.f32 %v4407_v4, %v9295_v61 }
 0x2df   :  { %v6384_v6 = vld [vmem:[#allocation6 + $0x618] sm:$0xf]  ;;  %v6769_v29 = vor.u32 %v8477_v13, %v6768_v7 }
 0x2e0   :  { %v8381_v15 = vld [vmem:[#allocation6 + $0x634] sm:$0xf0]  ;;  %4685 = vmatpush.bf16.msra.mxu1 %v7345_v21 }
 0x2e1   :  { %v6896_v16 = vld [vmem:[#allocation6 + $0xa18] sm:$0xf]  ;;  %v6385_v36 = vor.u32 %v8381_v15, %v6384_v6  ;;  %4661 = vmatpush.bf16.msra.mxu3 %v6769_v29  ;;  %v8217_v15 = vld [vmem:[#allocation6 + $0x11c] sm:$0xf] }
 0x2e2   :  { %v8509_v20 = vld [vmem:[#allocation6 + $0xa34] sm:$0xf0] }
 0x2e3   :  { %v7632_v11 = vld [vmem:[#allocation6 + $0xfd8] sm:$0xf]  ;;  %v6897_v37 = vor.u32 %v8509_v20, %v6896_v16  ;;  %4652 = vmatpush.bf16.msrb.mxu2 %v6385_v36  ;;  %v5746_v16 = vld [vmem:[#allocation6 + $0x138] sm:$0xf0]  ;;  %v4421_v20 = vadd.f32 %v9292_v60, %v4408_v8 }
 0x2e4   :  { %v8693_v22 = vld [vmem:[#allocation6 + $0xff4] sm:$0xf0] }
 0x2e5   :  { %v7312_v31 = vld [vmem:[#allocation6 + $0xd58] sm:$0xf]  ;;  %v7633_v47 = vor.u32 %v8693_v22, %v7632_v11  ;;  %4678 = vmatpush.bf16.msrb.mxu0 %v6897_v37  ;;  %v4434_v61 = vadd.f32 %v4433_v10, %v4421_v20  ;;  %v8193_v10 = vld [vmem:[#allocation6 + $0x5c] sm:$0xf] }
 0x2e6   :  { %v8613_v24 = vld [vmem:[#allocation6 + $0xd74] sm:$0xf0]  ;;  %4653 = vmatmul.bf16.vlgmr.msrb.gmra.mxu2 %v9146_v40 }
 0x2e7   :  { %v6736_v41 = vld [vmem:[#allocation6 + $0x8d8] sm:$0xf]  ;;  %v7313_v49 = vor.u32 %v8613_v24, %v7312_v31  ;;  %4697 = vmatpush.bf16.msra.mxu2 %v7633_v47  ;;  %v5749_v31 = vor.u32 %v8217_v15, %v5746_v16  ;;  %v5714_v47 = vld [vmem:[#allocation6 + $0xf8] sm:$0xf0] }
 0x2e8   :  { %v8469_v42 = vld [vmem:[#allocation6 + $0x8f4] sm:$0xf0]  ;;  %4679 = vmatmul.bf16.vlgmr.msrb.gmra.mxu0 %v9156_v28 }
 0x2e9   :  { %v7600_v48 = vld [vmem:[#allocation6 + $0xf98] sm:$0xf]  ;;  %v6737_v53 = vor.u32 %v8469_v42, %v6736_v41  ;;  %4723 = vmatpush.bf16.msra.mxu0 %v5845_v44  ;;  %4686 = vmatpush.bf16.msra.mxu1 %v7313_v49  ;;  %v4409_v49 = vpop.f32.mrf.mxu3 }
 0x2ea   :  { %v8685_v51 = vld [vmem:[#allocation6 + $0xfb4] sm:$0xf0] }
 0x2eb   :  { %v7280_v32 = vld [vmem:[#allocation6 + $0xd18] sm:$0xf]  ;;  %v7601_v55 = vor.u32 %v8685_v51, %v7600_v48  ;;  %4662 = vmatpush.bf16.msra.mxu3 %v6737_v53  ;;  %v5717_v53 = vor.u32 %v8209_v43, %v5714_v47  ;;  %v8497_v43 = vld [vmem:[#allocation6 + $0x9dc] sm:$0xf] }
 0x2ec   :  { %v8605_v56 = vld [vmem:[#allocation6 + $0xd34] sm:$0xf0]  ;;  %v6866_v47 = vld [vmem:[#allocation6 + $0x9f8] sm:$0xf0] }
 0x2ed   :  { %v6704_v38 = vld [vmem:[#allocation6 + $0x898] sm:$0xf]  ;;  %v7281_v63 = vor.u32 %v8605_v56, %v7280_v32  ;;  %4698 = vmatpush.bf16.msra.mxu2 %v7601_v55  ;;  %4724 = vmatpush.bf16.msra.mxu0 %v5813_v57 }
 0x2ee   :  { %v8461_v59 = vld [vmem:[#allocation6 + $0x8b4] sm:$0xf0] }
 0x2ef   :  { %v7568_v1 = vld [vmem:[#allocation6 + $0xf58] sm:$0xf]  ;;  %v6705_v52 = vor.u32 %v8461_v59, %v6704_v38  ;;  %4687 = vmatpush.bf16.msra.mxu1 %v7281_v63  ;;  %v4435_v59 = vpop.f32.mrf.mxu1  ;;  %v5682_v63 = vld [vmem:[#allocation6 + $0xb8] sm:$0xf0] }
 0x2f0   :  { %v8677_v45 = vld [vmem:[#allocation6 + $0xf74] sm:$0xf0]  ;;  %v8361_v59 = vld [vmem:[#allocation6 + $0x59c] sm:$0xf] }
 0x2f1   :  { %v7248_v3 = vld [vmem:[#allocation6 + $0xcd8] sm:$0xf]  ;;  %v7569_v9 = vor.u32 %v8677_v45, %v7568_v1  ;;  %4663 = vmatpush.bf16.msra.mxu3 %v6705_v52  ;;  %4725 = vmatpush.bf16.msra.mxu0 %v5781_v58  ;;  %v8201_v1 = vld [vmem:[#allocation6 + $0x9c] sm:$0xf] }
 0x2f2   :  { %v8597_v26 = vld [vmem:[#allocation6 + $0xcf4] sm:$0xf0]  ;;  %v8305_v52 = vld [vmem:[#allocation6 + $0x3dc] sm:$0xf]  ;;  %v5685_v4 = vor.u32 %v8201_v1, %v5682_v63 }
 0x2f3   :  { %v6672_v0 = vld [vmem:[#allocation6 + $0x858] sm:$0xf]  ;;  %v7249_v13 = vor.u32 %v8597_v26, %v7248_v3  ;;  %4699 = vmatpush.bf16.msra.mxu2 %v7569_v9  ;;  %v6098_v3 = vld [vmem:[#allocation6 + $0x3f8] sm:$0xf0]  ;;  %v4446_v9 = vpop.f32.mrf.mxu2 }
 0x2f4   :  { %v8453_v7 = vld [vmem:[#allocation6 + $0x874] sm:$0xf0]  ;;  %v6101_v15 = vor.u32 %v8305_v52, %v6098_v3  ;;  %v8489_v1 = vld [vmem:[#allocation6 + $0x99c] sm:$0xf] }
 0x2f5   :  { %v7536_v62 = vld [vmem:[#allocation6 + $0xf18] sm:$0xf]  ;;  %v6673_v11 = vor.u32 %v8453_v7, %v6672_v0  ;;  %4688 = vmatpush.bf16.msra.mxu1 %v7249_v13  ;;  %4726 = vmatpush.bf16.msra.mxu0 %v5749_v31  ;;  %v5650_v13 = vld [vmem:[#allocation6 + $0x78] sm:$0xf0] }
 0x2f6   :  { %v8669_v6 = vld [vmem:[#allocation6 + $0xf34] sm:$0xf0]  ;;  %v6834_v63 = vld [vmem:[#allocation6 + $0x9b8] sm:$0xf0] }
 0x2f7   :  { %v7216_v21 = vld [vmem:[#allocation6 + $0xc98] sm:$0xf]  ;;  %v7537_v29 = vor.u32 %v8669_v6, %v7536_v62  ;;  %4664 = vmatpush.bf16.msra.mxu3 %v6673_v11  ;;  %v9305_v6 = vadd.f32 %v4446_v9, %v4434_v61  ;;  %v8297_v11 = vld [vmem:[#allocation6 + $0x39c] sm:$0xf] }
 0x2f8   :  { %v8589_v22 = vld [vmem:[#allocation6 + $0xcb4] sm:$0xf0]  ;;  %v8481_v9 = vld [vmem:[#allocation6 + $0x95c] sm:$0xf] }
 0x2f9   :  { %v6640_v25 = vld [vmem:[#allocation6 + $0x818] sm:$0xf]  ;;  %v7217_v41 = vor.u32 %v8589_v22, %v7216_v21  ;;  %4700 = vmatpush.bf16.msra.mxu2 %v7537_v29  ;;  %4727 = vmatpush.bf16.msra.mxu0 %v5717_v53  ;;  %v6066_v21 = vld [vmem:[#allocation6 + $0x3b8] sm:$0xf0]  ;;  %v4474_v22 = vpop.f32.mrf.mxu0 }
 0x2fa   :  { %v8445_v23 = vld [vmem:[#allocation6 + $0x834] sm:$0xf0]  ;;  %v6069_v61 = vor.u32 %v8297_v11, %v6066_v21 }
 0x2fb   :  { %v7888_v24 = vld [vmem:[#allocation6 + $0x11d8] sm:$0xf]  ;;  %v6641_v60 = vor.u32 %v8445_v23, %v6640_v25  ;;  %4689 = vmatpush.bf16.msra.mxu1 %v7217_v41  ;;  %v5653_v23 = vor.u32 %v8193_v10, %v5650_v13  ;;  %v8369_v41 = vld [vmem:[#allocation6 + $0x5dc] sm:$0xf] }
 0x2fc   :  { %v8757_v36 = vld [vmem:[#allocation6 + $0x11f4] sm:$0xf0]  ;;  %v8273_v10 = vld [vmem:[#allocation6 + $0x2dc] sm:$0xf] }
 0x2fd   :  { %v7504_v37 = vld [vmem:[#allocation6 + $0xed8] sm:$0xf]  ;;  %v7889_v51 = vor.u32 %v8757_v36, %v7888_v24  ;;  %4665 = vmatpush.bf16.msra.mxu3 %v6641_v60  ;;  %4728 = vmatpush.bf16.msra.mxu0 %v5685_v4  ;;  %v8185_v36 = vld [vmem:[#allocation6 + $0x1c] sm:$0xf]  ;;  %v6837_v4 = vor.u32 %v8489_v1, %v6834_v63 }
 0x2fe   :  { %v8661_v42 = vld [vmem:[#allocation6 + $0xef4] sm:$0xf0]  ;;  %v5970_v13 = vld [vmem:[#allocation6 + $0x2f8] sm:$0xf0] }
 0x2ff   :  { %v7184_v44 = vld [vmem:[#allocation6 + $0xc58] sm:$0xf]  ;;  %v7505_v50 = vor.u32 %v8661_v42, %v7504_v37  ;;  %v5618_v37 = vld [vmem:[#allocation6 + $0x38] sm:$0xf0] }
 0x300   :  { %v8581_v48 = vld [vmem:[#allocation6 + $0xc74] sm:$0xf0]  ;;  %4666 = vmatmul.bf16.vlgmr.msra.gmra.mxu3 %v9154_v18  ;;  %v6354_v42 = vld [vmem:[#allocation6 + $0x5f8] sm:$0xf0] }
 0x301   :  { %v7856_v32 = vld [vmem:[#allocation6 + $0x1198] sm:$0xf]  ;;  %v7185_v55 = vor.u32 %v8581_v48, %v7184_v44  ;;  %4710 = vmatpush.bf16.msrb.mxu3 %v7889_v51  ;;  %4701 = vmatpush.bf16.msra.mxu2 %v7505_v50  ;;  %v8289_v44 = vld [vmem:[#allocation6 + $0x35c] sm:$0xf]  ;;  %v5621_v51 = vor.u32 %v8185_v36, %v5618_v37 }
 0x302   :  { %v8749_v56 = vld [vmem:[#allocation6 + $0x11b4] sm:$0xf0]  ;;  %v6034_v48 = vld [vmem:[#allocation6 + $0x378] sm:$0xf0]  ;;  %4729 = vmatpush.bf16.msra.mxu0 %v5653_v23  ;;  %v4485_v23 = vpop.f32.mrf.mxu1 }
 0x303   :  { %v7472_v38 = vld [vmem:[#allocation6 + $0xe98] sm:$0xf]  ;;  %v7857_v12 = vor.u32 %v8749_v56, %v7856_v32  ;;  %4690 = vmatpush.bf16.msra.mxu1 %v7185_v55  ;;  %v4448_v32 = vpop.f32.mrf.mxu2  ;;  %v6357_v56 = vor.u32 %v8369_v41, %v6354_v42  ;;  %v6037_v55 = vor.u32 %v8289_v44, %v6034_v48  ;;  %v6770_v36 = vld [vmem:[#allocation6 + $0x938] sm:$0xf0] }
 0x304   :  { %v8653_v57 = vld [vmem:[#allocation6 + $0xeb4] sm:$0xf0]  ;;  %v8265_v41 = vld [vmem:[#allocation6 + $0x29c] sm:$0xf] }
 0x305   :  { %v7152_v45 = vld [vmem:[#allocation6 + $0xc18] sm:$0xf]  ;;  %v7473_v26 = vor.u32 %v8653_v57, %v7472_v38  ;;  %4711 = vmatpush.bf16.msrb.mxu3 %v7857_v12  ;;  %v6869_v38 = vor.u32 %v8497_v43, %v6866_v47  ;;  %v6322_v57 = vld [vmem:[#allocation6 + $0x5b8] sm:$0xf0] }
 0x306   :  { %v8573_v2 = vld [vmem:[#allocation6 + $0xc34] sm:$0xf0]  ;;  %v6002_v12 = vld [vmem:[#allocation6 + $0x338] sm:$0xf0]  ;;  %4730 = vmatpush.bf16.msra.mxu0 %v5621_v51 }
 0x307   :  { %v7824_v0 = vld [vmem:[#allocation6 + $0x1158] sm:$0xf]  ;;  %v7153_v58 = vor.u32 %v8573_v2, %v7152_v45  ;;  %4702 = vmatpush.bf16.msra.mxu2 %v7473_v26  ;;  %v8281_v2 = vld [vmem:[#allocation6 + $0x31c] sm:$0xf]  ;;  %v6325_v26 = vor.u32 %v8361_v59, %v6322_v57  ;;  %v9314_v57 = vpop.f32.mrf.mxu0 }
 0x308   :  { %v8741_v7 = vld [vmem:[#allocation6 + $0x1174] sm:$0xf0]  ;;  %v8433_v44 = vld [vmem:[#allocation6 + $0x7dc] sm:$0xf] }
 0x309   :  { %v7440_v8 = vld [vmem:[#allocation6 + $0xe58] sm:$0xf]  ;;  %v7825_v16 = vor.u32 %v8741_v7, %v7824_v0  ;;  %4691 = vmatpush.bf16.msra.mxu1 %v7153_v58  ;;  %v8353_v0 = vld [vmem:[#allocation6 + $0x55c] sm:$0xf]  ;;  %v6005_v7 = vor.u32 %v8281_v2, %v6002_v12  ;;  %4731 = vmatmul.bf16.vlgmr.msra.gmra.mxu0 %v9141_v19 }
 0x30a   :  { %v8645_v62 = vld [vmem:[#allocation6 + $0xe74] sm:$0xf0]  ;;  %4775 = vmatpush.bf16.msrb.mxu0 %v6869_v38  ;;  %v6802_v58 = vld [vmem:[#allocation6 + $0x978] sm:$0xf0] }
 0x30b   :  { %v7792_v20 = vld [vmem:[#allocation6 + $0x1118] sm:$0xf]  ;;  %v7441_v25 = vor.u32 %v8645_v62, %v7440_v8  ;;  %4712 = vmatpush.bf16.msrb.mxu3 %v7825_v16  ;;  %v6290_v8 = vld [vmem:[#allocation6 + $0x578] sm:$0xf0]  ;;  %v6805_v22 = vor.u32 %v8481_v9, %v6802_v58 }
 0x30c   :  { %v8733_v29 = vld [vmem:[#allocation6 + $0x1134] sm:$0xf0]  ;;  %4692 = vmatmul.bf16.vlgmr.msra.gmra.mxu1 %v9170_v46  ;;  %v6293_v21 = vor.u32 %v8353_v0, %v6290_v8  ;;  %v6610_v48 = vld [vmem:[#allocation6 + $0x7f8] sm:$0xf0] }
 0x30d   :  { %v7408_v31 = vld [vmem:[#allocation6 + $0xe18] sm:$0xf]  ;;  %4736 = vmatpush.bf16.msrb.mxu1 %v6101_v15  ;;  %v7793_v60 = vor.u32 %v8733_v29, %v7792_v20  ;;  %4703 = vmatpush.bf16.msra.mxu2 %v7441_v25  ;;  %v4459_v15 = vpop.f32.mrf.mxu3  ;;  %v8345_v25 = vld [vmem:[#allocation6 + $0x51c] sm:$0xf]  ;;  %v5973_v29 = vor.u32 %v8273_v10, %v5970_v13 }
 0x30e   :  { %v8637_v24 = vld [vmem:[#allocation6 + $0xe34] sm:$0xf0]  ;;  %v4460_v11 = vadd.f32 %v4459_v15, %v9305_v6  ;;  %4776 = vmatpush.bf16.msrb.mxu0 %v6837_v4  ;;  %v5906_v38 = vld [vmem:[#allocation6 + $0x278] sm:$0xf0] }
 0x30f   :  { %v7409_v49 = vor.u32 %v8637_v24, %v7408_v31  ;;  %v7760_v50 = vld [vmem:[#allocation6 + $0x10d8] sm:$0xf]  ;;  %4713 = vmatpush.bf16.msrb.mxu3 %v7793_v60  ;;  %v6258_v31 = vld [vmem:[#allocation6 + $0x538] sm:$0xf0] }
 0x310   :  { %v8725_v53 = vld [vmem:[#allocation6 + $0x10f4] sm:$0xf0]  ;;  %v8473_v24 = vld [vmem:[#allocation6 + $0x91c] sm:$0xf]  ;;  %v4473_v37 = vadd.f32 %v9302_v14, %v4460_v11  ;;  %v6261_v47 = vor.u32 %v8345_v25, %v6258_v31  ;;  %v9316_v11 = vpop.f32.mrf.mxu2 }
 0x311   :  { %4737 = vmatpush.bf16.msrb.mxu1 %v6069_v61  ;;  %v7761_v45 = vor.u32 %v8725_v53, %v7760_v50  ;;  %4704 = vmatpush.bf16.msra.mxu2 %v7409_v49  ;;  %v7728_v52 = vld [vmem:[#allocation6 + $0x1098] sm:$0xf]  ;;  %v5938_v61 = vld [vmem:[#allocation6 + $0x2b8] sm:$0xf0]  ;;  %v6773_v60 = vor.u32 %v8473_v24, %v6770_v36 }
 0x312   :  { %v8717_v3 = vld [vmem:[#allocation6 + $0x10b4] sm:$0xf0]  ;;  %v9312_v6 = vadd.f32 %v4485_v23, %v4473_v37  ;;  %4777 = vmatpush.bf16.msrb.mxu0 %v6805_v22  ;;  %v8337_v49 = vld [vmem:[#allocation6 + $0x4dc] sm:$0xf]  ;;  %v5941_v51 = vor.u32 %v8265_v41, %v5938_v61 }
 0x313   :  { %4714 = vmatpush.bf16.msrb.mxu3 %v7761_v45  ;;  %v7729_v62 = vor.u32 %v8717_v3, %v7728_v52  ;;  %v7696_v16 = vld [vmem:[#allocation6 + $0x1058] sm:$0xf]  ;;  %v6226_v50 = vld [vmem:[#allocation6 + $0x4f8] sm:$0xf0]  ;;  %v4487_v52 = vpop.f32.mrf.mxu1 }
 0x314   :  { %4705 = vmatmul.bf16.vlgmr.msra.gmra.mxu2 %v9161_v34  ;;  %v8709_v20 = vld [vmem:[#allocation6 + $0x1074] sm:$0xf0]  ;;  %v8465_v53 = vld [vmem:[#allocation6 + $0x8dc] sm:$0xf]  ;;  %v6229_v1 = vor.u32 %v8337_v49, %v6226_v50 }
 0x315   :  { %4749 = vmatpush.bf16.msrb.mxu2 %v6357_v56  ;;  %4738 = vmatpush.bf16.msrb.mxu1 %v6037_v55  ;;  %v7697_v19 = vor.u32 %v8709_v20, %v7696_v16  ;;  %v7664_v42 = vld [vmem:[#allocation6 + $0x1018] sm:$0xf]  ;;  %v6738_v14 = vld [vmem:[#allocation6 + $0x8f8] sm:$0xf0]  ;;  %v4461_v59 = vpop.f32.mrf.mxu3  ;;  %v6613_v55 = vor.u32 %v8433_v44, %v6610_v48 }
 0x316   :  { %v8701_v43 = vld [vmem:[#allocation6 + $0x1034] sm:$0xf0]  ;;  %v8257_v56 = vld [vmem:[#allocation6 + $0x25c] sm:$0xf]  ;;  %4778 = vmatpush.bf16.msrb.mxu0 %v6773_v60  ;;  %v6741_v63 = vor.u32 %v8465_v53, %v6738_v14 }
 0x317   :  { %4715 = vmatpush.bf16.msrb.mxu3 %v7729_v62  ;;  %v7665_v32 = vor.u32 %v8701_v43, %v7664_v42  ;;  %v8425_v45 = vld [vmem:[#allocation6 + $0x79c] sm:$0xf]  ;;  %v5909_v3 = vor.u32 %v8257_v56, %v5906_v38 }
 0x318   :  { %v6578_v2 = vld [vmem:[#allocation6 + $0x7b8] sm:$0xf0] }
 0x319   :  { %4750 = vmatpush.bf16.msrb.mxu2 %v6325_v26  ;;  %4739 = vmatpush.bf16.msrb.mxu1 %v6005_v7  ;;  %v8329_v12 = vld [vmem:[#allocation6 + $0x49c] sm:$0xf]  ;;  %v6581_v9 = vor.u32 %v8425_v45, %v6578_v2 }
 0x31a   :  { %v6194_v26 = vld [vmem:[#allocation6 + $0x4b8] sm:$0xf0]  ;;  %4779 = vmatpush.bf16.msrb.mxu0 %v6741_v63  ;;  %v4500_v63 = vpop.f32.mrf.mxu2 }
 0x31b   :  { %4716 = vmatpush.bf16.msrb.mxu3 %v7697_v19  ;;  %v8457_v4 = vld [vmem:[#allocation6 + $0x89c] sm:$0xf]  ;;  %v6197_v10 = vor.u32 %v8329_v12, %v6194_v26  ;;  %v4526_v19 = vpop.f32.mrf.mxu0 }
 0x31c   :  { %v6706_v0 = vld [vmem:[#allocation6 + $0x8b8] sm:$0xf0] }
 0x31d   :  { %4751 = vmatpush.bf16.msrb.mxu2 %v6293_v21  ;;  %4740 = vmatpush.bf16.msrb.mxu1 %v5973_v29  ;;  %v8249_v7 = vld [vmem:[#allocation6 + $0x21c] sm:$0xf]  ;;  %v6709_v13 = vor.u32 %v8457_v4, %v6706_v0  ;;  %v1013_v0 = vperm.slane %v9289_v30, 5 }
 0x31e   :  { %v5874_v8 = vld [vmem:[#allocation6 + $0x238] sm:$0xf0] }
 0x31f   :  { %4717 = vmatpush.bf16.msrb.mxu3 %v7665_v32  ;;  %v8561_v58 = vld [vmem:[#allocation6 + $0xbdc] sm:$0xf]  ;;  %v5877_v21 = vor.u32 %v8249_v7, %v5874_v8  ;;  %4780 = vmatpush.bf16.msrb.mxu0 %v6709_v13  ;;  %v4499_v30 = vadd.f32 %v9316_v11, %v1013_v0 }
 0x320   :  { %v7122_v62 = vld [vmem:[#allocation6 + $0xbf8] sm:$0xf0] }
 0x321   :  { %4752 = vmatpush.bf16.msrb.mxu2 %v6261_v47  ;;  %4741 = vmatpush.bf16.msrb.mxu1 %v5941_v51  ;;  %v8417_v15 = vld [vmem:[#allocation6 + $0x75c] sm:$0xf]  ;;  %v7125_v29 = vor.u32 %v8561_v58, %v7122_v62 }
 0x322   :  { %v6546_v16 = vld [vmem:[#allocation6 + $0x778] sm:$0xf0]  ;;  %4718 = vmatmul.bf16.vlgmr.msrb.gmra.mxu3 %v9167_v27 }
 0x323   :  { %4762 = vmatpush.bf16.msra.mxu3 %v6613_v55  ;;  %v8321_v20 = vld [vmem:[#allocation6 + $0x45c] sm:$0xf]  ;;  %v6549_v31 = vor.u32 %v8417_v15, %v6546_v16 }
 0x324   :  { %v6162_v22 = vld [vmem:[#allocation6 + $0x478] sm:$0xf0] }
 0x325   :  { %4753 = vmatpush.bf16.msrb.mxu2 %v6229_v1  ;;  %4742 = vmatpush.bf16.msrb.mxu1 %v5909_v3  ;;  %v8449_v25 = vld [vmem:[#allocation6 + $0x85c] sm:$0xf]  ;;  %v6165_v41 = vor.u32 %v8321_v20, %v6162_v22 }
 0x326   :  { %v6674_v23 = vld [vmem:[#allocation6 + $0x878] sm:$0xf0] }
 0x327   :  { %4763 = vmatpush.bf16.msra.mxu3 %v6581_v9  ;;  %v8409_v24 = vld [vmem:[#allocation6 + $0x71c] sm:$0xf]  ;;  %v6677_v61 = vor.u32 %v8449_v25, %v6674_v23 }
 0x328   :  { %v8553_v36 = vld [vmem:[#allocation6 + $0xb9c] sm:$0xf] }
 0x329   :  { %v7090_v37 = vld [vmem:[#allocation6 + $0xbb8] sm:$0xf0]  ;;  %4754 = vmatpush.bf16.msrb.mxu2 %v6197_v10  ;;  %4743 = vmatpush.bf16.msrb.mxu1 %v5877_v21 }
 0x32a   :  { %v6514_v42 = vld [vmem:[#allocation6 + $0x738] sm:$0xf0]  ;;  %v7093_v49 = vor.u32 %v8553_v36, %v7090_v37  ;;  %4781 = vmatpush.bf16.msrb.mxu0 %v6677_v61  ;;  %v4537_v61 = vpop.f32.mrf.mxu1 }
 0x32b   :  { %v8313_v43 = vld [vmem:[#allocation6 + $0x41c] sm:$0xf]  ;;  %4764 = vmatpush.bf16.msra.mxu3 %v6549_v31  ;;  %v6517_v14 = vor.u32 %v8409_v24, %v6514_v42 }
 0x32c   :  { %v6130_v47 = vld [vmem:[#allocation6 + $0x438] sm:$0xf0]  ;;  %4744 = vmatmul.bf16.vlgmr.msrb.gmra.mxu1 %v9144_v39 }
 0x32d   :  { %v8441_v60 = vld [vmem:[#allocation6 + $0x81c] sm:$0xf]  ;;  %4788 = vmatpush.bf16.msra.mxu1 %v7125_v29  ;;  %4755 = vmatpush.bf16.msrb.mxu2 %v6165_v41  ;;  %v6133_v38 = vor.u32 %v8313_v43, %v6130_v47  ;;  %v4511_v29 = vpop.f32.mrf.mxu3 }
 0x32e   :  { %v6642_v44 = vld [vmem:[#allocation6 + $0x838] sm:$0xf0]  ;;  %v4512_v36 = vadd.f32 %v4511_v29, %v4499_v30 }
 0x32f   :  { %v8625_v48 = vld [vmem:[#allocation6 + $0xddc] sm:$0xf]  ;;  %v6645_v59 = vor.u32 %v8441_v60, %v6642_v44  ;;  %4765 = vmatpush.bf16.msra.mxu3 %v6517_v14 }
 0x330   :  { %v7378_v51 = vld [vmem:[#allocation6 + $0xdf8] sm:$0xf0]  ;;  %v4525_v47 = vadd.f32 %v9314_v57, %v4512_v36  ;;  %v8765_v36 = vld [vmem:[#allocation9 + $0x38] sm:$0xff] }
 0x331   :  { %v8753_v50 = vld [vmem:[#allocation6 + $0x11dc] sm:$0xf]  ;;  %v7381_v45 = vor.u32 %v8625_v48, %v7378_v51  ;;  %4789 = vmatpush.bf16.msra.mxu1 %v7093_v49  ;;  %4756 = vmatpush.bf16.msrb.mxu2 %v6133_v38 }
 0x332   :  { %v7890_v53 = vld [vmem:[#allocation6 + $0x11f8] sm:$0xf0]  ;;  %4782 = vmatpush.bf16.msrb.mxu0 %v6645_v59  ;;  %v9325_v51 = vadd.f32 %v4537_v61, %v4525_v47 }
 0x333   :  { %v8545_v32 = vld [vmem:[#allocation6 + $0xb5c] sm:$0xf]  ;;  %v7893_v2 = vor.u32 %v8753_v50, %v7890_v53 }
 0x334   :  { %v7058_v56 = vld [vmem:[#allocation6 + $0xb78] sm:$0xf0]  ;;  %4757 = vmatmul.bf16.vlgmr.msrb.gmra.mxu2 %v9159_v33 }
 0x335   :  { %v8401_v55 = vld [vmem:[#allocation6 + $0x6dc] sm:$0xf]  ;;  %v7061_v52 = vor.u32 %v8545_v32, %v7058_v56  ;;  %4801 = vmatpush.bf16.msra.mxu2 %v7381_v45  ;;  %4783 = vmatmul.bf16.vlgmr.msrb.gmra.mxu0 %v9154_v18 }
 0x336   :  { %v6482_v1 = vld [vmem:[#allocation6 + $0x6f8] sm:$0xf0]  ;;  %4827 = vmatpush.bf16.msra.mxu0 %v7893_v2  ;;  %v4513_v2 = vpop.f32.mrf.mxu3 }
 0x337   :  { %v8617_v12 = vld [vmem:[#allocation6 + $0xd9c] sm:$0xf]  ;;  %v6485_v7 = vor.u32 %v8401_v55, %v6482_v1  ;;  %4790 = vmatpush.bf16.msra.mxu1 %v7061_v52  ;;  %v9327_v52 = vpop.f32.mrf.mxu0 }
 0x338   :  { %v7346_v3 = vld [vmem:[#allocation6 + $0xdb8] sm:$0xf0] }
 0x339   :  { %v8745_v26 = vld [vmem:[#allocation6 + $0x119c] sm:$0xf]  ;;  %v7349_v39 = vor.u32 %v8617_v12, %v7346_v3  ;;  %4766 = vmatpush.bf16.msra.mxu3 %v6485_v7 }
 0x33a   :  { %v7858_v4 = vld [vmem:[#allocation6 + $0x11b8] sm:$0xf0] }
 0x33b   :  { %v8537_v8 = vld [vmem:[#allocation6 + $0xb1c] sm:$0xf]  ;;  %v7861_v10 = vor.u32 %v8745_v26, %v7858_v4  ;;  %4802 = vmatpush.bf16.msra.mxu2 %v7349_v39 }
 0x33c   :  { %v7026_v9 = vld [vmem:[#allocation6 + $0xb38] sm:$0xf0] }
 0x33d   :  { %v8393_v58 = vld [vmem:[#allocation6 + $0x69c] sm:$0xf]  ;;  %v7029_v15 = vor.u32 %v8537_v8, %v7026_v9  ;;  %4828 = vmatpush.bf16.msra.mxu0 %v7861_v10  ;;  %v4539_v8 = vpop.f32.mrf.mxu1 }
 0x33e   :  { %v6450_v62 = vld [vmem:[#allocation6 + $0x6b8] sm:$0xf0]  ;;  %v4563_v2 = vpop.f32.mrf.mxu3  ;;  %v8761_v8 = vld [vmem:[#allocation9 + $0x18] sm:$0xff] }
 0x33f   :  { %v8609_v13 = vld [vmem:[#allocation6 + $0xd5c] sm:$0xf]  ;;  %v6453_v22 = vor.u32 %v8393_v58, %v6450_v62  ;;  %4791 = vmatpush.bf16.msra.mxu1 %v7029_v15 }
 0x340   :  { %v7314_v16 = vld [vmem:[#allocation6 + $0xd78] sm:$0xf0] }
 0x341   :  { %v8737_v20 = vld [vmem:[#allocation6 + $0x115c] sm:$0xf]  ;;  %v7317_v37 = vor.u32 %v8609_v13, %v7314_v16  ;;  %4767 = vmatpush.bf16.msra.mxu3 %v6453_v22 }
 0x342   :  { %v7826_v21 = vld [vmem:[#allocation6 + $0x1178] sm:$0xf0] }
 0x343   :  { %v8529_v25 = vld [vmem:[#allocation6 + $0xadc] sm:$0xf]  ;;  %v7829_v19 = vor.u32 %v8737_v20, %v7826_v21  ;;  %4803 = vmatpush.bf16.msra.mxu2 %v7317_v37 }
 0x344   :  { %v6994_v23 = vld [vmem:[#allocation6 + $0xaf8] sm:$0xf0] }
 0x345   :  { %v8385_v31 = vld [vmem:[#allocation6 + $0x65c] sm:$0xf]  ;;  %v6997_v11 = vor.u32 %v8529_v25, %v6994_v23  ;;  %4829 = vmatpush.bf16.msra.mxu0 %v7829_v19  ;;  %v4550_v25 = vpop.f32.mrf.mxu2  ;;  %v4578_v19 = vpop.f32.mrf.mxu0 }
 0x346   :  { %v6418_v24 = vld [vmem:[#allocation6 + $0x678] sm:$0xf0] }
 0x347   :  { %v8601_v41 = vld [vmem:[#allocation6 + $0xd1c] sm:$0xf]  ;;  %v6421_v60 = vor.u32 %v8385_v31, %v6418_v24  ;;  %4792 = vmatpush.bf16.msra.mxu1 %v6997_v11 }
 0x348   :  { %v7282_v42 = vld [vmem:[#allocation6 + $0xd38] sm:$0xf0] }
 0x349   :  { %v8729_v33 = vld [vmem:[#allocation6 + $0x111c] sm:$0xf]  ;;  %v7285_v50 = vor.u32 %v8601_v41, %v7282_v42  ;;  %4768 = vmatpush.bf16.msra.mxu3 %v6421_v60 }
 0x34a   :  { %v7794_v43 = vld [vmem:[#allocation6 + $0x1138] sm:$0xf0] }
 0x34b   :  { %v8521_v18 = vld [vmem:[#allocation6 + $0xa9c] sm:$0xf]  ;;  %v7797_v53 = vor.u32 %v8729_v33, %v7794_v43  ;;  %4804 = vmatpush.bf16.msra.mxu2 %v7285_v50 }
 0x34c   :  { %v6962_v44 = vld [vmem:[#allocation6 + $0xab8] sm:$0xf0] }
 0x34d   :  { %v8377_v48 = vld [vmem:[#allocation6 + $0x61c] sm:$0xf]  ;;  %v6965_v38 = vor.u32 %v8521_v18, %v6962_v44  ;;  %4830 = vmatpush.bf16.msra.mxu0 %v7797_v53  ;;  %v4552_v53 = vpop.f32.mrf.mxu2 }
 0x34e   :  { %v6386_v49 = vld [vmem:[#allocation6 + $0x638] sm:$0xf0]  ;;  %v8794_v53 = vld [vmem:[#allocation9 + $0x120] sm:$0xff] }
 0x34f   :  { %v8689_v14 = vld [vmem:[#allocation6 + $0xfdc] sm:$0xf]  ;;  %v6389_v1 = vor.u32 %v8377_v48, %v6386_v49  ;;  %4793 = vmatpush.bf16.msra.mxu1 %v6965_v38 }
 0x350   :  { %v7634_v32 = vld [vmem:[#allocation6 + $0xff8] sm:$0xf0] }
 0x351   :  { %v8593_v56 = vld [vmem:[#allocation6 + $0xcdc] sm:$0xf]  ;;  %v7637_v12 = vor.u32 %v8689_v14, %v7634_v32  ;;  %4769 = vmatpush.bf16.msra.mxu3 %v6389_v1  ;;  %v8773_v14 = vld [vmem:[#allocation9 + $0x78] sm:$0xff] }
 0x352   :  { %v7250_v59 = vld [vmem:[#allocation6 + $0xcf8] sm:$0xf0]  ;;  %v8789_v32 = vld [vmem:[#allocation9 + $0xf8] sm:$0xff] }
 0x353   :  { %v8721_v55 = vld [vmem:[#allocation6 + $0x10dc] sm:$0xf]  ;;  %v7253_v3 = vor.u32 %v8593_v56, %v7250_v59  ;;  %v8763_v56 = vld [vmem:[#allocation9 + $0x28] sm:$0xff] }
 0x354   :  { %v7762_v57 = vld [vmem:[#allocation6 + $0x10f8] sm:$0xf0]  ;;  %4770 = vmatmul.bf16.vlgmr.msra.gmra.mxu3 %v9146_v40 }
 0x355   :  { %v8513_v63 = vld [vmem:[#allocation6 + $0xa5c] sm:$0xf]  ;;  %v7765_v26 = vor.u32 %v8721_v55, %v7762_v57  ;;  %4814 = vmatpush.bf16.msrb.mxu3 %v7637_v12  ;;  %4805 = vmatpush.bf16.msra.mxu2 %v7253_v3 }
 0x356   :  { %v6930_v45 = vld [vmem:[#allocation6 + $0xa78] sm:$0xf0] }
 0x357   :  { %v8681_v4 = vld [vmem:[#allocation6 + $0xf9c] sm:$0xf]  ;;  %v6933_v9 = vor.u32 %v8513_v63, %v6930_v45  ;;  %4831 = vmatpush.bf16.msra.mxu0 %v7765_v26  ;;  %v8762_v63 = vld [vmem:[#allocation9 + $0x20] sm:$0xff]  ;;  %v4551_v45 = vadd.f32 %v4550_v25, %v9325_v51 }
 0x358   :  { %v7602_v0 = vld [vmem:[#allocation6 + $0xfb8] sm:$0xf0] }
 0x359   :  { %v8585_v7 = vld [vmem:[#allocation6 + $0xc9c] sm:$0xf]  ;;  %v7605_v15 = vor.u32 %v8681_v4, %v7602_v0  ;;  %4794 = vmatpush.bf16.msra.mxu1 %v6933_v9  ;;  %v4564_v26 = vadd.f32 %v4563_v2, %v4551_v45  ;;  %v8771_v4 = vld [vmem:[#allocation9 + $0x68] sm:$0xff]  ;;  %v8813_v45 = vld [vmem:[#allocation9 + $0x1b8] sm:$0xff] }
 0x35a   :  { %v7218_v58 = vld [vmem:[#allocation6 + $0xcb8] sm:$0xf0]  ;;  %v8787_v0 = vld [vmem:[#allocation9 + $0xe8] sm:$0xff]  ;;  %v8801_v2 = vld [vmem:[#allocation9 + $0x158] sm:$0xff] }
 0x35b   :  { %v8713_v62 = vld [vmem:[#allocation6 + $0x109c] sm:$0xf]  ;;  %v7221_v16 = vor.u32 %v8585_v7, %v7218_v58  ;;  %4815 = vmatpush.bf16.msrb.mxu3 %v7605_v15  ;;  %v9334_v7 = vpop.f32.mrf.mxu1  ;;  %v9337_v51 = vadd.f32 %v9327_v52, %v4564_v26  ;;  %v8781_v15 = vld [vmem:[#allocation9 + $0xb8] sm:$0xff] }
 0x35c   :  { %v7730_v39 = vld [vmem:[#allocation6 + $0x10b8] sm:$0xf0]  ;;  %v8769_v52 = vld [vmem:[#allocation9 + $0x58] sm:$0xff] }
 0x35d   :  { %v8505_v10 = vld [vmem:[#allocation6 + $0xa1c] sm:$0xf]  ;;  %v7733_v20 = vor.u32 %v8713_v62, %v7730_v39  ;;  %4806 = vmatpush.bf16.msra.mxu2 %v7221_v16  ;;  %v8786_v62 = vld [vmem:[#allocation9 + $0xe0] sm:$0xff]  ;;  %v9339_v16 = vpop.f32.mrf.mxu0 }
 0x35e   :  { %v6898_v13 = vld [vmem:[#allocation6 + $0xa38] sm:$0xf0] }
 0x35f   :  { %v8673_v21 = vld [vmem:[#allocation6 + $0xf5c] sm:$0xf]  ;;  %v6901_v23 = vor.u32 %v8505_v10, %v6898_v13  ;;  %4832 = vmatpush.bf16.msra.mxu0 %v7733_v20  ;;  %v4565_v13 = vpop.f32.mrf.mxu3  ;;  %v8785_v20 = vld [vmem:[#allocation9 + $0xd8] sm:$0xff] }
 0x360   :  { %v7570_v30 = vld [vmem:[#allocation6 + $0xf78] sm:$0xf0]  ;;  %v8810_v13 = vld [vmem:[#allocation9 + $0x1a0] sm:$0xff] }
 0x361   :  { %v8577_v22 = vld [vmem:[#allocation6 + $0xc5c] sm:$0xf]  ;;  %v7573_v37 = vor.u32 %v8673_v21, %v7570_v30  ;;  %4795 = vmatpush.bf16.msra.mxu1 %v6901_v23  ;;  %v8759_v30 = vld [vmem:[#allocation9 + $0x8] sm:$0xff] }
 0x362   :  { %v7186_v29 = vld [vmem:[#allocation6 + $0xc78] sm:$0xf0] }
 0x363   :  { %v8705_v31 = vld [vmem:[#allocation6 + $0x105c] sm:$0xf]  ;;  %v7189_v41 = vor.u32 %v8577_v22, %v7186_v29  ;;  %4816 = vmatpush.bf16.msrb.mxu3 %v7573_v37  ;;  %v4591_v21 = vpop.f32.mrf.mxu1  ;;  %v9341_v29 = vpop.f32.mrf.mxu2  ;;  %v8779_v37 = vld [vmem:[#allocation9 + $0xa8] sm:$0xff] }
 0x364   :  { %v7698_v24 = vld [vmem:[#allocation6 + $0x1078] sm:$0xf0]  ;;  %4796 = vmatmul.bf16.vlgmr.msra.gmra.mxu1 %v9156_v28 }
 0x365   :  { %v7701_v61 = vor.u32 %v8705_v31, %v7698_v24  ;;  %v8665_v11 = vld [vmem:[#allocation6 + $0xf1c] sm:$0xf]  ;;  %5372 = vmatpush.bf16.msrb.mxu1 %v8765_v36  ;;  %4807 = vmatpush.bf16.msra.mxu2 %v7189_v41  ;;  %v8758_v31 = vld [vmem:[#allocation9] sm:$0xff]  ;;  %v8797_v24 = vld [vmem:[#allocation9 + $0x138] sm:$0xff]  ;;  %v4840_v36 = vmax.f32 %v9214_v17, 0.0  ;;  %v4630_v19 = vpop.f32.mrf.mxu0 }
 0x366   :  { %v7538_v42 = vld [vmem:[#allocation6 + $0xf38] sm:$0xf0]  ;;  %v8767_v41 = vld [vmem:[#allocation9 + $0x48] sm:$0xff] }
 0x367   :  { %v8569_v33 = vld [vmem:[#allocation6 + $0xc1c] sm:$0xf]  ;;  %v7541_v18 = vor.u32 %v8665_v11, %v7538_v42  ;;  %4833 = vmatpush.bf16.msra.mxu0 %v7701_v61  ;;  %v8783_v61 = vld [vmem:[#allocation9 + $0xc8] sm:$0xff]  ;;  %v4848_v42 = vpack.c.bf16 %v4840_v36, %v4840_v36 }
 0x368   :  { %v7154_v43 = vld [vmem:[#allocation6 + $0xc38] sm:$0xf0] }
 0x369   :  { %v8697_v47 = vld [vmem:[#allocation6 + $0x101c] sm:$0xf]  ;;  %v7157_v44 = vor.u32 %v8569_v33, %v7154_v43  ;;  %4817 = vmatpush.bf16.msrb.mxu3 %v7541_v18  ;;  %v8778_v33 = vld [vmem:[#allocation9 + $0xa0] sm:$0xff]  ;;  %v8795_v18 = vld [vmem:[#allocation9 + $0x128] sm:$0xff] }
 0x36a   :  { %v7666_v40 = vld [vmem:[#allocation6 + $0x1038] sm:$0xf0]  ;;  %v8782_v43 = vld [vmem:[#allocation9 + $0xc0] sm:$0xff] }
 0x36b   :  { %v8764_v60 = vld [vmem:[#allocation9 + $0x30] sm:$0xff]  ;;  %v7669_v48 = vor.u32 %v8697_v47, %v7666_v40  ;;  %4808 = vmatpush.bf16.msra.mxu2 %v7157_v44  ;;  %v4841_v47 = vmax.f32 %v9235_v35, 0.0  ;;  %v4604_v17 = vpop.f32.mrf.mxu2  ;;  %v8805_v40 = vld [vmem:[#allocation9 + $0x178] sm:$0xff] }
 0x36c   :  { %v8657_v49 = vld [vmem:[#allocation6 + $0xedc] sm:$0xf]  ;;  %5373 = vmatpush.bf16.msrb.mxu1 %v8764_v60  ;;  %v4843_v60 = vmax.f32 %v9287_v5, 0.0  ;;  %v8777_v44 = vld [vmem:[#allocation9 + $0x98] sm:$0xff]  ;;  %v8803_v5 = vld [vmem:[#allocation9 + $0x168] sm:$0xff] }
 0x36d   :  { %v7506_v50 = vld [vmem:[#allocation6 + $0xef8] sm:$0xf0]  ;;  %4834 = vmatpush.bf16.msra.mxu0 %v7669_v48  ;;  %v4849_v48 = vpack.c.bf16 %v4841_v47, %v4841_v47 }
 0x36e   :  { %v7509_v38 = vor.u32 %v8657_v49, %v7506_v50  ;;  %v8649_v59 = vld [vmem:[#allocation6 + $0xe9c] sm:$0xf]  ;;  %4809 = vmatmul.bf16.vlgmr.msra.gmra.mxu2 %v9170_v46  ;;  %v4851_v50 = vpack.c.bf16 %v4843_v60, %v4843_v60 }
 0x36f   :  { %v7474_v55 = vld [vmem:[#allocation6 + $0xeb8] sm:$0xf0]  ;;  %5385 = vmatpush.bf16.msrb.mxu2 %v8773_v14  ;;  %v9347_v14 = vpop.f32.mrf.mxu3 }
 0x370   :  { %v8772_v57 = vld [vmem:[#allocation9 + $0x70] sm:$0xff]  ;;  %5374 = vmatpush.bf16.msrb.mxu1 %v8763_v56  ;;  %4818 = vmatpush.bf16.msrb.mxu3 %v7509_v38  ;;  %v7477_v28 = vor.u32 %v8649_v59, %v7474_v55  ;;  %v8793_v56 = vld [vmem:[#allocation9 + $0x118] sm:$0xff]  ;;  %v8775_v38 = vld [vmem:[#allocation9 + $0x88] sm:$0xff] }
 0x371   :  { %5411 = vmatpush.bf16.msrb.mxu0 %v8789_v32  ;;  %v8788_v1 = vld [vmem:[#allocation9 + $0xf0] sm:$0xff]  ;;  %v9349_v32 = vpop.f32.mrf.mxu1  ;;  %v8802_v59 = vld [vmem:[#allocation9 + $0x160] sm:$0xff] }
 0x372   :  { %4835 = vmatmul.bf16.vlgmr.msra.gmra.mxu0 %v9167_v27  ;;  %v8641_v12 = vld [vmem:[#allocation6 + $0xe5c] sm:$0xf]  ;;  %v8770_v27 = vld [vmem:[#allocation9 + $0x60] sm:$0xff] }
 0x373   :  { %v7442_v3 = vld [vmem:[#allocation6 + $0xe78] sm:$0xf0]  ;;  %5386 = vmatpush.bf16.msrb.mxu2 %v8772_v57  ;;  %v8774_v57 = vld [vmem:[#allocation9 + $0x80] sm:$0xff] }
 0x374   :  { %5375 = vmatpush.bf16.msrb.mxu1 %v8762_v63  ;;  %4819 = vmatpush.bf16.msrb.mxu3 %v7477_v28  ;;  %v7445_v46 = vor.u32 %v8641_v12, %v7442_v3  ;;  %v8633_v9 = vld [vmem:[#allocation6 + $0xe1c] sm:$0xf]  ;;  %v4680_v28 = vpop.f32.mrf.mxu0  ;;  %v8791_v3 = vld [vmem:[#allocation9 + $0x108] sm:$0xff] }
 0x375   :  { %5412 = vmatpush.bf16.msrb.mxu0 %v8788_v1  ;;  %v7410_v58 = vld [vmem:[#allocation6 + $0xe38] sm:$0xf0]  ;;  %v4842_v1 = vmax.f32 %v9265_v54, 0.0  ;;  %v4844_v54 = vmax.f32 %v9312_v6, 0.0  ;;  %v8809_v6 = vld [vmem:[#allocation9 + $0x198] sm:$0xff] }
 0x376   :  { %v8760_v39 = vld [vmem:[#allocation9 + $0x10] sm:$0xff]  ;;  %v7413_v10 = vor.u32 %v8633_v9, %v7410_v58  ;;  %v4590_v9 = vadd.f32 %v9334_v7, %v9337_v51  ;;  %v8811_v58 = vld [vmem:[#allocation9 + $0x1a8] sm:$0xff] }
 0x377   :  { %5387 = vmatpush.bf16.msrb.mxu2 %v8771_v4  ;;  %v8780_v22 = vld [vmem:[#allocation9 + $0xb0] sm:$0xff]  ;;  %v4617_v63 = vpop.f32.mrf.mxu3  ;;  %v4850_v26 = vpack.c.bf16 %v4842_v1, %v4842_v1 }
 0x378   :  { %5376 = vmatpush.bf16.msrb.mxu1 %v8761_v8  ;;  %4820 = vmatpush.bf16.msrb.mxu3 %v7445_v46  ;;  %v8768_v25 = vld [vmem:[#allocation9 + $0x50] sm:$0xff]  ;;  %v4654_v8 = vpop.f32.mrf.mxu2  ;;  %v8790_v46 = vld [vmem:[#allocation9 + $0x100] sm:$0xff] }
 0x379   :  { %5413 = vmatpush.bf16.msrb.mxu0 %v8787_v0  ;;  %v8784_v23 = vld [vmem:[#allocation9 + $0xd0] sm:$0xff]  ;;  %v4643_v12 = vpop.f32.mrf.mxu1 }
 0x37a   :  { %v8796_v11 = vld [vmem:[#allocation9 + $0x130] sm:$0xff] }
 0x37b   :  { %5388 = vmatpush.bf16.msrb.mxu2 %v8770_v27  ;;  %v8804_v49 = vld [vmem:[#allocation9 + $0x170] sm:$0xff] }
 0x37c   :  { %5377 = vmatpush.bf16.msrb.mxu1 %v8760_v39  ;;  %4821 = vmatpush.bf16.msrb.mxu3 %v7413_v10  ;;  %v8776_v35 = vld [vmem:[#allocation9 + $0x90] sm:$0xff]  ;;  %v4682_v27 = vpop.f32.mrf.mxu0  ;;  %v4603_v39 = vadd.f32 %v9341_v29, %v4590_v9  ;;  %v4852_v10 = vpack.c.bf16 %v4844_v54, %v4844_v54 }
 0x37d   :  { %5414 = vmatpush.bf16.msrb.mxu0 %v8786_v62  ;;  %v8792_v55 = vld [vmem:[#allocation9 + $0x110] sm:$0xff]  ;;  %v8799_v62 = vld [vmem:[#allocation9 + $0x148] sm:$0xff] }
 0x37e   :  { %v8812_v4 = vld [vmem:[#allocation9 + $0x1b0] sm:$0xff] }
 0x37f   :  { %5389 = vmatpush.bf16.msrb.mxu2 %v8769_v52  ;;  %4822 = vmatmul.bf16.vlgmr.msrb.gmra.mxu3 %v9161_v34  ;;  %v8766_v34 = vld [vmem:[#allocation9 + $0x40] sm:$0xff]  ;;  %v8800_v0 = vld [vmem:[#allocation9 + $0x150] sm:$0xff]  ;;  %v4845_v52 = vmax.f32 %v4603_v39, 0.0 }
 0x380   :  { %5398 = vmatpush.bf16.msra.mxu3 %v8781_v15  ;;  %5378 = vmatpush.bf16.msrb.mxu1 %v8759_v30  ;;  %v8798_v15 = vld [vmem:[#allocation9 + $0x140] sm:$0xff]  ;;  %v8808_v51 = vld [vmem:[#allocation9 + $0x190] sm:$0xff]  ;;  %v8852_v30 = vld [vmem:[#allocation7] sm:$0xff] }
 0x381   :  { %5415 = vmatpush.bf16.msrb.mxu0 %v8785_v20  ;;  %v4656_v20 = vpop.f32.mrf.mxu2  ;;  %v4853_v7 = vpack.c.bf16 %v4845_v52, %v4845_v52 }
 0x383   :  { %5390 = vmatpush.bf16.msrb.mxu2 %v8768_v25  ;;  %v4667_v21 = vpop.f32.mrf.mxu3 }
 0x384   :  { %5399 = vmatpush.bf16.msra.mxu3 %v8780_v22  ;;  %5379 = vmatpush.bf16.msrb.mxu1 %v8758_v31  ;;  %v1014_v22 = vperm.slane %v8852_v30, 6  ;;  %v8806_v31 = vld [vmem:[#allocation9 + $0x180] sm:$0xff] }
 0x385   :  { %5416 = vmatpush.bf16.msrb.mxu0 %v8784_v23  ;;  %v8807_v23 = vld [vmem:[#allocation9 + $0x188] sm:$0xff] }
 0x386   :  { %v4616_v29 = vadd.f32 %v9347_v14, %v1014_v22  ;;  %v4732_v36 = vpop.f32.mrf.mxu0  ;;  %v8819_v14 = vld [vmem:[#allocation9 + $0x1e8] sm:$0xff] }
 0x387   :  { %5391 = vmatpush.bf16.msrb.mxu2 %v8767_v41  ;;  %5380 = vmatmul.bf16.vlgmr.msrb.gmra.mxu1 %v4848_v42 }
 0x388   :  { %5424 = vmatpush.bf16.msra.mxu1 %v8797_v24  ;;  %5400 = vmatpush.bf16.msra.mxu3 %v8779_v37  ;;  %v4629_v37 = vadd.f32 %v9339_v16, %v4616_v29  ;;  %v8820_v16 = vld [vmem:[#allocation9 + $0x1f0] sm:$0xff] }
 0x389   :  { %5417 = vmatpush.bf16.msrb.mxu0 %v8783_v61  ;;  %v4693_v25 = vpop.f32.mrf.mxu1 }
 0x38a   :  { %v4642_v41 = vadd.f32 %v9349_v32, %v4629_v37  ;;  %v8818_v32 = vld [vmem:[#allocation9 + $0x1e0] sm:$0xff] }
 0x38b   :  { %5392 = vmatpush.bf16.msrb.mxu2 %v8766_v34  ;;  %v4669_v24 = vpop.f32.mrf.mxu3 }
 0x38c   :  { %5425 = vmatpush.bf16.msra.mxu1 %v8796_v11  ;;  %5401 = vmatpush.bf16.msra.mxu3 %v8778_v33  ;;  %v4655_v11 = vadd.f32 %v4654_v8, %v4642_v41 }
 0x38d   :  { %5418 = vmatpush.bf16.msrb.mxu0 %v8782_v43 }
 0x38e   :  { %5393 = vmatmul.bf16.vlgmr.msrb.gmra.mxu2 %v4849_v48  ;;  %v4734_v42 = vpop.f32.mrf.mxu0  ;;  %v4668_v33 = vadd.f32 %v4667_v21, %v4655_v11 }
 0x38f   :  { %5437 = vmatpush.bf16.msra.mxu2 %v8805_v40 }
 0x390   :  { %5426 = vmatpush.bf16.msra.mxu1 %v8795_v18  ;;  %5402 = vmatpush.bf16.msra.mxu3 %v8777_v44  ;;  %v4681_v34 = vadd.f32 %v4680_v28, %v4668_v33  ;;  %v8821_v44 = vld [vmem:[#allocation9 + $0x1f8] sm:$0xff]  ;;  %v1015_v28 = vperm.slane %v8852_v30, 7 }
 0x391   :  { %5419 = vmatmul.bf16.vlgmr.msrb.gmra.mxu0 %v4851_v50  ;;  %v4695_v19 = vpop.f32.mrf.mxu1 }
 0x392   :  { %v4694_v47 = vadd.f32 %v4693_v25, %v4681_v34  ;;  %5463 = vmatpush.bf16.msra.mxu0 %v8821_v44  ;;  %v8829_v34 = vld [vmem:[%s9396_s7 + $0x38] sm:$0xff] }
 0x393   :  { %5438 = vmatpush.bf16.msra.mxu2 %v8804_v49 }
 0x394   :  { %5427 = vmatpush.bf16.msra.mxu1 %v8794_v53  ;;  %5403 = vmatpush.bf16.msra.mxu3 %v8776_v35 }
 0x396   :  { %5464 = vmatpush.bf16.msra.mxu0 %v8820_v16 }
 0x397   :  { %5439 = vmatpush.bf16.msra.mxu2 %v8803_v5  ;;  %v4706_v61 = vpop.f32.mrf.mxu2 }
 0x398   :  { %5428 = vmatpush.bf16.msra.mxu1 %v8793_v56  ;;  %5404 = vmatpush.bf16.msra.mxu3 %v8775_v38  ;;  %v4707_v17 = vadd.f32 %v4706_v61, %v4694_v47  ;;  %v8817_v38 = vld [vmem:[#allocation9 + $0x1d8] sm:$0xff] }
 0x399   :  { %v8827_v47 = vld [vmem:[%s9396_s7 + $0x28] sm:$0xff] }
 0x39a   :  { %5465 = vmatpush.bf16.msra.mxu0 %v8819_v14 }
 0x39b   :  { %5440 = vmatpush.bf16.msra.mxu2 %v8802_v59  ;;  %v8816_v59 = vld [vmem:[#allocation9 + $0x1d0] sm:$0xff] }
 0x39c   :  { %5429 = vmatpush.bf16.msra.mxu1 %v8792_v55  ;;  %5405 = vmatpush.bf16.msra.mxu3 %v8774_v57  ;;  %v8815_v57 = vld [vmem:[#allocation9 + $0x1c8] sm:$0xff] }
 0x39e   :  { %5466 = vmatpush.bf16.msra.mxu0 %v8818_v32  ;;  %v8845_v32 = vld [vmem:[#allocation12] ss:$0 sm:$0xff] }
 0x39f   :  { %5441 = vmatpush.bf16.msra.mxu2 %v8801_v2  ;;  %5406 = vmatmul.bf16.vlgmr.msra.gmra.mxu3 %v4850_v26  ;;  %v4708_v43 = vpop.f32.mrf.mxu2  ;;  %v4733_v26 = vadd.f32 %v4732_v36, %v1015_v28 }
 0x3a0   :  { %5450 = vmatpush.bf16.msrb.mxu3 %v8813_v45  ;;  %5430 = vmatpush.bf16.msra.mxu1 %v8791_v3  ;;  %v8814_v45 = vld [vmem:[#allocation9 + $0x1c0] sm:$0xff] }
 0x3a1   :  { %v8828_v43 = vld [vmem:[%s9396_s7 + $0x30] sm:$0xff] }
 0x3a2   :  { %5467 = vmatpush.bf16.msra.mxu0 %v8817_v38 }
 0x3a3   :  { %5442 = vmatpush.bf16.msra.mxu2 %v8800_v0 }
 0x3a4   :  { %5451 = vmatpush.bf16.msrb.mxu3 %v8812_v4  ;;  %5431 = vmatpush.bf16.msra.mxu1 %v8790_v46 }
 0x3a5   :  { %v4719_v40 = vpop.f32.mrf.mxu3 }
 0x3a6   :  { %v4720_v60 = vadd.f32 %v4719_v40, %v4707_v17  ;;  %5468 = vmatpush.bf16.msra.mxu0 %v8816_v59  ;;  %v8826_v17 = vld [vmem:[%s9396_s7 + $0x20] sm:$0xff]  ;;  %v8825_v40 = vld [vmem:[%s9396_s7 + $0x18] sm:$0xff] }
 0x3a7   :  { %5443 = vmatpush.bf16.msra.mxu2 %v8799_v62  ;;  %5432 = vmatmul.bf16.vlgmr.msra.gmra.mxu1 %v4852_v10 }
 0x3a8   :  { %5452 = vmatpush.bf16.msrb.mxu3 %v8811_v58  ;;  %v4846_v48 = vmax.f32 %v4720_v60, 0.0  ;;  %5546 = vmatpush.bf16.msrb.mxu1 %v8829_v34  ;;  %v8824_v60 = vld [vmem:[%s9396_s7 + $0x10] sm:$0xff] }
 0x3a9   :  { %v4745_v18 = vpop.f32.mrf.mxu1 }
 0x3aa   :  { %v4854_v49 = vpack.c.bf16 %v4846_v48, %v4846_v48  ;;  %5469 = vmatpush.bf16.msra.mxu0 %v8815_v57  ;;  %v4746_v4 = vadd.f32 %v4745_v18, %v4733_v26  ;;  %v8823_v48 = vld [vmem:[%s9396_s7 + $0x8] sm:$0xff] }
 0x3ab   :  { %5444 = vmatpush.bf16.msra.mxu2 %v8798_v15 }
 0x3ac   :  { %5453 = vmatpush.bf16.msrb.mxu3 %v8810_v13  ;;  %5547 = vmatpush.bf16.msrb.mxu1 %v8828_v43 }
 0x3ad   :  { %v4721_v50 = vpop.f32.mrf.mxu3 }
 0x3ae   :  { %5445 = vmatmul.bf16.vlgmr.msra.gmra.mxu2 %v4853_v7  ;;  %5470 = vmatpush.bf16.msra.mxu0 %v8814_v45  ;;  %v8844_v7 = vld [vmem:[#allocation10] ss:$0 sm:$0xff] }
 0x3b0   :  { %5454 = vmatpush.bf16.msrb.mxu3 %v8809_v6  ;;  %5548 = vmatpush.bf16.msrb.mxu1 %v8827_v47 }
 0x3b1   :  { %v4747_v35 = vpop.f32.mrf.mxu1 }
 0x3b2   :  { %v4784_v53 = vpop.f32.mrf.mxu0 }
 0x3b4   :  { %5455 = vmatpush.bf16.msrb.mxu3 %v8808_v51  ;;  %5549 = vmatpush.bf16.msrb.mxu1 %v8826_v17 }
 0x3b7   :  { %v4758_v5 = vpop.f32.mrf.mxu2 }
 0x3b8   :  { %5456 = vmatpush.bf16.msrb.mxu3 %v8807_v23  ;;  %v4759_v8 = vadd.f32 %v4758_v5, %v4746_v4  ;;  %5550 = vmatpush.bf16.msrb.mxu1 %v8825_v40 }
 0x3ba   :  { %v4786_v56 = vpop.f32.mrf.mxu0 }
 0x3bc   :  { %5457 = vmatpush.bf16.msrb.mxu3 %v8806_v31  ;;  %5551 = vmatpush.bf16.msrb.mxu1 %v8824_v60 }
 0x3bf   :  { %5458 = vmatmul.bf16.vlgmr.msrb.gmra.mxu3 %v4854_v49  ;;  %v4760_v55 = vpop.f32.mrf.mxu2  ;;  %v8822_v49 = vld [vmem:[%s9396_s7] sm:$0xff] }
 0x3c0   :  { %5552 = vmatpush.bf16.msrb.mxu1 %v8823_v48 }
 0x3c4   :  { %5553 = vmatpush.bf16.msrb.mxu1 %v8822_v49 }
 0x3d7   :  { %v4771_v1 = vpop.f32.mrf.mxu3 }
 0x3d8   :  { %v4772_v54 = vadd.f32 %v4771_v1, %v4759_v8 }
 0x3da   :  { %v4785_v9 = vadd.f32 %v4784_v53, %v4772_v54 }
 0x3df   :  { %v4773_v2 = vpop.f32.mrf.mxu3 }
 0x3e1   :  { %v4797_v63 = vpop.f32.mrf.mxu1 }
 0x3e2   :  { %v4798_v27 = vadd.f32 %v4797_v63, %v4785_v9 }
 0x3e9   :  { %v4799_v3 = vpop.f32.mrf.mxu1 }
 0x3ef   :  { %v4836_v12 = vpop.f32.mrf.mxu0 }
 0x3f1   :  { %v4810_v0 = vpop.f32.mrf.mxu2 }
 0x3f2   :  { %v4811_v62 = vadd.f32 %v4810_v0, %v4798_v27 }
 0x3f7   :  { %v4838_v46 = vpop.f32.mrf.mxu0 }
 0x3f9   :  { %v4812_v58 = vpop.f32.mrf.mxu2 }
 0x402   :  { %v4823_v39 = vpop.f32.mrf.mxu3 }
 0x403   :  { %v4824_v10 = vadd.f32 %v4823_v39, %v4811_v62 }
 0x404   :  { %v5381_v13 = vpop.f32.mrf.mxu1 }
 0x405   :  { %v4837_v15 = vadd.f32 %v4836_v12, %v4824_v10  ;;  %v5382_v30 = vadd.f32 %v8844_v7, %v5381_v13 }
 0x407   :  { %v4847_v52 = vmax.f32 %v4837_v15, 0.0 }
 0x409   :  { %v4855_v20 = vpack.c.bf16 %v4847_v52, %v4847_v52 }
 0x40a   :  { %v4825_v6 = vpop.f32.mrf.mxu3 }
 0x40b   :  { %5471 = vmatmul.bf16.vlgmr.msra.gmra.mxu0 %v4855_v20 }
 0x40c   :  { %v5383_v21 = vpop.f32.mrf.mxu1 }
 0x40e   :  { %v5420_v51 = vpop.f32.mrf.mxu0 }
 0x411   :  { %v5394_v22 = vpop.f32.mrf.mxu2 }
 0x412   :  { %v5395_v25 = vadd.f32 %v5394_v22, %v5382_v30 }
 0x416   :  { %v5422_v23 = vpop.f32.mrf.mxu0 }
 0x419   :  { %v5396_v29 = vpop.f32.mrf.mxu2 }
 0x422   :  { %v5407_v31 = vpop.f32.mrf.mxu3 }
 0x423   :  { %v5408_v24 = vadd.f32 %v5407_v31, %v5395_v25 }
 0x424   :  { %v5433_v36 = vpop.f32.mrf.mxu1 }
 0x425   :  { %v5421_v37 = vadd.f32 %v5420_v51, %v5408_v24 }
 0x427   :  { %v5434_v19 = vadd.f32 %v5433_v36, %v5421_v37 }
 0x42a   :  { %v5409_v41 = vpop.f32.mrf.mxu3 }
 0x42c   :  { %v5435_v61 = vpop.f32.mrf.mxu1 }
 0x431   :  { %v5446_v11 = vpop.f32.mrf.mxu2 }
 0x432   :  { %v5447_v42 = vadd.f32 %v5446_v11, %v5434_v19 }
 0x439   :  { %v5448_v33 = vpop.f32.mrf.mxu2 }
 0x442   :  { %v5459_v18 = vpop.f32.mrf.mxu3 }
 0x443   :  { %v5460_v16 = vadd.f32 %v5459_v18, %v5447_v42 }
 0x44a   :  { %v5461_v44 = vpop.f32.mrf.mxu3 }
 0x488   :  { %v5472_v50 = vpop.f32.mrf.mxu0 }
 0x489   :  { %v5473_v53 = vadd.f32 %v5472_v50, %v5460_v16 }
 0x48b   :  { %v5476_v35 = vmax.f32 %v5473_v53, 0.0 }
 0x48d   :  { %v5477_v14 = vpack.c.bf16 %v5476_v35, %v5476_v35 }
 0x48f   :  { %5554 = vmatmul.bf16.vlgmr.msrb.gmra.mxu1 %v5477_v14 }
 0x490   :  { %v5474_v5 = vpop.f32.mrf.mxu0 }
 0x50c   :  { %v5555_v56 = vpop.f32.mrf.mxu1 }
 0x50d   :  { %v5556_v38 = vadd.f32 %v8845_v32, %v5555_v56 }
 0x50f   :  { %v5560_v59 = vsel %vm5559_vm1, %v5556_v38, -inf }
 0x510   :  { %5561 = vmax.xlane.f32.xlu0 %v5560_v59 }
 0x514   :  { %v5557_v55 = vpop.f32.mrf.mxu1 }
 0x583   :  { %v5562_v57 = vpop.xlane.xlu0 %5561 }
 0x584   :  { %v5563_v1 = vsub.f32 %v5556_v38, %v5562_v57 }
 0x586   :  { %v5564_v63 = vmul.f32 1.442695, %v5563_v1 }
 0x588   :  { %8846 = vpow2.f32 %v5564_v63 }
 0x58e   :  { %v8847_v45 = vpop.eup %8846 }
 0x58f   :  { %v5566_v28 = vsel %vm5559_vm1, %v8847_v45, 0.0 }
 0x590   :  { %5567 = vadd.xlane.f32.xlu0 %v5566_v28 }
 0x603   :  { %v5568_v2 = vpop.xlane.xlu0 %5567 }
 0x604   :  { %8848 = vlog2.f32 %v5568_v2 }
 0x60a   :  { %v8849_v12 = vpop.eup %8848 }
 0x60b   :  { %v5570_v3 = vmul.f32 0.6931472, %v8849_v12 }
 0x60d   :  { %v5571_v26 = vsub.f32 %v5563_v1, %v5570_v3 }
 0x60f   :  { %5572 = vst.msk [vmem:[%s9398_s9] sm:$0xff] %vm5559_vm1, %v5571_v26 }
 0x610   :  { %5577 = vsyncpa [#allocation3], 1 }
 0x611   :  { %5578 = vsyncpa [#allocation5], 1 }
 0x612   :  { %5579 = vsyncpa [#allocation8], 1 }
 0x613   :  { %5580 = vsyncpa [#allocation11], 1 }

</bundles_post_ra>
